<compile_context>
chip_gen: v7x
topology: tpu7x:2x2x1
jax: 0.10.0
libtpu: 0.0.40
codegen_flags: <defaults>
</compile_context>

<pallas_src>
import math
from functools import partial

import jax
import jax.numpy as jnp
from jax.experimental import pallas as pl
from jax.experimental.pallas import tpu as pltpu


# ------------------------------- fused kernel --------------------------------

def _decision_mamba_kernel(
    # runtime inputs
    ts_ref, st_ref, ac_ref, rt_ref,
    # embedding params
    tab_ref, esw_ref, esb_ref, erw_ref, erb_ref, eaw_ref, eab_ref,
    elg_ref, elb_ref,
    # per-layer params, stacked on a leading n_layer axis
    rmsw_ref, wix_ref, bix_ref, wir_ref, bir_ref, cw_ref, cb_ref,
    wdelta_ref, bdelta_ref, wB_ref, wC_ref, dD_ref, wo_ref, bo_ref,
    l2g_ref, l2b_ref, f1w_ref, f1b_ref, f2w_ref, f2b_ref,
    # final layernorm + action head
    lfg_ref, lfb_ref, paw_ref, pab_ref,
    # output
    out_ref,
    *, B, L, d_inner, n_layer, ln_eps):
  f32 = jnp.float32
  BL = B * L

  def layernorm(v, g, b, e):
    mu = jnp.mean(v, axis=-1, keepdims=True)
    vc = v - mu
    var = jnp.mean(vc * vc, axis=-1, keepdims=True)
    return vc * jax.lax.rsqrt(var + e) * g + b

  def rmsnorm(v, g):
    ms = jnp.mean(v * v, axis=-1, keepdims=True)
    return v * jax.lax.rsqrt(ms + 1e-5) * g

  def silu(v):
    return v * jax.nn.sigmoid(v)

  def softplus(v):
    return jnp.maximum(v, 0.0) + jnp.log1p(jnp.exp(-jnp.abs(v)))

  def gelu(v):  # exact (erf) GELU == nn.GELU() default
    return 0.5 * v * (1.0 + jax.lax.erf(v * (1.0 / math.sqrt(2.0))))

  def vpu_mm(x, w):  # tiny-K contraction on the VPU (avoid MXU push/pop)
    return jnp.sum(x[:, :, None] * w[None, :, :], axis=1)

  def mm(x, w):
    return jnp.dot(x, w, preferred_element_type=f32)

  # --- timestep embedding via one-hot matmul (keeps the gather in-kernel) ---
  n_emb = tab_ref.shape[0]
  ts = ts_ref[...]                                                  # (BL, 1) i32
  pos = jax.lax.broadcasted_iota(jnp.int32, (BL, n_emb), 1)
  te = mm((pos == ts).astype(f32), tab_ref[...])                    # (BL, H)

  # --- input embeddings (K = 1 / state_dim / act_dim -> VPU path) ---
  re = vpu_mm(rt_ref[...], erw_ref[...]) + erb_ref[...] + te
  se = vpu_mm(st_ref[...], esw_ref[...]) + esb_ref[...] + te
  ae = vpu_mm(ac_ref[...], eaw_ref[...]) + eab_ref[...] + te

  # Stream-blocked layout: rows [0:BL)=returns, [BL:2BL)=states, [2BL:3BL)=actions.
  x = jnp.concatenate([re, se, ae], axis=0)                         # (3BL, H)

  x = layernorm(x, elg_ref[...], elb_ref[...], 1e-5)                # embed_ln
  # TODO(synk): nn.Dropout(embd_drop) omitted -- embd_drop = 0.0 (identity).

  for li in range(n_layer):
    # ---------------- MambaBlock(norm_mamba(x)) + residual ----------------
    h = rmsnorm(x, rmsw_ref[li])
    xpart = mm(h, wix_ref[li]) + bix_ref[li]                        # (3BL, d_in)
    res = mm(h, wir_ref[li]) + bir_ref[li]                          # (3BL, d_in)

    cw, cb = cw_ref[li], cb_ref[li]
    wdelta, bdelta = wdelta_ref[li], bdelta_ref[li]
    wB, wC, dD = wB_ref[li], wC_ref[li], dD_ref[li]

    # conv1d(x)[:, :, :1]: only (last tap)*(sequence position 0)+bias survives;
    # seq position 0 is the return token of l=0 == row b*L of the return block.
    # Selective scan over a length-1 sequence: initial state is zero, so
    # exp(delta*A)*state == 0 and A_log cancels from the result exactly.
    y_rows = []
    for b in range(B):
      x0 = xpart[b * L:b * L + 1, :]                                # (1, d_in)
      u = silu(x0 * cw + cb)                                        # (1, d_in)
      delta = softplus(mm(u, wdelta) + bdelta)                      # (1, d_in)
      bc = jnp.sum(mm(u, wB) * mm(u, wC), axis=-1, keepdims=True)   # (1, 1)
      y = delta * u * bc + u * dD                                   # (1, d_in)
      y_rows.append(jnp.broadcast_to(y, (L, d_inner)))              # (L, d_in)
    yb = jnp.concatenate(y_rows, axis=0)                            # (BL, d_in)
    y_full = jnp.concatenate([yb, yb, yb], axis=0)                  # (3BL, d_in)

    gated = y_full * silu(res)
    x = x + mm(gated, wo_ref[li]) + bo_ref[li]

    # ---------------- MLP(ln_2(x)) + residual ----------------
    h2 = layernorm(x, l2g_ref[li], l2b_ref[li], ln_eps)
    m = gelu(mm(h2, f1w_ref[li]) + f1b_ref[li])
    m = mm(m, f2w_ref[li]) + f2b_ref[li]
    # TODO(synk): nn.Dropout(drop_p) omitted -- drop_p = 0.0 (identity).
    x = x + m

  # ---------------- ln_f + predict_action on the state tokens ----------------
  x = layernorm(x, lfg_ref[...], lfb_ref[...], ln_eps)
  state_reps = x[BL:2 * BL, :]                                      # (BL, H)
  out_ref[...] = jnp.tanh(mm(state_reps, paw_ref[...]) + pab_ref[...])


# ------------------------------ forward wrapper -------------------------------

def decision_mamba_forward(packed, timesteps, states, actions, returns_to_go, cfg):
  B, L = timesteps.shape
  BL = B * L
  kernel = partial(_decision_mamba_kernel, B=B, L=L,
                   d_inner=cfg["d_inner"], n_layer=cfg["n_layer"],
                   ln_eps=cfg["eps"])
  preds = pl.pallas_call(
      kernel,
      out_shape=jax.ShapeDtypeStruct((BL, cfg["act_dim"]), jnp.float32),
      compiler_params=pltpu.CompilerParams(vmem_limit_bytes=32 * 1024 * 1024),
  )(
      timesteps.reshape(BL, 1).astype(jnp.int32),
      states.reshape(BL, -1).astype(jnp.float32),
      actions.reshape(BL, -1).astype(jnp.float32),
      returns_to_go.reshape(BL, 1).astype(jnp.float32),
      *packed,
  )
  return preds.reshape(B, L, cfg["act_dim"])


# ----------------------------- parameter packing ------------------------------

def pack_params(params, cfg):
  """Repack the torch-shaped param dict into the kernel's flat arg list.

  Done once, outside the jitted forward:
    * in_proj is split into its x / res halves (avoids in-kernel lane slicing),
    * x_proj is split into its dt / B / C column groups,
    * W_delta = x_proj[:, :dt_rank] @ dt_proj_w (same linear map, re-associated),
    * 1-D vectors become (1, N) rows; per-layer tensors stack on a leading axis.
  """
  d_in = cfg["d_inner"]
  n = cfg["d_state"]
  dt_rank = cfg["dt_rank"]

  def row(v):
    return v.reshape(1, -1)

  def stack(fn):
    return jnp.stack([fn(blk) for blk in params["blocks"]], axis=0)

  return [
      # embeddings
      params["embed_timestep"],
      params["embed_state_w"], row(params["embed_state_b"]),
      params["embed_return_w"], row(params["embed_return_b"]),
      params["embed_action_w"], row(params["embed_action_b"]),
      row(params["embed_ln_g"]), row(params["embed_ln_b"]),
      # per-layer (stacked on leading n_layer axis)
      stack(lambda b: row(b["rms_w"])),
      stack(lambda b: b["mamba"]["in_proj_w"][:, :d_in]),
      stack(lambda b: row(b["mamba"]["in_proj_b"][:d_in])),
      stack(lambda b: b["mamba"]["in_proj_w"][:, d_in:]),
      stack(lambda b: row(b["mamba"]["in_proj_b"][d_in:])),
      stack(lambda b: row(b["mamba"]["conv_w_last"])),
      stack(lambda b: row(b["mamba"]["conv_b"])),
      stack(lambda b: b["mamba"]["x_proj_w"][:, :dt_rank] @ b["mamba"]["dt_proj_w"]),
      stack(lambda b: row(b["mamba"]["dt_proj_b"])),
      stack(lambda b: b["mamba"]["x_proj_w"][:, dt_rank:dt_rank + n]),
      stack(lambda b: b["mamba"]["x_proj_w"][:, dt_rank + n:dt_rank + 2 * n]),
      stack(lambda b: row(b["mamba"]["D"])),
      stack(lambda b: b["mamba"]["out_proj_w"]),
      stack(lambda b: row(b["mamba"]["out_proj_b"])),
      stack(lambda b: row(b["ln2_g"])),
      stack(lambda b: row(b["ln2_b"])),
      stack(lambda b: b["fc1_w"]),
      stack(lambda b: row(b["fc1_b"])),
      stack(lambda b: b["fc2_w"]),
      stack(lambda b: row(b["fc2_b"])),
      # final layernorm + action head
      row(params["ln_f_g"]), row(params["ln_f_b"]),
      params["predict_action_w"], row(params["predict_action_b"]),
  ]


# ------------------------------ parameter init --------------------------------

def _dense(key, k_in, n_out, scale=0.02):
  return scale * jax.random.normal(key, (k_in, n_out), jnp.float32)


def init_mamba_params(key, H, d_inner, d_state, dt_rank, d_conv,
                      dt_min=0.001, dt_max=0.1, dt_init_floor=1e-4):
  ks = jax.random.split(key, 8)
  p = {}
  # ModelArgs defaults bias=(False,) / conv_bias=(True,) are truthy tuples, so
  # in_proj / out_proj / conv1d all carry biases in the torch module.
  p["in_proj_w"] = _dense(ks[0], H, 2 * d_inner)
  p["in_proj_b"] = 0.01 * jax.random.normal(ks[1], (2 * d_inner,), jnp.float32)
  conv_w = 0.1 * jax.random.normal(ks[2], (d_inner, d_conv), jnp.float32)
  p["conv_w_last"] = conv_w[:, -1]   # only the last tap reaches the [:, :, :1] slice
  p["conv_b"] = 0.01 * jax.random.normal(ks[3], (d_inner,), jnp.float32)
  p["x_proj_w"] = _dense(ks[4], d_inner, dt_rank + 2 * d_state)
  dt_std = dt_rank ** -0.5
  p["dt_proj_w"] = jax.random.uniform(ks[5], (dt_rank, d_inner), jnp.float32,
                                      minval=-dt_std, maxval=dt_std)
  dt = jnp.exp(jax.random.uniform(ks[6], (d_inner,), jnp.float32)
               * (math.log(dt_max) - math.log(dt_min)) + math.log(dt_min))
  dt = jnp.maximum(dt, dt_init_floor)
  p["dt_proj_b"] = dt + jnp.log(-jnp.expm1(-dt))
  p["A_log"] = jnp.log(jnp.broadcast_to(
      jnp.arange(1, d_state + 1, dtype=jnp.float32), (d_inner, d_state)))
  p["D"] = jnp.ones((d_inner,), jnp.float32)
  p["out_proj_w"] = _dense(ks[7], d_inner, H)
  p["out_proj_b"] = jnp.zeros((H,), jnp.float32)
  return p


def init_params(key, cfg):
  H = cfg["hidden"]
  inner = cfg["n_inner"]
  ks = jax.random.split(key, 10 + cfg["n_layer"])
  params = {
      "embed_timestep": 0.02 * jax.random.normal(ks[0], (cfg["max_ep_len"], H), jnp.float32),
      "embed_return_w": _dense(ks[1], 1, H),
      "embed_return_b": jnp.zeros((H,), jnp.float32),
      "embed_state_w": _dense(ks[2], cfg["state_dim"], H),
      "embed_state_b": jnp.zeros((H,), jnp.float32),
      "embed_action_w": _dense(ks[3], cfg["act_dim"], H),
      "embed_action_b": jnp.zeros((H,), jnp.float32),
      "embed_ln_g": jnp.ones((H,), jnp.float32),
      "embed_ln_b": jnp.zeros((H,), jnp.float32),
      "ln_f_g": jnp.ones((H,), jnp.float32),
      "ln_f_b": jnp.zeros((H,), jnp.float32),
      "predict_action_w": _dense(ks[4], H, cfg["act_dim"]),
      "predict_action_b": jnp.zeros((cfg["act_dim"],), jnp.float32),
      "blocks": [],
  }
  for li in range(cfg["n_layer"]):
    bk = jax.random.split(ks[10 + li], 5)
    params["blocks"].append({
        "rms_w": jnp.ones((H,), jnp.float32),
        "ln2_g": jnp.ones((H,), jnp.float32),
        "ln2_b": jnp.zeros((H,), jnp.float32),
        "fc1_w": _dense(bk[0], H, inner),
        "fc1_b": 0.01 * jax.random.normal(bk[1], (inner,), jnp.float32),
        "fc2_w": _dense(bk[2], inner, H),
        "fc2_b": 0.01 * jax.random.normal(bk[3], (H,), jnp.float32),
        "mamba": init_mamba_params(bk[4], H, cfg["d_inner"], cfg["d_state"],
                                   cfg["dt_rank"], cfg["d_conv"]),
    })
  return params


# ---------------------------------- main ---------------------------------------

if __name__ == "__main__":
  hidden = 32
  cfg = {
      "state_dim": 11,
      "act_dim": 3,
      "hidden": hidden,
      "max_ep_len": 64,
      "n_layer": 2,
      "n_inner": 4 * hidden,
      "eps": 1e-5,                       # layer_norm_epsilon
      # ModelArgs(d_model=hidden): expand=2, d_state=16, d_conv=4, dt_rank=ceil(H/16)
      "d_inner": 2 * hidden,
      "d_state": 16,
      "d_conv": 4,
      "dt_rank": math.ceil(hidden / 16),
  }

  key = jax.random.PRNGKey(0)
  kp, kt, ks, ka, kr = jax.random.split(key, 5)
  params = init_params(kp, cfg)
  packed = pack_params(params, cfg)       # one-time repack; not inside the jit

  B, L = 2, 8
  timesteps = jax.random.randint(kt, (B, L), 0, cfg["max_ep_len"], dtype=jnp.int32)
  states = jax.random.normal(ks, (B, L, cfg["state_dim"]), jnp.float32)
  actions = jax.random.normal(ka, (B, L, cfg["act_dim"]), jnp.float32)
  returns_to_go = jax.random.normal(kr, (B, L, 1), jnp.float32)

  fwd = jax.jit(lambda pk, t, s, a, r: decision_mamba_forward(pk, t, s, a, r, cfg))
  action_preds = fwd(packed, timesteps, states, actions, returns_to_go)
  jax.block_until_ready(action_preds)
  assert action_preds.shape == (B, L, cfg["act_dim"])
  assert bool(jnp.all(jnp.isfinite(action_preds)))
  print("KERNEL_OK")
</pallas_src>

<mosaic_0001>
module attributes {stable_mosaic.version = 11 : i64} {
  func.func @_decision_mamba_kernel(%arg0: memref<16x1xi32, #tpu.memory_space<vmem>>, %arg1: memref<16x11xf32, #tpu.memory_space<vmem>>, %arg2: memref<16x3xf32, #tpu.memory_space<vmem>>, %arg3: memref<16x1xf32, #tpu.memory_space<vmem>>, %arg4: memref<64x32xf32, #tpu.memory_space<vmem>>, %arg5: memref<11x32xf32, #tpu.memory_space<vmem>>, %arg6: memref<1x32xf32, #tpu.memory_space<vmem>>, %arg7: memref<1x32xf32, #tpu.memory_space<vmem>>, %arg8: memref<1x32xf32, #tpu.memory_space<vmem>>, %arg9: memref<3x32xf32, #tpu.memory_space<vmem>>, %arg10: memref<1x32xf32, #tpu.memory_space<vmem>>, %arg11: memref<1x32xf32, #tpu.memory_space<vmem>>, %arg12: memref<1x32xf32, #tpu.memory_space<vmem>>, %arg13: memref<2x1x32xf32, #tpu.memory_space<vmem>>, %arg14: memref<2x32x64xf32, #tpu.memory_space<vmem>>, %arg15: memref<2x1x64xf32, #tpu.memory_space<vmem>>, %arg16: memref<2x32x64xf32, #tpu.memory_space<vmem>>, %arg17: memref<2x1x64xf32, #tpu.memory_space<vmem>>, %arg18: memref<2x1x64xf32, #tpu.memory_space<vmem>>, %arg19: memref<2x1x64xf32, #tpu.memory_space<vmem>>, %arg20: memref<2x64x64xf32, #tpu.memory_space<vmem>>, %arg21: memref<2x1x64xf32, #tpu.memory_space<vmem>>, %arg22: memref<2x64x16xf32, #tpu.memory_space<vmem>>, %arg23: memref<2x64x16xf32, #tpu.memory_space<vmem>>, %arg24: memref<2x1x64xf32, #tpu.memory_space<vmem>>, %arg25: memref<2x64x32xf32, #tpu.memory_space<vmem>>, %arg26: memref<2x1x32xf32, #tpu.memory_space<vmem>>, %arg27: memref<2x1x32xf32, #tpu.memory_space<vmem>>, %arg28: memref<2x1x32xf32, #tpu.memory_space<vmem>>, %arg29: memref<2x32x128xf32, #tpu.memory_space<vmem>>, %arg30: memref<2x1x128xf32, #tpu.memory_space<vmem>>, %arg31: memref<2x128x32xf32, #tpu.memory_space<vmem>>, %arg32: memref<2x1x32xf32, #tpu.memory_space<vmem>>, %arg33: memref<1x32xf32, #tpu.memory_space<vmem>>, %arg34: memref<1x32xf32, #tpu.memory_space<vmem>>, %arg35: memref<32x3xf32, #tpu.memory_space<vmem>>, %arg36: memref<1x3xf32, #tpu.memory_space<vmem>>, %arg37: memref<16x3xf32, #tpu.memory_space<vmem>>) attributes {dimension_semantics = [], scalar_prefetch = 0 : i64, scratch_operands = 0 : i64, tpu.core_type = #tpu.core_type<tc>} {
    %c0 = arith.constant 0 : index
    %c0_0 = arith.constant 0 : index
    %0 = vector.load %arg0[%c0, %c0_0] : memref<16x1xi32, #tpu.memory_space<vmem>>, vector<16x1xi32>
    %1 = tpu.iota {dimensions = array<i32: 1>} : vector<16x64xi32>
    %2 = vector.broadcast %0 : vector<16x1xi32> to vector<16x64xi32>
    %3 = arith.cmpi eq, %1, %2 : vector<16x64xi32>
    %4 = arith.extui %3 : vector<16x64xi1> to vector<16x64xi32>
    %5 = arith.sitofp %4 : vector<16x64xi32> to vector<16x64xf32>
    %c0_1 = arith.constant 0 : index
    %c0_2 = arith.constant 0 : index
    %6 = vector.load %arg4[%c0_1, %c0_2] : memref<64x32xf32, #tpu.memory_space<vmem>>, vector<64x32xf32>
    %cst = arith.constant dense<0.000000e+00> : vector<16x32xf32>
    %7 = tpu.matmul %5, %6, %cst {dimension_numbers = #tpu.dot_dimension_numbers<[1], [0], [0], [1], [0, 0, 1, 1], [], []>} : vector<16x64xf32>, vector<64x32xf32>, vector<16x32xf32> -> vector<16x32xf32>
    %c0_3 = arith.constant 0 : index
    %c0_4 = arith.constant 0 : index
    %8 = vector.load %arg3[%c0_3, %c0_4] : memref<16x1xf32, #tpu.memory_space<vmem>>, vector<16x1xf32>
    %c0_5 = arith.constant 0 : index
    %c0_6 = arith.constant 0 : index
    %9 = vector.load %arg7[%c0_5, %c0_6] : memref<1x32xf32, #tpu.memory_space<vmem>>, vector<1x32xf32>
    %10 = vector.shape_cast %8 : vector<16x1xf32> to vector<16x1x1xf32>
    %11 = vector.shape_cast %9 : vector<1x32xf32> to vector<1x1x32xf32>
    %12 = vector.broadcast %10 : vector<16x1x1xf32> to vector<16x1x32xf32>
    %13 = vector.broadcast %11 : vector<1x1x32xf32> to vector<16x1x32xf32>
    %14 = arith.mulf %12, %13 : vector<16x1x32xf32>
    %cst_7 = arith.constant dense<0.000000e+00> : vector<16x32xf32>
    %15 = vector.multi_reduction <add>, %14, %cst_7 [1] : vector<16x1x32xf32> to vector<16x32xf32>
    %c0_8 = arith.constant 0 : index
    %c0_9 = arith.constant 0 : index
    %16 = vector.load %arg8[%c0_8, %c0_9] : memref<1x32xf32, #tpu.memory_space<vmem>>, vector<1x32xf32>
    %17 = vector.broadcast %16 : vector<1x32xf32> to vector<16x32xf32>
    %18 = arith.addf %15, %17 : vector<16x32xf32>
    %19 = arith.addf %18, %7 : vector<16x32xf32>
    %c0_10 = arith.constant 0 : index
    %c0_11 = arith.constant 0 : index
    %20 = vector.load %arg1[%c0_10, %c0_11] : memref<16x11xf32, #tpu.memory_space<vmem>>, vector<16x11xf32>
    %c0_12 = arith.constant 0 : index
    %c0_13 = arith.constant 0 : index
    %21 = vector.load %arg5[%c0_12, %c0_13] : memref<11x32xf32, #tpu.memory_space<vmem>>, vector<11x32xf32>
    %22 = vector.shape_cast %20 : vector<16x11xf32> to vector<16x11x1xf32>
    %23 = vector.shape_cast %21 : vector<11x32xf32> to vector<1x11x32xf32>
    %24 = vector.broadcast %22 : vector<16x11x1xf32> to vector<16x11x32xf32>
    %25 = vector.broadcast %23 : vector<1x11x32xf32> to vector<16x11x32xf32>
    %26 = arith.mulf %24, %25 : vector<16x11x32xf32>
    %cst_14 = arith.constant dense<0.000000e+00> : vector<16x32xf32>
    %27 = vector.multi_reduction <add>, %26, %cst_14 [1] : vector<16x11x32xf32> to vector<16x32xf32>
    %c0_15 = arith.constant 0 : index
    %c0_16 = arith.constant 0 : index
    %28 = vector.load %arg6[%c0_15, %c0_16] : memref<1x32xf32, #tpu.memory_space<vmem>>, vector<1x32xf32>
    %29 = vector.broadcast %28 : vector<1x32xf32> to vector<16x32xf32>
    %30 = arith.addf %27, %29 : vector<16x32xf32>
    %31 = arith.addf %30, %7 : vector<16x32xf32>
    %c0_17 = arith.constant 0 : index
    %c0_18 = arith.constant 0 : index
    %32 = vector.load %arg2[%c0_17, %c0_18] : memref<16x3xf32, #tpu.memory_space<vmem>>, vector<16x3xf32>
    %c0_19 = arith.constant 0 : index
    %c0_20 = arith.constant 0 : index
    %33 = vector.load %arg9[%c0_19, %c0_20] : memref<3x32xf32, #tpu.memory_space<vmem>>, vector<3x32xf32>
    %34 = vector.shape_cast %32 : vector<16x3xf32> to vector<16x3x1xf32>
    %35 = vector.shape_cast %33 : vector<3x32xf32> to vector<1x3x32xf32>
    %36 = vector.broadcast %34 : vector<16x3x1xf32> to vector<16x3x32xf32>
    %37 = vector.broadcast %35 : vector<1x3x32xf32> to vector<16x3x32xf32>
    %38 = arith.mulf %36, %37 : vector<16x3x32xf32>
    %cst_21 = arith.constant dense<0.000000e+00> : vector<16x32xf32>
    %39 = vector.multi_reduction <add>, %38, %cst_21 [1] : vector<16x3x32xf32> to vector<16x32xf32>
    %c0_22 = arith.constant 0 : index
    %c0_23 = arith.constant 0 : index
    %40 = vector.load %arg10[%c0_22, %c0_23] : memref<1x32xf32, #tpu.memory_space<vmem>>, vector<1x32xf32>
    %41 = vector.broadcast %40 : vector<1x32xf32> to vector<16x32xf32>
    %42 = arith.addf %39, %41 : vector<16x32xf32>
    %43 = arith.addf %42, %7 : vector<16x32xf32>
    %44 = tpu.concatenate %19, %31, %43 in 0 : vector<16x32xf32>, vector<16x32xf32>, vector<16x32xf32> -> vector<48x32xf32>
    %c0_24 = arith.constant 0 : index
    %c0_25 = arith.constant 0 : index
    %45 = vector.load %arg11[%c0_24, %c0_25] : memref<1x32xf32, #tpu.memory_space<vmem>>, vector<1x32xf32>
    %c0_26 = arith.constant 0 : index
    %c0_27 = arith.constant 0 : index
    %46 = vector.load %arg12[%c0_26, %c0_27] : memref<1x32xf32, #tpu.memory_space<vmem>>, vector<1x32xf32>
    %cst_28 = arith.constant dense<0.000000e+00> : vector<48xf32>
    %47 = vector.multi_reduction <add>, %44, %cst_28 [1] : vector<48x32xf32> to vector<48xf32>
    %48 = vector.shape_cast %47 : vector<48xf32> to vector<48x1xf32>
    %cst_29 = arith.constant 3.200000e+01 : f32
    %49 = vector.broadcast %cst_29 : f32 to vector<48x1xf32>
    %50 = arith.divf %48, %49 : vector<48x1xf32>
    %51 = vector.broadcast %50 : vector<48x1xf32> to vector<48x32xf32>
    %52 = arith.subf %44, %51 : vector<48x32xf32>
    %53 = arith.mulf %52, %52 : vector<48x32xf32>
    %cst_30 = arith.constant dense<0.000000e+00> : vector<48xf32>
    %54 = vector.multi_reduction <add>, %53, %cst_30 [1] : vector<48x32xf32> to vector<48xf32>
    %55 = vector.shape_cast %54 : vector<48xf32> to vector<48x1xf32>
    %cst_31 = arith.constant 3.200000e+01 : f32
    %56 = vector.broadcast %cst_31 : f32 to vector<48x1xf32>
    %57 = arith.divf %55, %56 : vector<48x1xf32>
    %cst_32 = arith.constant 9.99999974E-6 : f32
    %58 = vector.broadcast %cst_32 : f32 to vector<48x1xf32>
    %59 = arith.addf %57, %58 : vector<48x1xf32>
    %60 = math.rsqrt %59 : vector<48x1xf32>
    %61 = vector.broadcast %60 : vector<48x1xf32> to vector<48x32xf32>
    %62 = arith.mulf %52, %61 : vector<48x32xf32>
    %63 = vector.broadcast %45 : vector<1x32xf32> to vector<48x32xf32>
    %64 = arith.mulf %62, %63 : vector<48x32xf32>
    %65 = vector.broadcast %46 : vector<1x32xf32> to vector<48x32xf32>
    %66 = arith.addf %64, %65 : vector<48x32xf32>
    %c0_33 = arith.constant 0 : index
    %c0_34 = arith.constant 0 : index
    %c0_35 = arith.constant 0 : index
    %67 = vector.load %arg13[%c0_33, %c0_34, %c0_35] : memref<2x1x32xf32, #tpu.memory_space<vmem>>, vector<1x1x32xf32>
    %68 = vector.shape_cast %67 : vector<1x1x32xf32> to vector<1x32xf32>
    %69 = arith.mulf %66, %66 : vector<48x32xf32>
    %cst_36 = arith.constant dense<0.000000e+00> : vector<48xf32>
    %70 = vector.multi_reduction <add>, %69, %cst_36 [1] : vector<48x32xf32> to vector<48xf32>
    %71 = vector.shape_cast %70 : vector<48xf32> to vector<48x1xf32>
    %cst_37 = arith.constant 3.200000e+01 : f32
    %72 = vector.broadcast %cst_37 : f32 to vector<48x1xf32>
    %73 = arith.divf %71, %72 : vector<48x1xf32>
    %cst_38 = arith.constant 9.99999974E-6 : f32
    %74 = vector.broadcast %cst_38 : f32 to vector<48x1xf32>
    %75 = arith.addf %73, %74 : vector<48x1xf32>
    %76 = math.rsqrt %75 : vector<48x1xf32>
    %77 = vector.broadcast %76 : vector<48x1xf32> to vector<48x32xf32>
    %78 = arith.mulf %66, %77 : vector<48x32xf32>
    %79 = vector.broadcast %68 : vector<1x32xf32> to vector<48x32xf32>
    %80 = arith.mulf %78, %79 : vector<48x32xf32>
    %c0_39 = arith.constant 0 : index
    %c0_40 = arith.constant 0 : index
    %c0_41 = arith.constant 0 : index
    %81 = vector.load %arg14[%c0_39, %c0_40, %c0_41] : memref<2x32x64xf32, #tpu.memory_space<vmem>>, vector<1x32x64xf32>
    %82 = vector.shape_cast %81 : vector<1x32x64xf32> to vector<32x64xf32>
    %cst_42 = arith.constant dense<0.000000e+00> : vector<48x64xf32>
    %83 = tpu.matmul %80, %82, %cst_42 {dimension_numbers = #tpu.dot_dimension_numbers<[1], [0], [0], [1], [0, 0, 1, 1], [], []>} : vector<48x32xf32>, vector<32x64xf32>, vector<48x64xf32> -> vector<48x64xf32>
    %c0_43 = arith.constant 0 : index
    %c0_44 = arith.constant 0 : index
    %c0_45 = arith.constant 0 : index
    %84 = vector.load %arg15[%c0_43, %c0_44, %c0_45] : memref<2x1x64xf32, #tpu.memory_space<vmem>>, vector<1x1x64xf32>
    %85 = vector.shape_cast %84 : vector<1x1x64xf32> to vector<1x64xf32>
    %86 = vector.broadcast %85 : vector<1x64xf32> to vector<48x64xf32>
    %87 = arith.addf %83, %86 : vector<48x64xf32>
    %c0_46 = arith.constant 0 : index
    %c0_47 = arith.constant 0 : index
    %c0_48 = arith.constant 0 : index
    %88 = vector.load %arg16[%c0_46, %c0_47, %c0_48] : memref<2x32x64xf32, #tpu.memory_space<vmem>>, vector<1x32x64xf32>
    %89 = vector.shape_cast %88 : vector<1x32x64xf32> to vector<32x64xf32>
    %cst_49 = arith.constant dense<0.000000e+00> : vector<48x64xf32>
    %90 = tpu.matmul %80, %89, %cst_49 {dimension_numbers = #tpu.dot_dimension_numbers<[1], [0], [0], [1], [0, 0, 1, 1], [], []>} : vector<48x32xf32>, vector<32x64xf32>, vector<48x64xf32> -> vector<48x64xf32>
    %c0_50 = arith.constant 0 : index
    %c0_51 = arith.constant 0 : index
    %c0_52 = arith.constant 0 : index
    %91 = vector.load %arg17[%c0_50, %c0_51, %c0_52] : memref<2x1x64xf32, #tpu.memory_space<vmem>>, vector<1x1x64xf32>
    %92 = vector.shape_cast %91 : vector<1x1x64xf32> to vector<1x64xf32>
    %93 = vector.broadcast %92 : vector<1x64xf32> to vector<48x64xf32>
    %94 = arith.addf %90, %93 : vector<48x64xf32>
    %c0_53 = arith.constant 0 : index
    %c0_54 = arith.constant 0 : index
    %c0_55 = arith.constant 0 : index
    %95 = vector.load %arg18[%c0_53, %c0_54, %c0_55] : memref<2x1x64xf32, #tpu.memory_space<vmem>>, vector<1x1x64xf32>
    %96 = vector.shape_cast %95 : vector<1x1x64xf32> to vector<1x64xf32>
    %c0_56 = arith.constant 0 : index
    %c0_57 = arith.constant 0 : index
    %c0_58 = arith.constant 0 : index
    %97 = vector.load %arg19[%c0_56, %c0_57, %c0_58] : memref<2x1x64xf32, #tpu.memory_space<vmem>>, vector<1x1x64xf32>
    %98 = vector.shape_cast %97 : vector<1x1x64xf32> to vector<1x64xf32>
    %c0_59 = arith.constant 0 : index
    %c0_60 = arith.constant 0 : index
    %c0_61 = arith.constant 0 : index
    %99 = vector.load %arg20[%c0_59, %c0_60, %c0_61] : memref<2x64x64xf32, #tpu.memory_space<vmem>>, vector<1x64x64xf32>
    %100 = vector.shape_cast %99 : vector<1x64x64xf32> to vector<64x64xf32>
    %c0_62 = arith.constant 0 : index
    %c0_63 = arith.constant 0 : index
    %c0_64 = arith.constant 0 : index
    %101 = vector.load %arg21[%c0_62, %c0_63, %c0_64] : memref<2x1x64xf32, #tpu.memory_space<vmem>>, vector<1x1x64xf32>
    %102 = vector.shape_cast %101 : vector<1x1x64xf32> to vector<1x64xf32>
    %c0_65 = arith.constant 0 : index
    %c0_66 = arith.constant 0 : index
    %c0_67 = arith.constant 0 : index
    %103 = vector.load %arg22[%c0_65, %c0_66, %c0_67] : memref<2x64x16xf32, #tpu.memory_space<vmem>>, vector<1x64x16xf32>
    %104 = vector.shape_cast %103 : vector<1x64x16xf32> to vector<64x16xf32>
    %c0_68 = arith.constant 0 : index
    %c0_69 = arith.constant 0 : index
    %c0_70 = arith.constant 0 : index
    %105 = vector.load %arg23[%c0_68, %c0_69, %c0_70] : memref<2x64x16xf32, #tpu.memory_space<vmem>>, vector<1x64x16xf32>
    %106 = vector.shape_cast %105 : vector<1x64x16xf32> to vector<64x16xf32>
    %c0_71 = arith.constant 0 : index
    %c0_72 = arith.constant 0 : index
    %c0_73 = arith.constant 0 : index
    %107 = vector.load %arg24[%c0_71, %c0_72, %c0_73] : memref<2x1x64xf32, #tpu.memory_space<vmem>>, vector<1x1x64xf32>
    %108 = vector.shape_cast %107 : vector<1x1x64xf32> to vector<1x64xf32>
    %109 = vector.extract_strided_slice %87 {offsets = [0, 0], sizes = [1, 64], strides = [1, 1]} : vector<48x64xf32> to vector<1x64xf32>
    %110 = arith.mulf %109, %96 : vector<1x64xf32>
    %111 = arith.addf %110, %98 : vector<1x64xf32>
    %112 = arith.negf %111 : vector<1x64xf32>
    %113 = math.exp %112 : vector<1x64xf32>
    %cst_74 = arith.constant 1.000000e+00 : f32
    %114 = vector.broadcast %cst_74 : f32 to vector<1x64xf32>
    %115 = arith.addf %114, %113 : vector<1x64xf32>
    %116 = arith.divf %114, %115 : vector<1x64xf32>
    %117 = arith.mulf %111, %116 : vector<1x64xf32>
    %cst_75 = arith.constant dense<0.000000e+00> : vector<1x64xf32>
    %118 = tpu.matmul %117, %100, %cst_75 {dimension_numbers = #tpu.dot_dimension_numbers<[1], [0], [0], [1], [0, 0, 1, 1], [], []>} : vector<1x64xf32>, vector<64x64xf32>, vector<1x64xf32> -> vector<1x64xf32>
    %119 = arith.addf %118, %102 : vector<1x64xf32>
    %cst_76 = arith.constant 0.000000e+00 : f32
    %120 = vector.broadcast %cst_76 : f32 to vector<1x64xf32>
    %121 = arith.maximumf %119, %120 : vector<1x64xf32>
    %122 = math.absf %119 : vector<1x64xf32>
    %cst_77 = arith.constant 0.000000e+00 : f32
    %123 = vector.broadcast %cst_77 : f32 to vector<1x64xf32>
    %124 = arith.subf %123, %122 : vector<1x64xf32>
    %125 = math.exp %124 : vector<1x64xf32>
    %126 = math.log1p %125 : vector<1x64xf32>
    %127 = arith.addf %121, %126 : vector<1x64xf32>
    %cst_78 = arith.constant dense<0.000000e+00> : vector<1x16xf32>
    %128 = tpu.matmul %117, %104, %cst_78 {dimension_numbers = #tpu.dot_dimension_numbers<[1], [0], [0], [1], [0, 0, 1, 1], [], []>} : vector<1x64xf32>, vector<64x16xf32>, vector<1x16xf32> -> vector<1x16xf32>
    %cst_79 = arith.constant dense<0.000000e+00> : vector<1x16xf32>
    %129 = tpu.matmul %117, %106, %cst_79 {dimension_numbers = #tpu.dot_dimension_numbers<[1], [0], [0], [1], [0, 0, 1, 1], [], []>} : vector<1x64xf32>, vector<64x16xf32>, vector<1x16xf32> -> vector<1x16xf32>
    %130 = arith.mulf %128, %129 : vector<1x16xf32>
    %cst_80 = arith.constant dense<0.000000e+00> : vector<1xf32>
    %131 = vector.multi_reduction <add>, %130, %cst_80 [1] : vector<1x16xf32> to vector<1xf32>
    %132 = vector.shape_cast %131 : vector<1xf32> to vector<1x1xf32>
    %133 = arith.mulf %127, %117 : vector<1x64xf32>
    %134 = vector.broadcast %132 : vector<1x1xf32> to vector<1x64xf32>
    %135 = arith.mulf %133, %134 : vector<1x64xf32>
    %136 = arith.mulf %117, %108 : vector<1x64xf32>
    %137 = arith.addf %135, %136 : vector<1x64xf32>
    %138 = vector.shape_cast %137 : vector<1x64xf32> to vector<1x64xf32>
    %139 = vector.broadcast %138 : vector<1x64xf32> to vector<8x64xf32>
    %140 = vector.extract_strided_slice %87 {offsets = [8, 0], sizes = [1, 64], strides = [1, 1]} : vector<48x64xf32> to vector<1x64xf32>
    %141 = arith.mulf %140, %96 : vector<1x64xf32>
    %142 = arith.addf %141, %98 : vector<1x64xf32>
    %143 = arith.negf %142 : vector<1x64xf32>
    %144 = math.exp %143 : vector<1x64xf32>
    %cst_81 = arith.constant 1.000000e+00 : f32
    %145 = vector.broadcast %cst_81 : f32 to vector<1x64xf32>
    %146 = arith.addf %145, %144 : vector<1x64xf32>
    %147 = arith.divf %145, %146 : vector<1x64xf32>
    %148 = arith.mulf %142, %147 : vector<1x64xf32>
    %cst_82 = arith.constant dense<0.000000e+00> : vector<1x64xf32>
    %149 = tpu.matmul %148, %100, %cst_82 {dimension_numbers = #tpu.dot_dimension_numbers<[1], [0], [0], [1], [0, 0, 1, 1], [], []>} : vector<1x64xf32>, vector<64x64xf32>, vector<1x64xf32> -> vector<1x64xf32>
    %150 = arith.addf %149, %102 : vector<1x64xf32>
    %cst_83 = arith.constant 0.000000e+00 : f32
    %151 = vector.broadcast %cst_83 : f32 to vector<1x64xf32>
    %152 = arith.maximumf %150, %151 : vector<1x64xf32>
    %153 = math.absf %150 : vector<1x64xf32>
    %cst_84 = arith.constant 0.000000e+00 : f32
    %154 = vector.broadcast %cst_84 : f32 to vector<1x64xf32>
    %155 = arith.subf %154, %153 : vector<1x64xf32>
    %156 = math.exp %155 : vector<1x64xf32>
    %157 = math.log1p %156 : vector<1x64xf32>
    %158 = arith.addf %152, %157 : vector<1x64xf32>
    %cst_85 = arith.constant dense<0.000000e+00> : vector<1x16xf32>
    %159 = tpu.matmul %148, %104, %cst_85 {dimension_numbers = #tpu.dot_dimension_numbers<[1], [0], [0], [1], [0, 0, 1, 1], [], []>} : vector<1x64xf32>, vector<64x16xf32>, vector<1x16xf32> -> vector<1x16xf32>
    %cst_86 = arith.constant dense<0.000000e+00> : vector<1x16xf32>
    %160 = tpu.matmul %148, %106, %cst_86 {dimension_numbers = #tpu.dot_dimension_numbers<[1], [0], [0], [1], [0, 0, 1, 1], [], []>} : vector<1x64xf32>, vector<64x16xf32>, vector<1x16xf32> -> vector<1x16xf32>
    %161 = arith.mulf %159, %160 : vector<1x16xf32>
    %cst_87 = arith.constant dense<0.000000e+00> : vector<1xf32>
    %162 = vector.multi_reduction <add>, %161, %cst_87 [1] : vector<1x16xf32> to vector<1xf32>
    %163 = vector.shape_cast %162 : vector<1xf32> to vector<1x1xf32>
    %164 = arith.mulf %158, %148 : vector<1x64xf32>
    %165 = vector.broadcast %163 : vector<1x1xf32> to vector<1x64xf32>
    %166 = arith.mulf %164, %165 : vector<1x64xf32>
    %167 = arith.mulf %148, %108 : vector<1x64xf32>
    %168 = arith.addf %166, %167 : vector<1x64xf32>
    %169 = vector.shape_cast %168 : vector<1x64xf32> to vector<1x64xf32>
    %170 = vector.broadcast %169 : vector<1x64xf32> to vector<8x64xf32>
    %171 = tpu.concatenate %139, %170 in 0 : vector<8x64xf32>, vector<8x64xf32> -> vector<16x64xf32>
    %172 = tpu.concatenate %171, %171, %171 in 0 : vector<16x64xf32>, vector<16x64xf32>, vector<16x64xf32> -> vector<48x64xf32>
    %173 = arith.negf %94 : vector<48x64xf32>
    %174 = math.exp %173 : vector<48x64xf32>
    %cst_88 = arith.constant 1.000000e+00 : f32
    %175 = vector.broadcast %cst_88 : f32 to vector<48x64xf32>
    %176 = arith.addf %175, %174 : vector<48x64xf32>
    %177 = arith.divf %175, %176 : vector<48x64xf32>
    %178 = arith.mulf %94, %177 : vector<48x64xf32>
    %179 = arith.mulf %172, %178 : vector<48x64xf32>
    %c0_89 = arith.constant 0 : index
    %c0_90 = arith.constant 0 : index
    %c0_91 = arith.constant 0 : index
    %180 = vector.load %arg25[%c0_89, %c0_90, %c0_91] : memref<2x64x32xf32, #tpu.memory_space<vmem>>, vector<1x64x32xf32>
    %181 = vector.shape_cast %180 : vector<1x64x32xf32> to vector<64x32xf32>
    %cst_92 = arith.constant dense<0.000000e+00> : vector<48x32xf32>
    %182 = tpu.matmul %179, %181, %cst_92 {dimension_numbers = #tpu.dot_dimension_numbers<[1], [0], [0], [1], [0, 0, 1, 1], [], []>} : vector<48x64xf32>, vector<64x32xf32>, vector<48x32xf32> -> vector<48x32xf32>
    %183 = arith.addf %66, %182 : vector<48x32xf32>
    %c0_93 = arith.constant 0 : index
    %c0_94 = arith.constant 0 : index
    %c0_95 = arith.constant 0 : index
    %184 = vector.load %arg26[%c0_93, %c0_94, %c0_95] : memref<2x1x32xf32, #tpu.memory_space<vmem>>, vector<1x1x32xf32>
    %185 = vector.shape_cast %184 : vector<1x1x32xf32> to vector<1x32xf32>
    %186 = vector.broadcast %185 : vector<1x32xf32> to vector<48x32xf32>
    %187 = arith.addf %183, %186 : vector<48x32xf32>
    %c0_96 = arith.constant 0 : index
    %c0_97 = arith.constant 0 : index
    %c0_98 = arith.constant 0 : index
    %188 = vector.load %arg27[%c0_96, %c0_97, %c0_98] : memref<2x1x32xf32, #tpu.memory_space<vmem>>, vector<1x1x32xf32>
    %189 = vector.shape_cast %188 : vector<1x1x32xf32> to vector<1x32xf32>
    %c0_99 = arith.constant 0 : index
    %c0_100 = arith.constant 0 : index
    %c0_101 = arith.constant 0 : index
    %190 = vector.load %arg28[%c0_99, %c0_100, %c0_101] : memref<2x1x32xf32, #tpu.memory_space<vmem>>, vector<1x1x32xf32>
    %191 = vector.shape_cast %190 : vector<1x1x32xf32> to vector<1x32xf32>
    %cst_102 = arith.constant dense<0.000000e+00> : vector<48xf32>
    %192 = vector.multi_reduction <add>, %187, %cst_102 [1] : vector<48x32xf32> to vector<48xf32>
    %193 = vector.shape_cast %192 : vector<48xf32> to vector<48x1xf32>
    %cst_103 = arith.constant 3.200000e+01 : f32
    %194 = vector.broadcast %cst_103 : f32 to vector<48x1xf32>
    %195 = arith.divf %193, %194 : vector<48x1xf32>
    %196 = vector.broadcast %195 : vector<48x1xf32> to vector<48x32xf32>
    %197 = arith.subf %187, %196 : vector<48x32xf32>
    %198 = arith.mulf %197, %197 : vector<48x32xf32>
    %cst_104 = arith.constant dense<0.000000e+00> : vector<48xf32>
    %199 = vector.multi_reduction <add>, %198, %cst_104 [1] : vector<48x32xf32> to vector<48xf32>
    %200 = vector.shape_cast %199 : vector<48xf32> to vector<48x1xf32>
    %cst_105 = arith.constant 3.200000e+01 : f32
    %201 = vector.broadcast %cst_105 : f32 to vector<48x1xf32>
    %202 = arith.divf %200, %201 : vector<48x1xf32>
    %cst_106 = arith.constant 9.99999974E-6 : f32
    %203 = vector.broadcast %cst_106 : f32 to vector<48x1xf32>
    %204 = arith.addf %202, %203 : vector<48x1xf32>
    %205 = math.rsqrt %204 : vector<48x1xf32>
    %206 = vector.broadcast %205 : vector<48x1xf32> to vector<48x32xf32>
    %207 = arith.mulf %197, %206 : vector<48x32xf32>
    %208 = vector.broadcast %189 : vector<1x32xf32> to vector<48x32xf32>
    %209 = arith.mulf %207, %208 : vector<48x32xf32>
    %210 = vector.broadcast %191 : vector<1x32xf32> to vector<48x32xf32>
    %211 = arith.addf %209, %210 : vector<48x32xf32>
    %c0_107 = arith.constant 0 : index
    %c0_108 = arith.constant 0 : index
    %c0_109 = arith.constant 0 : index
    %212 = vector.load %arg29[%c0_107, %c0_108, %c0_109] : memref<2x32x128xf32, #tpu.memory_space<vmem>>, vector<1x32x128xf32>
    %213 = vector.shape_cast %212 : vector<1x32x128xf32> to vector<32x128xf32>
    %cst_110 = arith.constant dense<0.000000e+00> : vector<48x128xf32>
    %214 = tpu.matmul %211, %213, %cst_110 {dimension_numbers = #tpu.dot_dimension_numbers<[1], [0], [0], [1], [0, 0, 1, 1], [], []>} : vector<48x32xf32>, vector<32x128xf32>, vector<48x128xf32> -> vector<48x128xf32>
    %c0_111 = arith.constant 0 : index
    %c0_112 = arith.constant 0 : index
    %c0_113 = arith.constant 0 : index
    %215 = vector.load %arg30[%c0_111, %c0_112, %c0_113] : memref<2x1x128xf32, #tpu.memory_space<vmem>>, vector<1x1x128xf32>
    %216 = vector.shape_cast %215 : vector<1x1x128xf32> to vector<1x128xf32>
    %217 = vector.broadcast %216 : vector<1x128xf32> to vector<48x128xf32>
    %218 = arith.addf %214, %217 : vector<48x128xf32>
    %cst_114 = arith.constant 5.000000e-01 : f32
    %219 = vector.broadcast %cst_114 : f32 to vector<48x128xf32>
    %220 = arith.mulf %219, %218 : vector<48x128xf32>
    %cst_115 = arith.constant 0.707106769 : f32
    %221 = vector.broadcast %cst_115 : f32 to vector<48x128xf32>
    %222 = arith.mulf %218, %221 : vector<48x128xf32>
    %223 = math.erf %222 : vector<48x128xf32>
    %cst_116 = arith.constant 1.000000e+00 : f32
    %224 = vector.broadcast %cst_116 : f32 to vector<48x128xf32>
    %225 = arith.addf %224, %223 : vector<48x128xf32>
    %226 = arith.mulf %220, %225 : vector<48x128xf32>
    %c0_117 = arith.constant 0 : index
    %c0_118 = arith.constant 0 : index
    %c0_119 = arith.constant 0 : index
    %227 = vector.load %arg31[%c0_117, %c0_118, %c0_119] : memref<2x128x32xf32, #tpu.memory_space<vmem>>, vector<1x128x32xf32>
    %228 = vector.shape_cast %227 : vector<1x128x32xf32> to vector<128x32xf32>
    %cst_120 = arith.constant dense<0.000000e+00> : vector<48x32xf32>
    %229 = tpu.matmul %226, %228, %cst_120 {dimension_numbers = #tpu.dot_dimension_numbers<[1], [0], [0], [1], [0, 0, 1, 1], [], []>} : vector<48x128xf32>, vector<128x32xf32>, vector<48x32xf32> -> vector<48x32xf32>
    %c0_121 = arith.constant 0 : index
    %c0_122 = arith.constant 0 : index
    %c0_123 = arith.constant 0 : index
    %230 = vector.load %arg32[%c0_121, %c0_122, %c0_123] : memref<2x1x32xf32, #tpu.memory_space<vmem>>, vector<1x1x32xf32>
    %231 = vector.shape_cast %230 : vector<1x1x32xf32> to vector<1x32xf32>
    %232 = vector.broadcast %231 : vector<1x32xf32> to vector<48x32xf32>
    %233 = arith.addf %229, %232 : vector<48x32xf32>
    %234 = arith.addf %187, %233 : vector<48x32xf32>
    %c1 = arith.constant 1 : index
    %c0_124 = arith.constant 0 : index
    %c0_125 = arith.constant 0 : index
    %235 = vector.load %arg13[%c1, %c0_124, %c0_125] : memref<2x1x32xf32, #tpu.memory_space<vmem>>, vector<1x1x32xf32>
    %236 = vector.shape_cast %235 : vector<1x1x32xf32> to vector<1x32xf32>
    %237 = arith.mulf %234, %234 : vector<48x32xf32>
    %cst_126 = arith.constant dense<0.000000e+00> : vector<48xf32>
    %238 = vector.multi_reduction <add>, %237, %cst_126 [1] : vector<48x32xf32> to vector<48xf32>
    %239 = vector.shape_cast %238 : vector<48xf32> to vector<48x1xf32>
    %cst_127 = arith.constant 3.200000e+01 : f32
    %240 = vector.broadcast %cst_127 : f32 to vector<48x1xf32>
    %241 = arith.divf %239, %240 : vector<48x1xf32>
    %cst_128 = arith.constant 9.99999974E-6 : f32
    %242 = vector.broadcast %cst_128 : f32 to vector<48x1xf32>
    %243 = arith.addf %241, %242 : vector<48x1xf32>
    %244 = math.rsqrt %243 : vector<48x1xf32>
    %245 = vector.broadcast %244 : vector<48x1xf32> to vector<48x32xf32>
    %246 = arith.mulf %234, %245 : vector<48x32xf32>
    %247 = vector.broadcast %236 : vector<1x32xf32> to vector<48x32xf32>
    %248 = arith.mulf %246, %247 : vector<48x32xf32>
    %c1_129 = arith.constant 1 : index
    %c0_130 = arith.constant 0 : index
    %c0_131 = arith.constant 0 : index
    %249 = vector.load %arg14[%c1_129, %c0_130, %c0_131] : memref<2x32x64xf32, #tpu.memory_space<vmem>>, vector<1x32x64xf32>
    %250 = vector.shape_cast %249 : vector<1x32x64xf32> to vector<32x64xf32>
    %cst_132 = arith.constant dense<0.000000e+00> : vector<48x64xf32>
    %251 = tpu.matmul %248, %250, %cst_132 {dimension_numbers = #tpu.dot_dimension_numbers<[1], [0], [0], [1], [0, 0, 1, 1], [], []>} : vector<48x32xf32>, vector<32x64xf32>, vector<48x64xf32> -> vector<48x64xf32>
    %c1_133 = arith.constant 1 : index
    %c0_134 = arith.constant 0 : index
    %c0_135 = arith.constant 0 : index
    %252 = vector.load %arg15[%c1_133, %c0_134, %c0_135] : memref<2x1x64xf32, #tpu.memory_space<vmem>>, vector<1x1x64xf32>
    %253 = vector.shape_cast %252 : vector<1x1x64xf32> to vector<1x64xf32>
    %254 = vector.broadcast %253 : vector<1x64xf32> to vector<48x64xf32>
    %255 = arith.addf %251, %254 : vector<48x64xf32>
    %c1_136 = arith.constant 1 : index
    %c0_137 = arith.constant 0 : index
    %c0_138 = arith.constant 0 : index
    %256 = vector.load %arg16[%c1_136, %c0_137, %c0_138] : memref<2x32x64xf32, #tpu.memory_space<vmem>>, vector<1x32x64xf32>
    %257 = vector.shape_cast %256 : vector<1x32x64xf32> to vector<32x64xf32>
    %cst_139 = arith.constant dense<0.000000e+00> : vector<48x64xf32>
    %258 = tpu.matmul %248, %257, %cst_139 {dimension_numbers = #tpu.dot_dimension_numbers<[1], [0], [0], [1], [0, 0, 1, 1], [], []>} : vector<48x32xf32>, vector<32x64xf32>, vector<48x64xf32> -> vector<48x64xf32>
    %c1_140 = arith.constant 1 : index
    %c0_141 = arith.constant 0 : index
    %c0_142 = arith.constant 0 : index
    %259 = vector.load %arg17[%c1_140, %c0_141, %c0_142] : memref<2x1x64xf32, #tpu.memory_space<vmem>>, vector<1x1x64xf32>
    %260 = vector.shape_cast %259 : vector<1x1x64xf32> to vector<1x64xf32>
    %261 = vector.broadcast %260 : vector<1x64xf32> to vector<48x64xf32>
    %262 = arith.addf %258, %261 : vector<48x64xf32>
    %c1_143 = arith.constant 1 : index
    %c0_144 = arith.constant 0 : index
    %c0_145 = arith.constant 0 : index
    %263 = vector.load %arg18[%c1_143, %c0_144, %c0_145] : memref<2x1x64xf32, #tpu.memory_space<vmem>>, vector<1x1x64xf32>
    %264 = vector.shape_cast %263 : vector<1x1x64xf32> to vector<1x64xf32>
    %c1_146 = arith.constant 1 : index
    %c0_147 = arith.constant 0 : index
    %c0_148 = arith.constant 0 : index
    %265 = vector.load %arg19[%c1_146, %c0_147, %c0_148] : memref<2x1x64xf32, #tpu.memory_space<vmem>>, vector<1x1x64xf32>
    %266 = vector.shape_cast %265 : vector<1x1x64xf32> to vector<1x64xf32>
    %c1_149 = arith.constant 1 : index
    %c0_150 = arith.constant 0 : index
    %c0_151 = arith.constant 0 : index
    %267 = vector.load %arg20[%c1_149, %c0_150, %c0_151] : memref<2x64x64xf32, #tpu.memory_space<vmem>>, vector<1x64x64xf32>
    %268 = vector.shape_cast %267 : vector<1x64x64xf32> to vector<64x64xf32>
    %c1_152 = arith.constant 1 : index
    %c0_153 = arith.constant 0 : index
    %c0_154 = arith.constant 0 : index
    %269 = vector.load %arg21[%c1_152, %c0_153, %c0_154] : memref<2x1x64xf32, #tpu.memory_space<vmem>>, vector<1x1x64xf32>
    %270 = vector.shape_cast %269 : vector<1x1x64xf32> to vector<1x64xf32>
    %c1_155 = arith.constant 1 : index
    %c0_156 = arith.constant 0 : index
    %c0_157 = arith.constant 0 : index
    %271 = vector.load %arg22[%c1_155, %c0_156, %c0_157] : memref<2x64x16xf32, #tpu.memory_space<vmem>>, vector<1x64x16xf32>
    %272 = vector.shape_cast %271 : vector<1x64x16xf32> to vector<64x16xf32>
    %c1_158 = arith.constant 1 : index
    %c0_159 = arith.constant 0 : index
    %c0_160 = arith.constant 0 : index
    %273 = vector.load %arg23[%c1_158, %c0_159, %c0_160] : memref<2x64x16xf32, #tpu.memory_space<vmem>>, vector<1x64x16xf32>
    %274 = vector.shape_cast %273 : vector<1x64x16xf32> to vector<64x16xf32>
    %c1_161 = arith.constant 1 : index
    %c0_162 = arith.constant 0 : index
    %c0_163 = arith.constant 0 : index
    %275 = vector.load %arg24[%c1_161, %c0_162, %c0_163] : memref<2x1x64xf32, #tpu.memory_space<vmem>>, vector<1x1x64xf32>
    %276 = vector.shape_cast %275 : vector<1x1x64xf32> to vector<1x64xf32>
    %277 = vector.extract_strided_slice %255 {offsets = [0, 0], sizes = [1, 64], strides = [1, 1]} : vector<48x64xf32> to vector<1x64xf32>
    %278 = arith.mulf %277, %264 : vector<1x64xf32>
    %279 = arith.addf %278, %266 : vector<1x64xf32>
    %280 = arith.negf %279 : vector<1x64xf32>
    %281 = math.exp %280 : vector<1x64xf32>
    %cst_164 = arith.constant 1.000000e+00 : f32
    %282 = vector.broadcast %cst_164 : f32 to vector<1x64xf32>
    %283 = arith.addf %282, %281 : vector<1x64xf32>
    %284 = arith.divf %282, %283 : vector<1x64xf32>
    %285 = arith.mulf %279, %284 : vector<1x64xf32>
    %cst_165 = arith.constant dense<0.000000e+00> : vector<1x64xf32>
    %286 = tpu.matmul %285, %268, %cst_165 {dimension_numbers = #tpu.dot_dimension_numbers<[1], [0], [0], [1], [0, 0, 1, 1], [], []>} : vector<1x64xf32>, vector<64x64xf32>, vector<1x64xf32> -> vector<1x64xf32>
    %287 = arith.addf %286, %270 : vector<1x64xf32>
    %cst_166 = arith.constant 0.000000e+00 : f32
    %288 = vector.broadcast %cst_166 : f32 to vector<1x64xf32>
    %289 = arith.maximumf %287, %288 : vector<1x64xf32>
    %290 = math.absf %287 : vector<1x64xf32>
    %cst_167 = arith.constant 0.000000e+00 : f32
    %291 = vector.broadcast %cst_167 : f32 to vector<1x64xf32>
    %292 = arith.subf %291, %290 : vector<1x64xf32>
    %293 = math.exp %292 : vector<1x64xf32>
    %294 = math.log1p %293 : vector<1x64xf32>
    %295 = arith.addf %289, %294 : vector<1x64xf32>
    %cst_168 = arith.constant dense<0.000000e+00> : vector<1x16xf32>
    %296 = tpu.matmul %285, %272, %cst_168 {dimension_numbers = #tpu.dot_dimension_numbers<[1], [0], [0], [1], [0, 0, 1, 1], [], []>} : vector<1x64xf32>, vector<64x16xf32>, vector<1x16xf32> -> vector<1x16xf32>
    %cst_169 = arith.constant dense<0.000000e+00> : vector<1x16xf32>
    %297 = tpu.matmul %285, %274, %cst_169 {dimension_numbers = #tpu.dot_dimension_numbers<[1], [0], [0], [1], [0, 0, 1, 1], [], []>} : vector<1x64xf32>, vector<64x16xf32>, vector<1x16xf32> -> vector<1x16xf32>
    %298 = arith.mulf %296, %297 : vector<1x16xf32>
    %cst_170 = arith.constant dense<0.000000e+00> : vector<1xf32>
    %299 = vector.multi_reduction <add>, %298, %cst_170 [1] : vector<1x16xf32> to vector<1xf32>
    %300 = vector.shape_cast %299 : vector<1xf32> to vector<1x1xf32>
    %301 = arith.mulf %295, %285 : vector<1x64xf32>
    %302 = vector.broadcast %300 : vector<1x1xf32> to vector<1x64xf32>
    %303 = arith.mulf %301, %302 : vector<1x64xf32>
    %304 = arith.mulf %285, %276 : vector<1x64xf32>
    %305 = arith.addf %303, %304 : vector<1x64xf32>
    %306 = vector.shape_cast %305 : vector<1x64xf32> to vector<1x64xf32>
    %307 = vector.broadcast %306 : vector<1x64xf32> to vector<8x64xf32>
    %308 = vector.extract_strided_slice %255 {offsets = [8, 0], sizes = [1, 64], strides = [1, 1]} : vector<48x64xf32> to vector<1x64xf32>
    %309 = arith.mulf %308, %264 : vector<1x64xf32>
    %310 = arith.addf %309, %266 : vector<1x64xf32>
    %311 = arith.negf %310 : vector<1x64xf32>
    %312 = math.exp %311 : vector<1x64xf32>
    %cst_171 = arith.constant 1.000000e+00 : f32
    %313 = vector.broadcast %cst_171 : f32 to vector<1x64xf32>
    %314 = arith.addf %313, %312 : vector<1x64xf32>
    %315 = arith.divf %313, %314 : vector<1x64xf32>
    %316 = arith.mulf %310, %315 : vector<1x64xf32>
    %cst_172 = arith.constant dense<0.000000e+00> : vector<1x64xf32>
    %317 = tpu.matmul %316, %268, %cst_172 {dimension_numbers = #tpu.dot_dimension_numbers<[1], [0], [0], [1], [0, 0, 1, 1], [], []>} : vector<1x64xf32>, vector<64x64xf32>, vector<1x64xf32> -> vector<1x64xf32>
    %318 = arith.addf %317, %270 : vector<1x64xf32>
    %cst_173 = arith.constant 0.000000e+00 : f32
    %319 = vector.broadcast %cst_173 : f32 to vector<1x64xf32>
    %320 = arith.maximumf %318, %319 : vector<1x64xf32>
    %321 = math.absf %318 : vector<1x64xf32>
    %cst_174 = arith.constant 0.000000e+00 : f32
    %322 = vector.broadcast %cst_174 : f32 to vector<1x64xf32>
    %323 = arith.subf %322, %321 : vector<1x64xf32>
    %324 = math.exp %323 : vector<1x64xf32>
    %325 = math.log1p %324 : vector<1x64xf32>
    %326 = arith.addf %320, %325 : vector<1x64xf32>
    %cst_175 = arith.constant dense<0.000000e+00> : vector<1x16xf32>
    %327 = tpu.matmul %316, %272, %cst_175 {dimension_numbers = #tpu.dot_dimension_numbers<[1], [0], [0], [1], [0, 0, 1, 1], [], []>} : vector<1x64xf32>, vector<64x16xf32>, vector<1x16xf32> -> vector<1x16xf32>
    %cst_176 = arith.constant dense<0.000000e+00> : vector<1x16xf32>
    %328 = tpu.matmul %316, %274, %cst_176 {dimension_numbers = #tpu.dot_dimension_numbers<[1], [0], [0], [1], [0, 0, 1, 1], [], []>} : vector<1x64xf32>, vector<64x16xf32>, vector<1x16xf32> -> vector<1x16xf32>
    %329 = arith.mulf %327, %328 : vector<1x16xf32>
    %cst_177 = arith.constant dense<0.000000e+00> : vector<1xf32>
    %330 = vector.multi_reduction <add>, %329, %cst_177 [1] : vector<1x16xf32> to vector<1xf32>
    %331 = vector.shape_cast %330 : vector<1xf32> to vector<1x1xf32>
    %332 = arith.mulf %326, %316 : vector<1x64xf32>
    %333 = vector.broadcast %331 : vector<1x1xf32> to vector<1x64xf32>
    %334 = arith.mulf %332, %333 : vector<1x64xf32>
    %335 = arith.mulf %316, %276 : vector<1x64xf32>
    %336 = arith.addf %334, %335 : vector<1x64xf32>
    %337 = vector.shape_cast %336 : vector<1x64xf32> to vector<1x64xf32>
    %338 = vector.broadcast %337 : vector<1x64xf32> to vector<8x64xf32>
    %339 = tpu.concatenate %307, %338 in 0 : vector<8x64xf32>, vector<8x64xf32> -> vector<16x64xf32>
    %340 = tpu.concatenate %339, %339, %339 in 0 : vector<16x64xf32>, vector<16x64xf32>, vector<16x64xf32> -> vector<48x64xf32>
    %341 = arith.negf %262 : vector<48x64xf32>
    %342 = math.exp %341 : vector<48x64xf32>
    %cst_178 = arith.constant 1.000000e+00 : f32
    %343 = vector.broadcast %cst_178 : f32 to vector<48x64xf32>
    %344 = arith.addf %343, %342 : vector<48x64xf32>
    %345 = arith.divf %343, %344 : vector<48x64xf32>
    %346 = arith.mulf %262, %345 : vector<48x64xf32>
    %347 = arith.mulf %340, %346 : vector<48x64xf32>
    %c1_179 = arith.constant 1 : index
    %c0_180 = arith.constant 0 : index
    %c0_181 = arith.constant 0 : index
    %348 = vector.load %arg25[%c1_179, %c0_180, %c0_181] : memref<2x64x32xf32, #tpu.memory_space<vmem>>, vector<1x64x32xf32>
    %349 = vector.shape_cast %348 : vector<1x64x32xf32> to vector<64x32xf32>
    %cst_182 = arith.constant dense<0.000000e+00> : vector<48x32xf32>
    %350 = tpu.matmul %347, %349, %cst_182 {dimension_numbers = #tpu.dot_dimension_numbers<[1], [0], [0], [1], [0, 0, 1, 1], [], []>} : vector<48x64xf32>, vector<64x32xf32>, vector<48x32xf32> -> vector<48x32xf32>
    %351 = arith.addf %234, %350 : vector<48x32xf32>
    %c1_183 = arith.constant 1 : index
    %c0_184 = arith.constant 0 : index
    %c0_185 = arith.constant 0 : index
    %352 = vector.load %arg26[%c1_183, %c0_184, %c0_185] : memref<2x1x32xf32, #tpu.memory_space<vmem>>, vector<1x1x32xf32>
    %353 = vector.shape_cast %352 : vector<1x1x32xf32> to vector<1x32xf32>
    %354 = vector.broadcast %353 : vector<1x32xf32> to vector<48x32xf32>
    %355 = arith.addf %351, %354 : vector<48x32xf32>
    %c1_186 = arith.constant 1 : index
    %c0_187 = arith.constant 0 : index
    %c0_188 = arith.constant 0 : index
    %356 = vector.load %arg27[%c1_186, %c0_187, %c0_188] : memref<2x1x32xf32, #tpu.memory_space<vmem>>, vector<1x1x32xf32>
    %357 = vector.shape_cast %356 : vector<1x1x32xf32> to vector<1x32xf32>
    %c1_189 = arith.constant 1 : index
    %c0_190 = arith.constant 0 : index
    %c0_191 = arith.constant 0 : index
    %358 = vector.load %arg28[%c1_189, %c0_190, %c0_191] : memref<2x1x32xf32, #tpu.memory_space<vmem>>, vector<1x1x32xf32>
    %359 = vector.shape_cast %358 : vector<1x1x32xf32> to vector<1x32xf32>
    %cst_192 = arith.constant dense<0.000000e+00> : vector<48xf32>
    %360 = vector.multi_reduction <add>, %355, %cst_192 [1] : vector<48x32xf32> to vector<48xf32>
    %361 = vector.shape_cast %360 : vector<48xf32> to vector<48x1xf32>
    %cst_193 = arith.constant 3.200000e+01 : f32
    %362 = vector.broadcast %cst_193 : f32 to vector<48x1xf32>
    %363 = arith.divf %361, %362 : vector<48x1xf32>
    %364 = vector.broadcast %363 : vector<48x1xf32> to vector<48x32xf32>
    %365 = arith.subf %355, %364 : vector<48x32xf32>
    %366 = arith.mulf %365, %365 : vector<48x32xf32>
    %cst_194 = arith.constant dense<0.000000e+00> : vector<48xf32>
    %367 = vector.multi_reduction <add>, %366, %cst_194 [1] : vector<48x32xf32> to vector<48xf32>
    %368 = vector.shape_cast %367 : vector<48xf32> to vector<48x1xf32>
    %cst_195 = arith.constant 3.200000e+01 : f32
    %369 = vector.broadcast %cst_195 : f32 to vector<48x1xf32>
    %370 = arith.divf %368, %369 : vector<48x1xf32>
    %cst_196 = arith.constant 9.99999974E-6 : f32
    %371 = vector.broadcast %cst_196 : f32 to vector<48x1xf32>
    %372 = arith.addf %370, %371 : vector<48x1xf32>
    %373 = math.rsqrt %372 : vector<48x1xf32>
    %374 = vector.broadcast %373 : vector<48x1xf32> to vector<48x32xf32>
    %375 = arith.mulf %365, %374 : vector<48x32xf32>
    %376 = vector.broadcast %357 : vector<1x32xf32> to vector<48x32xf32>
    %377 = arith.mulf %375, %376 : vector<48x32xf32>
    %378 = vector.broadcast %359 : vector<1x32xf32> to vector<48x32xf32>
    %379 = arith.addf %377, %378 : vector<48x32xf32>
    %c1_197 = arith.constant 1 : index
    %c0_198 = arith.constant 0 : index
    %c0_199 = arith.constant 0 : index
    %380 = vector.load %arg29[%c1_197, %c0_198, %c0_199] : memref<2x32x128xf32, #tpu.memory_space<vmem>>, vector<1x32x128xf32>
    %381 = vector.shape_cast %380 : vector<1x32x128xf32> to vector<32x128xf32>
    %cst_200 = arith.constant dense<0.000000e+00> : vector<48x128xf32>
    %382 = tpu.matmul %379, %381, %cst_200 {dimension_numbers = #tpu.dot_dimension_numbers<[1], [0], [0], [1], [0, 0, 1, 1], [], []>} : vector<48x32xf32>, vector<32x128xf32>, vector<48x128xf32> -> vector<48x128xf32>
    %c1_201 = arith.constant 1 : index
    %c0_202 = arith.constant 0 : index
    %c0_203 = arith.constant 0 : index
    %383 = vector.load %arg30[%c1_201, %c0_202, %c0_203] : memref<2x1x128xf32, #tpu.memory_space<vmem>>, vector<1x1x128xf32>
    %384 = vector.shape_cast %383 : vector<1x1x128xf32> to vector<1x128xf32>
    %385 = vector.broadcast %384 : vector<1x128xf32> to vector<48x128xf32>
    %386 = arith.addf %382, %385 : vector<48x128xf32>
    %cst_204 = arith.constant 5.000000e-01 : f32
    %387 = vector.broadcast %cst_204 : f32 to vector<48x128xf32>
    %388 = arith.mulf %387, %386 : vector<48x128xf32>
    %cst_205 = arith.constant 0.707106769 : f32
    %389 = vector.broadcast %cst_205 : f32 to vector<48x128xf32>
    %390 = arith.mulf %386, %389 : vector<48x128xf32>
    %391 = math.erf %390 : vector<48x128xf32>
    %cst_206 = arith.constant 1.000000e+00 : f32
    %392 = vector.broadcast %cst_206 : f32 to vector<48x128xf32>
    %393 = arith.addf %392, %391 : vector<48x128xf32>
    %394 = arith.mulf %388, %393 : vector<48x128xf32>
    %c1_207 = arith.constant 1 : index
    %c0_208 = arith.constant 0 : index
    %c0_209 = arith.constant 0 : index
    %395 = vector.load %arg31[%c1_207, %c0_208, %c0_209] : memref<2x128x32xf32, #tpu.memory_space<vmem>>, vector<1x128x32xf32>
    %396 = vector.shape_cast %395 : vector<1x128x32xf32> to vector<128x32xf32>
    %cst_210 = arith.constant dense<0.000000e+00> : vector<48x32xf32>
    %397 = tpu.matmul %394, %396, %cst_210 {dimension_numbers = #tpu.dot_dimension_numbers<[1], [0], [0], [1], [0, 0, 1, 1], [], []>} : vector<48x128xf32>, vector<128x32xf32>, vector<48x32xf32> -> vector<48x32xf32>
    %c1_211 = arith.constant 1 : index
    %c0_212 = arith.constant 0 : index
    %c0_213 = arith.constant 0 : index
    %398 = vector.load %arg32[%c1_211, %c0_212, %c0_213] : memref<2x1x32xf32, #tpu.memory_space<vmem>>, vector<1x1x32xf32>
    %399 = vector.shape_cast %398 : vector<1x1x32xf32> to vector<1x32xf32>
    %400 = vector.broadcast %399 : vector<1x32xf32> to vector<48x32xf32>
    %401 = arith.addf %397, %400 : vector<48x32xf32>
    %402 = arith.addf %355, %401 : vector<48x32xf32>
    %c0_214 = arith.constant 0 : index
    %c0_215 = arith.constant 0 : index
    %403 = vector.load %arg33[%c0_214, %c0_215] : memref<1x32xf32, #tpu.memory_space<vmem>>, vector<1x32xf32>
    %c0_216 = arith.constant 0 : index
    %c0_217 = arith.constant 0 : index
    %404 = vector.load %arg34[%c0_216, %c0_217] : memref<1x32xf32, #tpu.memory_space<vmem>>, vector<1x32xf32>
    %cst_218 = arith.constant dense<0.000000e+00> : vector<48xf32>
    %405 = vector.multi_reduction <add>, %402, %cst_218 [1] : vector<48x32xf32> to vector<48xf32>
    %406 = vector.shape_cast %405 : vector<48xf32> to vector<48x1xf32>
    %cst_219 = arith.constant 3.200000e+01 : f32
    %407 = vector.broadcast %cst_219 : f32 to vector<48x1xf32>
    %408 = arith.divf %406, %407 : vector<48x1xf32>
    %409 = vector.broadcast %408 : vector<48x1xf32> to vector<48x32xf32>
    %410 = arith.subf %402, %409 : vector<48x32xf32>
    %411 = arith.mulf %410, %410 : vector<48x32xf32>
    %cst_220 = arith.constant dense<0.000000e+00> : vector<48xf32>
    %412 = vector.multi_reduction <add>, %411, %cst_220 [1] : vector<48x32xf32> to vector<48xf32>
    %413 = vector.shape_cast %412 : vector<48xf32> to vector<48x1xf32>
    %cst_221 = arith.constant 3.200000e+01 : f32
    %414 = vector.broadcast %cst_221 : f32 to vector<48x1xf32>
    %415 = arith.divf %413, %414 : vector<48x1xf32>
    %cst_222 = arith.constant 9.99999974E-6 : f32
    %416 = vector.broadcast %cst_222 : f32 to vector<48x1xf32>
    %417 = arith.addf %415, %416 : vector<48x1xf32>
    %418 = math.rsqrt %417 : vector<48x1xf32>
    %419 = vector.broadcast %418 : vector<48x1xf32> to vector<48x32xf32>
    %420 = arith.mulf %410, %419 : vector<48x32xf32>
    %421 = vector.broadcast %403 : vector<1x32xf32> to vector<48x32xf32>
    %422 = arith.mulf %420, %421 : vector<48x32xf32>
    %423 = vector.broadcast %404 : vector<1x32xf32> to vector<48x32xf32>
    %424 = arith.addf %422, %423 : vector<48x32xf32>
    %425 = vector.extract_strided_slice %424 {offsets = [16, 0], sizes = [16, 32], strides = [1, 1]} : vector<48x32xf32> to vector<16x32xf32>
    %c0_223 = arith.constant 0 : index
    %c0_224 = arith.constant 0 : index
    %426 = vector.load %arg35[%c0_223, %c0_224] : memref<32x3xf32, #tpu.memory_space<vmem>>, vector<32x3xf32>
    %cst_225 = arith.constant dense<0.000000e+00> : vector<16x3xf32>
    %427 = tpu.matmul %425, %426, %cst_225 {dimension_numbers = #tpu.dot_dimension_numbers<[1], [0], [0], [1], [0, 0, 1, 1], [], []>} : vector<16x32xf32>, vector<32x3xf32>, vector<16x3xf32> -> vector<16x3xf32>
    %c0_226 = arith.constant 0 : index
    %c0_227 = arith.constant 0 : index
    %428 = vector.load %arg36[%c0_226, %c0_227] : memref<1x3xf32, #tpu.memory_space<vmem>>, vector<1x3xf32>
    %429 = vector.broadcast %428 : vector<1x3xf32> to vector<16x3xf32>
    %430 = arith.addf %427, %429 : vector<16x3xf32>
    %431 = math.tanh %430 : vector<16x3xf32>
    %c0_228 = arith.constant 0 : index
    %c0_229 = arith.constant 0 : index
    %432 = vector.load %arg37[%c0_228, %c0_229] : memref<16x3xf32, #tpu.memory_space<vmem>>, vector<16x3xf32>
    tpu.vector_store %arg37[%c0_228, %c0_229], %431 {strides = array<i32>} : memref<16x3xf32, #tpu.memory_space<vmem>>, vector<16x3xf32>,
    return
  }
}

</mosaic_0001>

<bundles_post_ra>
// kernel: _lambda_.1
= control target key start
LH: loop header
LB: loop body
LE: loop exit
PB: predicated region body
PF: predicated region fallthrough
CT: control target
= control target key end

     0   :  { %v156_v0 = vlaneseq  ;;  %v6180_v1 = vmov 0   ;;  %s6181_s6 = smov 3   ;;  %v6182_v2 = vmov 1966171168   ;;  %s6183_s10 = smov 4   ;;  %vm178_vm0 = vcmask 523264   ;;  %s7627_s0 = inlined_call_operand.smem [shape: u32[38], index: -1, kind: input, shape index: {}] }
   0x1   :  { %6004 = vset.pattern.permute.xlu0 %v6180_v1  ;;  %s1_s5 = sld [smem:[%s7627_s0]]   ;;  %v267_v3 = vunpack.c.l.s4 %v6182_v2  ;;  %6005 = vset.pattern.permute.xlu1 %v6180_v1  ;;  %s6184_s14 = smov 1   ;;  %v6185_v60 = vmov 0.0   ;;  %vm946_vm3 = vcmask 261120   ;;  %vm948_vm4 = vcmask 256000  }
   0x2   :  { %s6233_s9 = sld [smem:[%s7627_s0 + %s6181_s6]]   ;;  %v6236_v4 = vshrl.u32 %v156_v0, 7  ;;  %v157_v58 = vand.u32 127, %v156_v0  ;;  %s6186_s18 = smov 8   ;;  %vm1576_vm5 = vcmask 1041409   ;;  %vm1579_vm6 = vcmask 1042434  }
   0x3   :  { %s4690_s13 = sld [smem:[%s7627_s0 + %s6183_s10]]   ;;  %v268_v5 = vunpack.c.0.s8 %v267_v3  ;;  %s6187_s22 = smov 7   ;;  %vm1582_vm7 = vcmask 1043459   ;;  %vm1585_vm8 = vcmask 1044484   ;;  %vm1588_vm9 = vcmask 1045509  }
   0x4   :  { %s4687_s17 = sld [smem:[%s7627_s0 + %s6184_s14]]   ;;  %v6262_v49 = vsub.s32 1, %v6236_v4  ;;  %v6278_v54 = vsub.s32 0, %v6236_v4  ;;  %v6286_v56 = vsub.s32 3, %v6236_v4  ;;  %s6188_s26 = smov 2   ;;  %vm1591_vm10 = vcmask 1046534  }
   0x5   :  { %v6242_v6 = vsub.s32 %v268_v5, %v6236_v4  ;;  %s4694_s21 = sld [smem:[%s7627_s0 + %s6186_s18]]   ;;  %s6189_s30 = smov 5   ;;  %vm1594_vm11 = vcmask 1047559   ;;  %vm6205_vm12 = vmmov 0   ;;  %vm2316_vm13 = vcmask 122880  }
   0x6   :  { %s4693_s25 = sld [smem:[%s7627_s0 + %s6187_s22]]   ;;  %s6190_s4 = smov 9  }
   0x7   :  { %v154_v7 = vld [vmem:[%s1_s5] sm:$0xff]  ;;  %v155_v13 = vld [vmem:[%s1_s5 + $0x8] sm:$0xff]  ;;  %s4688_s29 = sld [smem:[%s7627_s0 + %s6188_s26]]   ;;  %s6191_s8 = smov 6  }
   0x8   :  { %v260_v8 = vld [vmem:[%s6233_s9] sm:$0xff]  ;;  %159 = vperm.xlu0 %6004, %v154_v7   ;;  %v261_v27 = vld [vmem:[%s6233_s9 + $0x8] sm:$0xff]  ;;  %s4691_s3 = sld [smem:[%s7627_s0 + %s6189_s30]]   ;;  %s6192_s12 = smov 10  }
   0x9   :  { %v272_v9 = vrot.slane %v260_v8, %v6242_v6  ;;  %v265_v10 = vcombine.high %v260_v8, %v260_v8  ;;  %v170_v11 = vld [vmem:[%s4690_s13] sm:$0xff]  ;;  %v171_v12 = vld [vmem:[%s4690_s13 + $0x8] sm:$0xff]  ;;  %v172_v15 = vld [vmem:[%s4690_s13 + $0x10] sm:$0xff]  ;;  %v321_v30 = vrot.slane %v261_v27, %v6242_v6  ;;  %v314_v32 = vcombine.high %v261_v27, %v261_v27  ;;  %s6518_s7 = sld [smem:[%s7627_s0 + %s6190_s4]]   ;;  %s6193_s16 = smov 11  }
   0xa   :  { %v5650_v14 = vpack.c.bf16 %v171_v12, %v170_v11  ;;  %v173_v16 = vld [vmem:[%s4690_s13 + $0x18] sm:$0xff]  ;;  %v174_v19 = vld [vmem:[%s4690_s13 + $0x20] sm:$0xff]  ;;  %v175_v20 = vld [vmem:[%s4690_s13 + $0x28] sm:$0xff]  ;;  %s6535_s11 = sld [smem:[%s7627_s0 + %s6191_s8]]   ;;  %s6194_s20 = smov 12  }
   0xb   :  { %v288_v17 = vrot.slane %v272_v9, %v6242_v6  ;;  %v5654_v18 = vpack.c.bf16 %v173_v16, %v172_v15  ;;  %v279_v22 = vrot.slane %v265_v10, %v6242_v6  ;;  %v5658_v23 = vpack.c.bf16 %v175_v20, %v174_v19  ;;  %v176_v24 = vld [vmem:[%s4690_s13 + $0x30] sm:$0xff]  ;;  %v177_v25 = vld [vmem:[%s4690_s13 + $0x38] sm:$0xff]  ;;  %v6264_v50 = vld [vmem:[%s4687_s17] sm:$0xff]  ;;  %s6586_s15 = sld [smem:[%s7627_s0 + %s6192_s12]]   ;;  %s6195_s24 = smov 14  }
   0xc   :  { %5651 = vmatprep.subr.bf16.mxu0 %v5650_v14  ;;  %162 = vperm.xlu0 %6004, %v155_v13   ;;  %v5662_v28 = vpack.c.bf16 %v177_v25, %v176_v24  ;;  %v337_v31 = vrot.slane %v321_v30, %v6242_v6  ;;  %v328_v34 = vrot.slane %v314_v32, %v6242_v6  ;;  %v6266_v51 = vld [vmem:[%s4687_s17 + $0x8] sm:$0xff]  ;;  %v4728_v13 = vld [vmem:[%s4694_s21] ss:$0 sm:$0xff]  ;;  %s6614_s19 = sld [smem:[%s7627_s0 + %s6193_s16]]   ;;  %s6196_s28 = smov 16  }
   0xd   :  { %v310_v21 = vcombine.high %v288_v17, %v288_v17  ;;  %5653 = vmatpush3.bf16.msra.mxu0 %v5650_v14  ;;  %364 = vperm.xlu1 %6005, %v288_v17   ;;  %v295_v26 = vrot.slane %v279_v22, %v6242_v6  ;;  %v280_v37 = vcombine.high %v272_v9, %v272_v9  ;;  %s6626_s23 = sld [smem:[%s7627_s0 + %s6194_s20]]   ;;  %s6197_s2 = smov 13  }
   0xe   :  { %5655 = vmatprep.subr.bf16.mxu0 %v5654_v18  ;;  %v359_v33 = vcombine.high %v337_v31, %v337_v31  ;;  %v344_v35 = vrot.slane %v328_v34, %v6242_v6  ;;  %v281_v40 = vcombine.high %v279_v22, %v279_v22  ;;  %v329_v43 = vcombine.high %v321_v30, %v321_v30  ;;  %s6766_s27 = sld [smem:[%s7627_s0 + %s6195_s24]]   ;;  %s6199_s6 = smov 20  }
   0xf   :  { %v311_v29 = vcombine.high %v295_v26, %v295_v26  ;;  %v302_v38 = vrot.slane %v280_v37, %v6242_v6  ;;  %v330_v46 = vcombine.high %v328_v34, %v328_v34  ;;  %v6270_v52 = vrot.slane %v6264_v50, %v6262_v49  ;;  %s6771_s1 = sld [smem:[%s7627_s0 + %s6196_s28]]   ;;  %s6200_s10 = smov 22  }
  0x10   :  { %380 = vperm.xlu0 %6004, %v310_v21   ;;  %v360_v36 = vcombine.high %v344_v35, %v344_v35  ;;  %v309_v41 = vrot.slane %v281_v40, %v6242_v6  ;;  %v351_v44 = vrot.slane %v329_v43, %v6242_v6  ;;  %v6275_v53 = vrot.slane %v6266_v51, %v6262_v49  ;;  %s6823_s5 = sld [smem:[%s7627_s0 + %s6197_s2]]   ;;  %s6201_s14 = smov 15  }
  0x11   :  { %5657 = vmatpush3.bf16.msra.mxu0 %v5654_v18  ;;  %372 = vperm.xlu1 %6005, %v302_v38   ;;  %v312_v39 = vcombine.high %v302_v38, %v302_v38  ;;  %v358_v47 = vrot.slane %v330_v46, %v6242_v6  ;;  %v6283_v55 = vrot.slane %v6264_v50, %v6278_v54  ;;  %s6882_s9 = sld [smem:[%s7627_s0 + %s6199_s6]]   ;;  %s6202_s18 = smov 18  }
  0x12   :  { %5659 = vmatprep.subr.bf16.mxu0 %v5658_v23  ;;  %v313_v42 = vcombine.high %v309_v41, %v309_v41  ;;  %v361_v45 = vcombine.high %v351_v44, %v351_v44  ;;  %v6291_v57 = vrot.slane %v6264_v50, %v6286_v56  ;;  %v529_v14 = vcombine.high %v4728_v13, %v4728_v13  ;;  %s6887_s13 = sld [smem:[%s7627_s0 + %s6200_s10]]   ;;  %s6203_s22 = smov 19  }
  0x13   :  { %v362_v48 = vcombine.high %v358_v47, %v358_v47  ;;  %v536_v15 = vrot.slane %v4728_v13, %v6242_v6  ;;  %s6940_s17 = sld [smem:[%s7627_s0 + %s6201_s14]]   ;;  %s6204_s26 = smov 23  }
  0x14   :  { %396 = vperm.xlu0 %6004, %v295_v26   ;;  %v543_v18 = vrot.slane %v529_v14, %v6242_v6  ;;  %s6945_s21 = sld [smem:[%s7627_s0 + %s6202_s18]]   ;;  %s6206_s2 = smov 25  }
  0x15   :  { %5661 = vmatpush3.bf16.msra.mxu0 %v5658_v23  ;;  %388 = vperm.xlu1 %6005, %v312_v39   ;;  %v544_v19 = vcombine.high %v536_v15, %v536_v15  ;;  %v552_v20 = vrot.slane %v536_v15, %v6242_v6  ;;  %s6971_s30 = sld [smem:[%s7627_s0 + %s6204_s26]]   ;;  %s6208_s12 = smov 17  }
  0x16   :  { %5663 = vmatprep.subr.bf16.mxu0 %v5662_v28  ;;  %v545_v21 = vcombine.high %v543_v18, %v543_v18  ;;  %v559_v24 = vrot.slane %v543_v18, %v6242_v6  ;;  %s7044_s6 = sld [smem:[%s7627_s0 + %s6206_s2]]   ;;  %s6209_s18 = smov 24  }
  0x17   :  { %v566_v22 = vrot.slane %v544_v19, %v6242_v6  ;;  %s7063_s16 = sld [smem:[%s7627_s0 + %s6208_s12]]   ;;  %s6213_s14 = smov 28  }
  0x18   :  { %412 = vperm.xlu0 %6004, %v311_v29   ;;  %v574_v29 = vcombine.high %v552_v20, %v552_v20  ;;  %v573_v32 = vrot.slane %v545_v21, %v6242_v6  ;;  %s6214_s20 = smov 31   ;;  %s6216_s8 = smov 32  }
  0x19   :  { %5665 = vmatpush3.bf16.msra.mxu0 %v5662_v28  ;;  %404 = vperm.xlu1 %6005, %v309_v41   ;;  %v262_v28 = vld [vmem:[%s4693_s25] sm:$0x1]  ;;  %v576_v39 = vcombine.high %v566_v22, %v566_v22  ;;  %s6950_s25 = sld [smem:[%s7627_s0 + %s6203_s22]]  }
  0x1a   :  { %s7094_s22 = sld [smem:[%s7627_s0 + %s6209_s18]]   ;;  %s6221_s18 = smov 37  }
  0x1b   :  { %s7224_s26 = sld [smem:[%s7627_s0 + %s6214_s20]]  }
  0x1c   :  { %428 = vperm.xlu0 %6004, %v337_v31  }
  0x1d   :  { %420 = vperm.xlu1 %6005, %v313_v42  }
  0x20   :  { %444 = vperm.xlu0 %6004, %v359_v33   ;;  %v575_v33 = vcombine.high %v559_v24, %v559_v24 }
  0x21   :  { %436 = vperm.xlu1 %6005, %v351_v44  }
  0x24   :  { %460 = vperm.xlu0 %6004, %v344_v35  }
  0x25   :  { %452 = vperm.xlu1 %6005, %v361_v45  }
  0x28   :  { %476 = vperm.xlu0 %6004, %v360_v36  }
  0x29   :  { %468 = vperm.xlu1 %6005, %v358_v47   ;;  %v577_v47 = vcombine.high %v573_v32, %v573_v32 }
  0x2c   :  { %758 = vbcast.lane.b32.xlu0 %v6270_v52, 264 }
  0x2d   :  { %484 = vperm.xlu1 %6005, %v362_v48  }
  0x30   :  { %842 = vbcast.lane.b32.xlu0 %v6275_v53, 256 }
  0x34   :  { %743 = vbcast.lane.b32.xlu0 %v6283_v55, 256 }
  0x38   :  { %776 = vbcast.lane.b32.xlu0 %v6291_v57, 256 }
  0x87   :  { %v160_v59 = vpop.permute.xlu0 %159 }
  0x88   :  { %vm164_vm1 = vcmp.eq.s32.totalorder %v157_v58, %v160_v59 }
  0x89   :  { %v4724_v61 = vsel %vm164_vm1, 1.0, %v6185_v60 }
  0x8a   :  { %5174 = vmatprep.mubr.msk.f32.mxu0 %vm178_vm0, %v4724_v61 }
  0x8b   :  { %v163_v62 = vpop.permute.xlu0 %162 }
  0x8c   :  { %vm165_vm2 = vcmp.eq.s32.totalorder %v157_v58, %v163_v62  ;;  %v365_v1 = vpop.permute.xlu1 %364 }
  0x8d   :  { %v4725_v63 = vsel %vm165_vm2, 1.0, %v6185_v60  ;;  %v370_v26 = vrot.slane %v365_v1, %v6278_v54 }
  0x8e   :  { %5175 = vmatmul.mubr.msk.f32.vlgmr.msra.gmra.mrb[0].mxu0 %vm178_vm0, %v4725_v63 }
  0x8f   :  { %v381_v2 = vpop.permute.xlu0 %380  ;;  %v491_v42 = vmul.f32 %v370_v26, %v262_v28 }
  0x90   :  { %v373_v3 = vpop.permute.xlu1 %372  ;;  %v386_v23 = vrot.slane %v381_v2, %v6278_v54 }
  0x91   :  { %v378_v38 = vrot.slane %v373_v3, %v6278_v54 }
  0x92   :  { %v493_v41 = vmul.f32 %v386_v23, %v262_v28 }
  0x93   :  { %v397_v5 = vpop.permute.xlu0 %396  ;;  %v492_v2 = vmul.f32 %v378_v38, %v262_v28 }
  0x94   :  { %v389_v7 = vpop.permute.xlu1 %388  ;;  %v402_v30 = vrot.slane %v397_v5, %v6278_v54 }
  0x95   :  { %v394_v40 = vrot.slane %v389_v7, %v6278_v54  ;;  %v6326_v7 = vadd.f32 %v574_v29, %v493_v41  ;;  %v587_v19 = vadd.f32 %v566_v22, %v492_v2 }
  0x96   :  { %v495_v45 = vmul.f32 %v402_v30, %v262_v28 }
  0x97   :  { %v413_v0 = vpop.permute.xlu0 %412  ;;  %v494_v3 = vmul.f32 %v394_v40, %v262_v28 }
  0x98   :  { %v405_v8 = vpop.permute.xlu1 %404  ;;  %v418_v31 = vrot.slane %v413_v0, %v6278_v54  ;;  %v586_v0 = vadd.f32 %v552_v20, %v491_v42 }
  0x99   :  { %v410_v43 = vrot.slane %v405_v8, %v6278_v54  ;;  %v589_v21 = vadd.f32 %v576_v39, %v494_v3 }
  0x9a   :  { %v497_v46 = vmul.f32 %v418_v31, %v262_v28 }
  0x9b   :  { %v429_v9 = vpop.permute.xlu0 %428  ;;  %v496_v8 = vmul.f32 %v410_v43, %v262_v28 }
  0x9c   :  { %v421_v10 = vpop.permute.xlu1 %420  ;;  %v434_v34 = vrot.slane %v429_v9, %v6278_v54 }
  0x9d   :  { %v426_v44 = vrot.slane %v421_v10, %v6278_v54  ;;  %v6328_v10 = vadd.f32 %v559_v24, %v495_v45  ;;  %v591_v26 = vadd.f32 %v573_v32, %v496_v8 }
  0x9e   :  { %v499_v58 = vmul.f32 %v434_v34, %v262_v28 }
  0x9f   :  { %v445_v11 = vpop.permute.xlu0 %444  ;;  %v498_v9 = vmul.f32 %v426_v44, %v262_v28 }
  0xa0   :  { %v437_v12 = vpop.permute.xlu1 %436  ;;  %v450_v35 = vrot.slane %v445_v11, %v6278_v54  ;;  %v6330_v11 = vadd.f32 %v575_v33, %v497_v46  ;;  %v594_v14 = vadd.f32 %v552_v20, %v499_v58 }
  0xa1   :  { %v442_v48 = vrot.slane %v437_v12, %v6278_v54 }
  0xa2   :  { %v501_v59 = vmul.f32 %v450_v35, %v262_v28 }
  0xa3   :  { %v461_v16 = vpop.permute.xlu0 %460  ;;  %v500_v12 = vmul.f32 %v442_v48, %v262_v28 }
  0xa4   :  { %v453_v17 = vpop.permute.xlu1 %452  ;;  %v466_v36 = vrot.slane %v461_v16, %v6278_v54  ;;  %v596_v15 = vadd.f32 %v574_v29, %v501_v59 }
  0xa5   :  { %v458_v62 = vrot.slane %v453_v17, %v6278_v54  ;;  %v595_v20 = vadd.f32 %v566_v22, %v500_v12 }
  0xa6   :  { %v503_v61 = vmul.f32 %v466_v36, %v262_v28 }
  0xa7   :  { %v477_v25 = vpop.permute.xlu0 %476  ;;  %v502_v17 = vmul.f32 %v458_v62, %v262_v28 }
  0xa8   :  { %v469_v27 = vpop.permute.xlu1 %468  ;;  %v482_v37 = vrot.slane %v477_v25, %v6278_v54  ;;  %v598_v16 = vadd.f32 %v559_v24, %v503_v61 }
  0xa9   :  { %v474_v5 = vrot.slane %v469_v27, %v6278_v54  ;;  %v593_v27 = vadd.f32 %v577_v47, %v498_v9  ;;  %v597_v35 = vadd.f32 %v576_v39, %v502_v17 }
  0xaa   :  { %v505_v1 = vmul.f32 %v482_v37, %v262_v28 }
  0xab   :  { %v504_v23 = vmul.f32 %v474_v5, %v262_v28 }
  0xac   :  { %v485_v63 = vpop.permute.xlu1 %484  ;;  %v600_v18 = vadd.f32 %v575_v33, %v505_v1 }
  0xad   :  { %v490_v13 = vrot.slane %v485_v63, %v6278_v54  ;;  %v599_v40 = vadd.f32 %v573_v32, %v504_v23 }
  0xaf   :  { %v506_v29 = vmul.f32 %v490_v13, %v262_v28 }
  0xb1   :  { %v601_v46 = vadd.f32 %v577_v47, %v506_v29 }
 0x161   :  { %v6333_v25 = vpop.f32.mrb[0].mxu0 }
 0x162   :  { %v6335_v30 = vpop.f32.mrb[1].mxu0  ;;  %v653_v31 = vcombine.high %v6333_v25, %v6333_v25  ;;  %v660_v34 = vrot.slane %v6333_v25, %v6242_v6 }
 0x163   :  { %v604_v24 = vcombine.high %v6335_v30, %v6335_v30  ;;  %v611_v33 = vrot.slane %v6335_v30, %v6242_v6 }
 0x164   :  { %v667_v36 = vrot.slane %v653_v31, %v6242_v6  ;;  %v668_v37 = vcombine.high %v660_v34, %v660_v34  ;;  %v676_v38 = vrot.slane %v660_v34, %v6242_v6 }
 0x165   :  { %v618_v41 = vrot.slane %v604_v24, %v6242_v6  ;;  %v619_v42 = vcombine.high %v611_v33, %v611_v33  ;;  %v627_v43 = vrot.slane %v611_v33, %v6242_v6 }
 0x166   :  { %v669_v22 = vcombine.high %v667_v36, %v667_v36  ;;  %v683_v28 = vrot.slane %v667_v36, %v6242_v6  ;;  %v690_v44 = vrot.slane %v668_v37, %v6242_v6  ;;  %v698_v45 = vcombine.high %v676_v38, %v676_v38 }
 0x167   :  { %v620_v48 = vcombine.high %v618_v41, %v618_v41  ;;  %v634_v39 = vrot.slane %v618_v41, %v6242_v6  ;;  %v641_v58 = vrot.slane %v619_v42, %v6242_v6  ;;  %v726_v63 = vadd.f32 %v676_v38, %v594_v14 }
 0x168   :  { %v697_v59 = vrot.slane %v669_v22, %v6242_v6  ;;  %v699_v32 = vcombine.high %v683_v28, %v683_v28  ;;  %v700_v61 = vcombine.high %v690_v44, %v690_v44  ;;  %v727_v62 = vadd.f32 %v690_v44, %v595_v20 }
 0x169   :  { %v728_v1 = vadd.f32 %v698_v45, %v596_v15  ;;  %v730_v2 = vadd.f32 %v683_v28, %v598_v16  ;;  %v648_v3 = vrot.slane %v620_v48, %v6242_v6  ;;  %v649_v12 = vcombine.high %v627_v43, %v627_v43 }
 0x16a   :  { %v701_v5 = vcombine.high %v697_v59, %v697_v59  ;;  %v729_v8 = vadd.f32 %v700_v61, %v597_v35  ;;  %v731_v9 = vadd.f32 %v697_v59, %v599_v40  ;;  %v1508_v47 = vcombine.low %v726_v63, %v727_v62 }
 0x16b   :  { %v650_v13 = vcombine.high %v634_v39, %v634_v39  ;;  %v651_v17 = vcombine.high %v641_v58, %v641_v58  ;;  %v652_v23 = vcombine.high %v648_v3, %v648_v3  ;;  %v732_v31 = vadd.f32 %v699_v32, %v600_v18 }
 0x16c   :  { %v733_v34 = vadd.f32 %v701_v5, %v601_v46  ;;  %v1509_v29 = vcombine.low %v728_v1, %v729_v8  ;;  %v1510_v24 = vcombine.low %v730_v2, %v731_v9  ;;  %v1518_v33 = vrot.slane %v1508_v47, %v6242_v6 }
 0x16d   :  { %v718_v20 = vadd.f32 %v627_v43, %v586_v0  ;;  %v719_v14 = vadd.f32 %v641_v58, %v587_v19  ;;  %v721_v15 = vadd.f32 %v651_v17, %v589_v21  ;;  %v720_v35 = vadd.f32 %v649_v12, %v6326_v7 }
 0x16e   :  { %v1511_v16 = vcombine.low %v732_v31, %v733_v34  ;;  %v1525_v36 = vrot.slane %v1509_v29, %v6242_v6  ;;  %v722_v37 = vadd.f32 %v634_v39, %v6328_v10  ;;  %v723_v38 = vadd.f32 %v648_v3, %v591_v26  ;;  %v1162_v34 = vld [vmem:[%s4688_s29 + $0x8] sm:$0xff] }
 0x16f   :  { %v724_v40 = vadd.f32 %v650_v13, %v6330_v11  ;;  %v725_v41 = vadd.f32 %v652_v23, %v593_v27  ;;  %v1459_v18 = vcombine.low %v718_v20, %v719_v14  ;;  %v1532_v42 = vrot.slane %v1510_v24, %v6242_v6  ;;  %v1161_v23 = vld [vmem:[%s4688_s29] sm:$0xff]  ;;  %v759_v14 = vpop.permute.xlu0 %758  ;;  %s6211_s29 = smov 29  }
 0x170   :  { %v1539_v22 = vrot.slane %v1511_v16, %v6242_v6  ;;  %v1540_v28 = vcombine.low %v1518_v33, %v1525_v36  ;;  %v1460_v0 = vcombine.low %v720_v35, %v721_v15  ;;  %v1461_v19 = vcombine.low %v722_v37, %v723_v38  ;;  %s7167_s4 = sld [smem:[%s7627_s0 + %s6211_s29]]   ;;  %s6215_s29 = smov 30  }
 0x171   :  { %v1462_v21 = vcombine.low %v724_v40, %v725_v41  ;;  %v1469_v44 = vrot.slane %v1459_v18, %v6242_v6  ;;  %v762_v62 = vsub.s32 2, %v6236_v4  ;;  %v829_v3 = vrot.slane %v6266_v51, %v6278_v54 }
 0x172   :  { %v1541_v43 = vcombine.low %v1532_v42, %v1539_v22  ;;  %v1476_v7 = vrot.slane %v1460_v0, %v6242_v6  ;;  %v1483_v10 = vrot.slane %v1461_v19, %v6242_v6  ;;  %v1548_v11 = vrot.slane %v1540_v28, %v6242_v6 }
 0x173   :  { %v1490_v26 = vrot.slane %v1462_v21, %v6242_v6  ;;  %v763_v63 = vrot.slane %v6264_v50, %v762_v62  ;;  %v851_v1 = vrot.slane %v6266_v51, %v762_v62  ;;  %v6394_v5 = vsub.s32 5, %v6236_v4  ;;  %v6420_v15 = vpop.permute.xlu0 %842 }
 0x174   :  { %v1555_v27 = vrot.slane %v1541_v43, %v6242_v6  ;;  %v1491_v45 = vcombine.low %v1469_v44, %v1476_v7  ;;  %v817_v12 = vsub.s32 7, %v6236_v4  ;;  %v1181_v31 = vrot.slane %v1161_v23, %v762_v62 }
 0x175   :  { %v1492_v46 = vcombine.low %v1483_v10, %v1490_v26  ;;  %v796_v8 = vrot.slane %v6264_v50, %v6394_v5  ;;  %v1223_v29 = vrot.slane %v1162_v34, %v6278_v54  ;;  %v1202_v24 = vrot.slane %v1161_v23, %v6394_v5 }
 0x176   :  { %v6368_v48 = vcombine.low %v1548_v11, %v1555_v27  ;;  %v1499_v39 = vrot.slane %v1491_v45, %v6242_v6  ;;  %v818_v47 = vrot.slane %v6264_v50, %v817_v12  ;;  %v906_v17 = vrot.slane %v6266_v51, %v817_v12 }
 0x177   :  { %v1506_v58 = vrot.slane %v1492_v46, %v6242_v6  ;;  %v6383_v6 = vsub.s32 4, %v6236_v4  ;;  %v1272_v20 = vrot.slane %v1162_v34, %v817_v12  ;;  %v6422_v16 = vpop.permute.xlu0 %743  ;;  %v1174_v7 = vrot.slane %v1161_v23, %v6262_v49 }
 0x178   :  { %v1663_v59 = vsel %vm946_vm3, %v6368_v48, 0.0  ;;  %v1230_v26 = vrot.slane %v1162_v34, %v6262_v49  ;;  %v1188_v27 = vrot.slane %v1161_v23, %v6286_v56 }
 0x179   :  { %1664 = vadd.xlane.f32.xlu1 %v1663_v59  ;;  %v6374_v32 = vcombine.low %v1499_v39, %v1506_v58  ;;  %v785_v2 = vrot.slane %v6264_v50, %v6383_v6  ;;  %v1195_v46 = vrot.slane %v1161_v23, %v6383_v6  ;;  %v1251_v58 = vrot.slane %v1162_v34, %v6383_v6 }
 0x17b   :  { %v1660_v61 = vsel %vm946_vm3, %v6374_v32, 0.0  ;;  %v6424_v36 = vpop.permute.xlu0 %776 }
 0x17c   :  { %1661 = vadd.xlane.f32.xlu0 %v1660_v61 }
 0x18a   :  { %754 = vbcast.lane.b32.xlu1 %v6270_v52, 256  ;;  %v862_v52 = vrot.slane %v6266_v51, %v6286_v56 }
 0x18e   :  { %765 = vbcast.lane.b32.xlu1 %v763_v63, 256 }
 0x192   :  { %769 = vbcast.lane.b32.xlu1 %v763_v63, 264  ;;  %853 = vbcast.lane.b32.xlu0 %v851_v1, 256 }
 0x196   :  { %846 = vbcast.lane.b32.xlu1 %v6275_v53, 264  ;;  %787 = vbcast.lane.b32.xlu0 %v785_v2, 256  ;;  %v873_v53 = vrot.slane %v6266_v51, %v6383_v6 }
 0x19a   :  { %747 = vbcast.lane.b32.xlu1 %v6283_v55, 264  ;;  %831 = vbcast.lane.b32.xlu0 %v829_v3, 256  ;;  %v6402_v55 = vsub.s32 6, %v6236_v4  ;;  %v1167_v4 = vrot.slane %v1161_v23, %v6278_v54 }
 0x19c   :  { %v807_v9 = vrot.slane %v6264_v50, %v6402_v55  ;;  %v895_v13 = vrot.slane %v6266_v51, %v6402_v55  ;;  %v1237_v50 = vrot.slane %v1162_v34, %v762_v62  ;;  %v1209_v33 = vrot.slane %v1161_v23, %v6402_v55 }
 0x19d   :  { %v1265_v49 = vrot.slane %v1162_v34, %v6402_v55 }
 0x19e   :  { %780 = vbcast.lane.b32.xlu1 %v6291_v57, 264  ;;  %864 = vbcast.lane.b32.xlu0 %v862_v52, 256  ;;  %v884_v57 = vrot.slane %v6266_v51, %v6394_v5  ;;  %v1216_v51 = vrot.slane %v1161_v23, %v817_v12 }
 0x1a2   :  { %857 = vbcast.lane.b32.xlu1 %v851_v1, 264  ;;  %798 = vbcast.lane.b32.xlu0 %v796_v8, 256 }
 0x1a6   :  { %791 = vbcast.lane.b32.xlu1 %v785_v2, 264  ;;  %875 = vbcast.lane.b32.xlu0 %v873_v53, 256 }
 0x1aa   :  { %835 = vbcast.lane.b32.xlu1 %v829_v3, 264  ;;  %809 = vbcast.lane.b32.xlu0 %v807_v9, 256  ;;  %v6457_v3 = vld [vmem:[%s4691_s3 + $0x8] sm:$0x7] }
 0x1ae   :  { %868 = vbcast.lane.b32.xlu1 %v862_v52, 264  ;;  %v6459_v52 = vld [vmem:[%s4691_s3] sm:$0xff] }
 0x1b2   :  { %802 = vbcast.lane.b32.xlu1 %v796_v8, 264 }
 0x1b6   :  { %879 = vbcast.lane.b32.xlu1 %v873_v53, 264  ;;  %v917_v53 = vmul.f32 %v759_v14, %v6457_v3 }
 0x1ba   :  { %813 = vbcast.lane.b32.xlu1 %v807_v9, 264 }
 0x1be   :  { %890 = vbcast.lane.b32.xlu1 %v884_v57, 264 }
 0x1c2   :  { %824 = vbcast.lane.b32.xlu1 %v818_v47, 264 }
 0x1c6   :  { %901 = vbcast.lane.b32.xlu1 %v895_v13, 264 }
 0x1ca   :  { %908 = vbcast.lane.b32.xlu1 %v906_v17, 256 }
 0x1ce   :  { %1183 = vbcast.lane.b32.xlu1 %v1181_v31, 256  ;;  %v958_v31 = vsel %vm948_vm4, %v917_v53, 0.0 }
 0x1d2   :  { %1169 = vbcast.lane.b32.xlu1 %v1167_v4, 256 }
 0x1d6   :  { %1239 = vbcast.lane.b32.xlu1 %v1237_v50, 256  ;;  %v920_v50 = vmul.f32 %v6424_v36, %v6459_v52 }
 0x1da   :  { %1225 = vbcast.lane.b32.xlu1 %v1223_v29, 256 }
 0x1de   :  { %1204 = vbcast.lane.b32.xlu1 %v1202_v24, 256 }
 0x1e2   :  { %1211 = vbcast.lane.b32.xlu1 %v1209_v33, 256 }
 0x1e6   :  { %1218 = vbcast.lane.b32.xlu1 %v1216_v51, 256 }
 0x1ea   :  { %1274 = vbcast.lane.b32.xlu1 %v1272_v20, 256 }
 0x206   :  { %v1665_v35 = vpop.xlane.xlu1 %1664 }
 0x207   :  { %v1680_v37 = vmul.f32 0.03125, %v1665_v35 }
 0x209   :  { %v6427_v38 = vsub.f32 %v6368_v48, %v1680_v37  ;;  %v1662_v40 = vpop.xlane.xlu0 %1661  ;;  %v1244_v48 = vrot.slane %v1162_v34, %v6286_v56 }
 0x20a   :  { %v1679_v41 = vmul.f32 0.03125, %v1662_v40  ;;  %v755_v19 = vpop.permute.xlu1 %754 }
 0x20b   :  { %v1692_v18 = vmul.f32 %v6427_v38, %v6427_v38 }
 0x20c   :  { %v6432_v42 = vsub.f32 %v6374_v32, %v1679_v41  ;;  %v1258_v32 = vrot.slane %v1162_v34, %v6394_v5  ;;  %v916_v5 = vmul.f32 %v755_v19, %v6459_v52 }
 0x20d   :  { %v1700_v22 = vsel %vm946_vm3, %v1692_v18, 0.0  ;;  %v854_v62 = vpop.permute.xlu0 %853 }
 0x20e   :  { %1701 = vadd.xlane.f32.xlu0 %v1700_v22  ;;  %v1691_v28 = vmul.f32 %v6432_v42, %v6432_v42  ;;  %v766_v21 = vpop.permute.xlu1 %765  ;;  %v934_v18 = vmul.f32 %v854_v62, %v6459_v52  ;;  %v975_v22 = vsel %vm946_vm3, %v920_v50, 0.0 }
 0x20f   :  { %v918_v12 = vmul.f32 %v766_v21, %v6459_v52 }
 0x210   :  { %v1697_v0 = vsel %vm946_vm3, %v1691_v28, 0.0 }
 0x211   :  { %v788_v1 = vpop.permute.xlu0 %787  ;;  %v966_v33 = vsel %vm946_vm3, %v918_v12, 0.0 }
 0x212   :  { %1698 = vadd.xlane.f32.xlu0 %v1697_v0  ;;  %v770_v43 = vpop.permute.xlu1 %769  ;;  %v922_v14 = vmul.f32 %v788_v1, %v6459_v52 }
 0x215   :  { %v832_v56 = vpop.permute.xlu0 %831 }
 0x216   :  { %v847_v44 = vpop.permute.xlu1 %846  ;;  %v930_v19 = vmul.f32 %v832_v56, %v6459_v52 }
 0x217   :  { %v933_v4 = vmul.f32 %v847_v44, %v6457_v3  ;;  %v984_v44 = vsel %vm946_vm3, %v922_v14, 0.0 }
 0x218   :  { %v1020_v62 = vsel %vm946_vm3, %v930_v19, 0.0 }
 0x219   :  { %v865_v8 = vpop.permute.xlu0 %864  ;;  %v1030_v36 = vsel %vm948_vm4, %v933_v4, 0.0 }
 0x21a   :  { %v748_v10 = vpop.permute.xlu1 %747 }
 0x21b   :  { %v915_v9 = vmul.f32 %v748_v10, %v6457_v3 }
 0x21d   :  { %v799_v34 = vpop.permute.xlu0 %798  ;;  %v949_v24 = vsel %vm948_vm4, %v915_v9, 0.0  ;;  %v1117_v9 = vrot.slane %v6335_v30, 3 }
 0x21e   :  { %v781_v11 = vpop.permute.xlu1 %780 }
 0x21f   :  { %v921_v23 = vmul.f32 %v781_v11, %v6457_v3 }
 0x221   :  { %v976_v37 = vsel %vm948_vm4, %v921_v23, 0.0  ;;  %v876_v10 = vpop.permute.xlu0 %875 }
 0x222   :  { %v858_v45 = vpop.permute.xlu1 %857  ;;  %v977_v21 = vadd.f32 %v976_v37, %v975_v22  ;;  %v938_v23 = vmul.f32 %v876_v10, %v6459_v52 }
 0x223   :  { %v935_v41 = vmul.f32 %v858_v45, %v6457_v3 }
 0x224   :  { %v978_v1 = vrot.slane %v977_v21, 4 }
 0x226   :  { %v792_v39 = vpop.permute.xlu1 %791 }
 0x227   :  { %v923_v20 = vmul.f32 %v792_v39, %v6457_v3 }
 0x228   :  { %886 = vbcast.lane.b32.xlu0 %v884_v57, 256  ;;  %v957_v57 = vsel %vm946_vm3, %v916_v5, 0.0  ;;  %v936_v5 = vmul.f32 %v865_v8, %v6459_v52 }
 0x229   :  { %v959_v29 = vadd.f32 %v958_v31, %v957_v57  ;;  %v1123_v57 = vrot.slane %v6333_v25, 2  ;;  %v810_v31 = vpop.permute.xlu0 %809 }
 0x22a   :  { %v836_v59 = vpop.permute.xlu1 %835 }
 0x22b   :  { %v960_v28 = vrot.slane %v959_v29, 4 }
 0x22c   :  { %820 = vbcast.lane.b32.xlu0 %v818_v47, 256  ;;  %v919_v47 = vmul.f32 %v770_v43, %v6457_v3  ;;  %v985_v43 = vsel %vm948_vm4, %v923_v20, 0.0 }
 0x22e   :  { %v6446_v61 = vpop.permute.xlu1 %868  ;;  %v967_v51 = vsel %vm948_vm4, %v919_v47, 0.0 }
 0x22f   :  { %v968_v0 = vadd.f32 %v967_v51, %v966_v33  ;;  %v937_v56 = vmul.f32 %v6446_v61, %v6457_v3 }
 0x230   :  { %897 = vbcast.lane.b32.xlu0 %v895_v13, 256  ;;  %v932_v13 = vmul.f32 %v6420_v15, %v6459_v52 }
 0x232   :  { %v6448_v63 = vpop.permute.xlu1 %802 }
 0x234   :  { %1176 = vbcast.lane.b32.xlu0 %v1174_v7, 256  ;;  %v931_v7 = vmul.f32 %v836_v59, %v6457_v3 }
 0x236   :  { %v6450_v2 = vpop.permute.xlu1 %879  ;;  %v1021_v59 = vsel %vm948_vm4, %v931_v7, 0.0 }
 0x237   :  { %v1022_v61 = vadd.f32 %v1021_v59, %v1020_v62  ;;  %v939_v8 = vmul.f32 %v6450_v2, %v6457_v3  ;;  %v926_v2 = vmul.f32 %v810_v31, %v6459_v52  ;;  %v6541_v62 = vld [vmem:[%s6518_s7] sm:$0x7]  ;;  %s6207_s7 = smov 21  }
 0x238   :  { %912 = vbcast.lane.b32.xlu0 %v906_v17, 264  ;;  %v914_v17 = vmul.f32 %v6422_v16, %v6459_v52  ;;  %v1029_v16 = vsel %vm946_vm3, %v932_v13, 0.0  ;;  %v925_v13 = vmul.f32 %v6448_v63, %v6457_v3  ;;  %v1048_v63 = vsel %vm948_vm4, %v937_v56, 0.0 }
 0x239   :  { %v1031_v11 = vadd.f32 %v1030_v36, %v1029_v16  ;;  %v1056_v36 = vsel %vm946_vm3, %v938_v23, 0.0  ;;  %v1057_v22 = vsel %vm948_vm4, %v939_v8, 0.0  ;;  %v1002_v7 = vsel %vm946_vm3, %v926_v2, 0.0 }
 0x23a   :  { %v6455_v6 = vpop.permute.xlu1 %813  ;;  %v947_v35 = vsel %vm946_vm3, %v914_v17, 0.0  ;;  %v924_v17 = vmul.f32 %v799_v34, %v6459_v52  ;;  %v1047_v34 = vsel %vm946_vm3, %v936_v5, 0.0 }
 0x23b   :  { %v950_v40 = vadd.f32 %v949_v24, %v947_v35  ;;  %v1032_v53 = vrot.slane %v1031_v11, 4  ;;  %v979_v24 = vadd.f32 %v978_v1, %v977_v21  ;;  %v927_v14 = vmul.f32 %v6455_v6, %v6457_v3 }
 0x23c   :  { %1232 = vbcast.lane.b32.xlu0 %v1230_v26, 256  ;;  %v1122_v26 = vrot.slane %v6333_v25, 1  ;;  %v994_v35 = vsel %vm948_vm4, %v925_v13, 0.0  ;;  %v993_v37 = vsel %vm946_vm3, %v924_v17, 0.0  ;;  %v1124_v6 = vrot.slane %v6333_v25, 3 }
 0x23d   :  { %v951_v45 = vrot.slane %v950_v40, 4  ;;  %v1033_v51 = vadd.f32 %v1032_v53, %v1031_v11  ;;  %v980_v19 = vrot.slane %v979_v24, 2  ;;  %v1118_v1 = vrot.slane %v6335_v30, 4 }
 0x23e   :  { %v6463_v55 = vpop.permute.xlu1 %890  ;;  %v1120_v17 = vrot.slane %v6335_v30, 6 }
 0x23f   :  { %v952_v47 = vadd.f32 %v951_v45, %v950_v40  ;;  %v1034_v10 = vrot.slane %v1033_v51, 2  ;;  %v1058_v45 = vadd.f32 %v1057_v22, %v1056_v36  ;;  %v981_v5 = vadd.f32 %v980_v19, %v979_v24 }
 0x240   :  { %1190 = vbcast.lane.b32.xlu0 %v1188_v27, 256  ;;  %v1116_v27 = vrot.slane %v6335_v30, 2  ;;  %v1126_v36 = vrot.slane %v6333_v25, 5 }
 0x241   :  { %v953_v16 = vrot.slane %v952_v47, 2  ;;  %v1035_v23 = vadd.f32 %v1034_v10, %v1033_v51  ;;  %v1125_v51 = vrot.slane %v6333_v25, 4 }
 0x242   :  { %v6483_v15 = vpop.permute.xlu1 %824 }
 0x243   :  { %v954_v11 = vadd.f32 %v953_v16, %v952_v47  ;;  %v1119_v47 = vrot.slane %v6335_v30, 5  ;;  %v6549_v16 = vld [vmem:[%s6535_s11] ss:$0 sm:$0xff]  ;;  %s7057_s11 = sld [smem:[%s7627_s0 + %s6207_s7]]   ;;  %s6212_s7 = smov 27  }
 0x244   :  { %1197 = vbcast.lane.b32.xlu0 %v1195_v46, 256  ;;  %v1039_v46 = vsel %vm948_vm4, %v935_v41, 0.0  ;;  %v1023_v41 = vrot.slane %v1022_v61, 4  ;;  %s7179_s12 = sld [smem:[%s7627_s0 + %s6212_s7]]  }
 0x245   :  { %v955_v31 = vrot.slane %v954_v11, 1  ;;  %s7262_s7 = sld [smem:[%s7627_s0 + %s6215_s29]]  }
 0x246   :  { %v6500_v39 = vpop.permute.xlu1 %901 }
 0x247   :  { %v956_v22 = vadd.f32 %v955_v31, %v954_v11 }
 0x248   :  { %1246 = vbcast.lane.b32.xlu0 %v1244_v48, 256  ;;  %v1038_v48 = vsel %vm946_vm3, %v934_v18, 0.0  ;;  %v1049_v18 = vadd.f32 %v1048_v63, %v1047_v34  ;;  %v1121_v34 = vrot.slane %v6335_v30, 7 }
 0x249   :  { %v1040_v12 = vadd.f32 %v1039_v46, %v1038_v48  ;;  %v1115_v48 = vrot.slane %v6335_v30, 1  ;;  %v1099_v11 = vadd.f32 %v6549_v16, %v956_v22 }
 0x24a   :  { %v6522_v33 = vpop.permute.xlu1 %908 }
 0x24b   :  { %v1041_v20 = vrot.slane %v1040_v12, 4 }
 0x24c   :  { %1253 = vbcast.lane.b32.xlu0 %v1251_v58, 256  ;;  %v961_v58 = vadd.f32 %v960_v28, %v959_v29 }
 0x24d   :  { %v1042_v21 = vadd.f32 %v1041_v20, %v1040_v12  ;;  %v982_v20 = vrot.slane %v981_v5, 1 }
 0x24e   :  { %v962_v4 = vrot.slane %v961_v58, 2  ;;  %v1184_v46 = vpop.permute.xlu1 %1183 }
 0x24f   :  { %v1043_v12 = vrot.slane %v1042_v21, 2 }
 0x250   :  { %1260 = vbcast.lane.b32.xlu0 %v1258_v32, 256  ;;  %v969_v32 = vrot.slane %v968_v0, 4  ;;  %v963_v28 = vadd.f32 %v962_v4, %v961_v58  ;;  %v1059_v4 = vrot.slane %v1058_v45, 4 }
 0x252   :  { %v970_v29 = vadd.f32 %v969_v32, %v968_v0  ;;  %v1024_v32 = vadd.f32 %v1023_v41, %v1022_v61  ;;  %v964_v59 = vrot.slane %v963_v28, 1  ;;  %v1170_v2 = vpop.permute.xlu1 %1169  ;;  %v1036_v41 = vrot.slane %v1035_v23, 1 }
 0x254   :  { %1267 = vbcast.lane.b32.xlu0 %v1265_v49, 256  ;;  %v986_v49 = vadd.f32 %v985_v43, %v984_v44  ;;  %v971_v0 = vrot.slane %v970_v29, 2  ;;  %v995_v43 = vadd.f32 %v994_v35, %v993_v37  ;;  %v1003_v44 = vsel %vm948_vm4, %v927_v14, 0.0 }
 0x255   :  { %v1004_v53 = vadd.f32 %v1003_v44, %v1002_v7  ;;  %v1025_v8 = vrot.slane %v1024_v32, 2  ;;  %v1044_v35 = vadd.f32 %v1043_v12, %v1042_v21  ;;  %v1127_v44 = vrot.slane %v6333_v25, 6 }
 0x256   :  { %v987_v50 = vrot.slane %v986_v49, 4  ;;  %v972_v56 = vadd.f32 %v971_v0, %v970_v29  ;;  %v996_v13 = vrot.slane %v995_v43, 4  ;;  %v965_v29 = vadd.f32 %v964_v59, %v963_v28 }
 0x257   :  { %v1005_v14 = vrot.slane %v1004_v53, 4  ;;  %v1026_v19 = vadd.f32 %v1025_v8, %v1024_v32  ;;  %v1128_v59 = vrot.slane %v6333_v25, 7  ;;  %v1037_v12 = vadd.f32 %v1036_v41, %v1035_v23 }
 0x258   :  { %v988_v40 = vadd.f32 %v987_v50, %v986_v49  ;;  %v1050_v49 = vrot.slane %v1049_v18, 4  ;;  %v1278_v50 = vmul.f32 %v1184_v46, %v6541_v62  ;;  %v973_v24 = vrot.slane %v972_v56, 1 }
 0x259   :  { %v997_v37 = vadd.f32 %v996_v13, %v995_v43  ;;  %v1100_v7 = vadd.f32 %v6549_v16, %v965_v29  ;;  %v983_v46 = vadd.f32 %v982_v20, %v981_v5  ;;  %v1006_v21 = vadd.f32 %v1005_v14, %v1004_v53  ;;  %v1240_v13 = vpop.permute.xlu1 %1239 }
 0x25a   :  { %v989_v58 = vrot.slane %v988_v40, 2  ;;  %v1051_v63 = vadd.f32 %v1050_v49, %v1049_v18  ;;  %v1306_v18 = vsel %vm948_vm4, %v1278_v50, 0.0  ;;  %v974_v10 = vadd.f32 %v973_v24, %v972_v56 }
 0x25b   :  { %v1045_v43 = vrot.slane %v1044_v35, 1  ;;  %v1307_v49 = vrot.slane %v1306_v18, 4  ;;  %v1027_v31 = vrot.slane %v1026_v19, 1  ;;  %v1276_v50 = vmul.f32 %v1170_v2, %v6541_v62 }
 0x25c   :  { %v990_v61 = vadd.f32 %v989_v58, %v988_v40  ;;  %v1060_v40 = vadd.f32 %v1059_v4, %v1058_v45  ;;  %v1052_v28 = vrot.slane %v1051_v63, 2  ;;  %v998_v58 = vrot.slane %v997_v37, 2 }
 0x25d   :  { %v1101_v56 = vadd.f32 %v6549_v16, %v974_v10  ;;  %v1102_v5 = vadd.f32 %v6549_v16, %v983_v46  ;;  %v1007_v53 = vrot.slane %v1006_v21, 2  ;;  %v1146_v8 = vadd.f32 %v1115_v48, %v1100_v7 }
 0x25e   :  { %v991_v0 = vrot.slane %v990_v61, 1  ;;  %v1061_v45 = vrot.slane %v1060_v40, 2  ;;  %v1053_v4 = vadd.f32 %v1052_v28, %v1051_v63  ;;  %v1046_v29 = vadd.f32 %v1045_v43, %v1044_v35 }
 0x25f   :  { %v999_v23 = vadd.f32 %v998_v58, %v997_v37  ;;  %v1308_v24 = vadd.f32 %v1307_v49, %v1306_v18  ;;  %v1108_v20 = vadd.f32 %v6549_v16, %v1037_v12  ;;  %v1028_v2 = vadd.f32 %v1027_v31, %v1026_v19  ;;  %v1226_v18 = vpop.permute.xlu1 %1225 }
 0x260   :  { %v992_v32 = vadd.f32 %v991_v0, %v990_v61  ;;  %v1145_v61 = vadd.f32 %v1099_v11, %v6335_v30  ;;  %v1062_v14 = vadd.f32 %v1061_v45, %v1060_v40  ;;  %v1054_v41 = vrot.slane %v1053_v4, 1 }
 0x261   :  { %v1292_v22 = vsel %vm948_vm4, %v1276_v50, 0.0  ;;  %v1147_v0 = vadd.f32 %v1116_v27, %v1101_v56  ;;  %v1148_v35 = vadd.f32 %v1117_v9, %v1102_v5  ;;  %v1008_v37 = vadd.f32 %v1007_v53, %v1006_v21 }
 0x262   :  { %v1103_v63 = vadd.f32 %v6549_v16, %v992_v32  ;;  %v1575_v28 = vrot.slane %v1146_v8, 7  ;;  %v1109_v7 = vadd.f32 %v6549_v16, %v1046_v29  ;;  %v1000_v10 = vrot.slane %v999_v23, 1 }
 0x263   :  { %v1309_v40 = vrot.slane %v1308_v24, 2  ;;  %v1286_v46 = vmul.f32 %v1240_v13, %v6541_v62  ;;  %v1154_v19 = vadd.f32 %v1122_v26, %v1108_v20  ;;  %v1063_v43 = vrot.slane %v1062_v14, 1 }
 0x264   :  { %v1293_v58 = vrot.slane %v1292_v22, 4  ;;  %v1577_v49 = vsel %vm1576_vm5, %v1575_v28, %v1145_v61  ;;  %v1107_v12 = vadd.f32 %v6549_v16, %v1028_v2  ;;  %v1055_v11 = vadd.f32 %v1054_v41, %v1053_v4 }
 0x265   :  { %v1284_v21 = vmul.f32 %v1226_v18, %v6541_v62  ;;  %v1149_v45 = vadd.f32 %v1118_v1, %v1103_v63  ;;  %v1578_v32 = vrot.slane %v1147_v0, 6  ;;  %v1581_v31 = vrot.slane %v1148_v35, 5 }
 0x266   :  { %v1009_v50 = vrot.slane %v1008_v37, 1  ;;  %v1155_v13 = vadd.f32 %v1123_v57, %v1109_v7  ;;  %v1001_v56 = vadd.f32 %v1000_v10, %v999_v23  ;;  %v1310_v5 = vadd.f32 %v1309_v40, %v1308_v24 }
 0x267   :  { %v1362_v53 = vsel %vm948_vm4, %v1286_v46, 0.0  ;;  %v1596_v8 = vrot.slane %v1154_v19, 7  ;;  %v1064_v29 = vadd.f32 %v1063_v43, %v1062_v14  ;;  %v1294_v4 = vadd.f32 %v1293_v58, %v1292_v22  ;;  %v1205_v19 = vpop.permute.xlu1 %1204 }
 0x268   :  { %v1580_v20 = vsel %vm1579_vm6, %v1578_v32, %v1577_v49  ;;  %v1153_v61 = vadd.f32 %v6333_v25, %v1107_v12  ;;  %v1110_v63 = vadd.f32 %v6549_v16, %v1055_v11  ;;  %v1348_v23 = vsel %vm948_vm4, %v1284_v21, 0.0 }
 0x269   :  { %v1584_v2 = vrot.slane %v1149_v45, 4  ;;  %v1010_v41 = vadd.f32 %v1009_v50, %v1008_v37  ;;  %v1363_v0 = vrot.slane %v1362_v53, 4  ;;  %v1583_v35 = vsel %vm1582_vm7, %v1581_v31, %v1580_v20 }
 0x26a   :  { %v1598_v18 = vrot.slane %v1155_v13, 6  ;;  %v1104_v28 = vadd.f32 %v6549_v16, %v1001_v56  ;;  %v941_v22 = vmul.f32 %v6463_v55, %v6457_v3  ;;  %v1311_v7 = vrot.slane %v1310_v5, 1 }
 0x26b   :  { %v1111_v10 = vadd.f32 %v6549_v16, %v1064_v29  ;;  %v1295_v40 = vrot.slane %v1294_v4, 2  ;;  %v1349_v46 = vrot.slane %v1348_v23, 4  ;;  %v1156_v37 = vadd.f32 %v1124_v6, %v1110_v63 }
 0x26c   :  { %v929_v58 = vmul.f32 %v6483_v15, %v6457_v3  ;;  %v1586_v12 = vsel %vm1585_vm8, %v1584_v2, %v1583_v35  ;;  %v1597_v55 = vsel %vm1576_vm5, %v1596_v8, %v1153_v61  ;;  %v1364_v11 = vadd.f32 %v1363_v0, %v1362_v53  ;;  %v6609_v15 = vld [vmem:[%s6586_s15] ss:$0 sm:$0xff]  ;;  %s7270_s15 = sld [smem:[%s7627_s0 + %s6216_s8]]  }
 0x26d   :  { %v1105_v45 = vadd.f32 %v6549_v16, %v1010_v41  ;;  %v1066_v32 = vsel %vm948_vm4, %v941_v22, 0.0  ;;  %v1312_v31 = vadd.f32 %v1311_v7, %v1310_v5  ;;  %v1281_v50 = vmul.f32 %v1205_v19, %v6541_v62 }
 0x26e   :  { %v1150_v13 = vadd.f32 %v1119_v47, %v1104_v28  ;;  %v1296_v56 = vadd.f32 %v1295_v40, %v1294_v4  ;;  %v1350_v29 = vadd.f32 %v1349_v46, %v1348_v23  ;;  %v1157_v5 = vadd.f32 %v1125_v51, %v1111_v10 }
 0x26f   :  { %v1600_v53 = vrot.slane %v1156_v37, 5  ;;  %v1012_v8 = vsel %vm948_vm4, %v929_v58, 0.0  ;;  %v943_v61 = vmul.f32 %v6500_v39, %v6457_v3  ;;  %v1599_v4 = vsel %vm1579_vm6, %v1598_v18, %v1597_v55 }
 0x270   :  { %v1365_v23 = vrot.slane %v1364_v11, 2  ;;  %v1151_v41 = vadd.f32 %v1120_v17, %v1105_v45  ;;  %v944_v39 = vmul.f32 %v6522_v33, %v6459_v52  ;;  %v1413_v0 = vadd.f32 %v6609_v15, %v1312_v31 }
 0x271   :  { %v1587_v35 = vrot.slane %v1150_v13, 3  ;;  %v1297_v18 = vrot.slane %v1296_v56, 1  ;;  %v1351_v28 = vrot.slane %v1350_v29, 2  ;;  %v1602_v7 = vrot.slane %v1157_v5, 4  ;;  %v6649_v5 = vld [vmem:[%s6614_s19] ss:$0 sm:$0xff]  ;;  %s7191_s19 = sld [smem:[%s7627_s0 + %s6213_s14]]  }
 0x272   :  { %v1075_v10 = vsel %vm948_vm4, %v943_v61, 0.0  ;;  %v1366_v33 = vadd.f32 %v1365_v23, %v1364_v11  ;;  %v6640_v55 = vsel %vm946_vm3, %v944_v39, 0.0 }
 0x273   :  { %v1589_v31 = vsel %vm1588_vm9, %v1587_v35, %v1586_v12  ;;  %v1352_v13 = vadd.f32 %v1351_v28, %v1350_v29  ;;  %v6658_v29 = vld [vmem:[%s6626_s23] ss:$0 sm:$0xff]  ;;  %s6210_s23 = smov 26  }
 0x274   :  { %v1367_v12 = vrot.slane %v1366_v33, 1  ;;  %s7119_s28 = sld [smem:[%s7627_s0 + %s6210_s23]]  }
 0x275   :  { %s4723_s23 = sld [smem:[%s7627_s0 + %s6221_s18]]  }
 0x29b   :  { %v1702_v24 = vpop.xlane.xlu0 %1701 }
 0x29c   :  { %v1716_v14 = vmul.f32 0.03125, %v1702_v24  ;;  %v1212_v24 = vpop.permute.xlu1 %1211 }
 0x29d   :  { %v1282_v40 = vmul.f32 %v1212_v24, %v6541_v62 }
 0x29e   :  { %v1722_v43 = vadd.f32 1e-05, %v1716_v14  ;;  %v1327_v14 = vsel %vm948_vm4, %v1281_v50, 0.0  ;;  %v1298_v50 = vadd.f32 %v1297_v18, %v1296_v56 }
 0x29f   :  { %v1699_v49 = vpop.xlane.xlu0 %1698  ;;  %v1328_v37 = vrot.slane %v1327_v14, 4  ;;  %v1334_v61 = vsel %vm948_vm4, %v1282_v40, 0.0 }
 0x2a0   :  { %6008 = vrsqrt.f32 %v1722_v43  ;;  %v1715_v21 = vmul.f32 0.03125, %v1699_v49  ;;  %v1601_v43 = vsel %vm1582_vm7, %v1600_v53, %v1599_v4  ;;  %v1590_v49 = vrot.slane %v1151_v41, 2 }
 0x2a1   :  { %v6652_v53 = vsel %vm1585_vm8, %v1602_v7, %v1601_v43  ;;  %v1329_v24 = vadd.f32 %v1328_v37, %v1327_v14  ;;  %v1411_v18 = vadd.f32 %v6609_v15, %v1298_v50 }
 0x2a2   :  { %v1721_v20 = vadd.f32 1e-05, %v1715_v21  ;;  %v6644_v21 = vadd.f32 %v1413_v0, %v1116_v27 }
 0x2a3   :  { %v887_v63 = vpop.permute.xlu0 %886  ;;  %v1330_v43 = vrot.slane %v1329_v24, 2 }
 0x2a4   :  { %6010 = vrsqrt.f32 %v1721_v20  ;;  %v940_v2 = vmul.f32 %v887_v63, %v6459_v52  ;;  %v1219_v20 = vpop.permute.xlu1 %1218  ;;  %v1630_v41 = vrot.slane %v6644_v21, 6 }
 0x2a5   :  { %v1283_v39 = vmul.f32 %v1219_v20, %v6541_v62 }
 0x2a6   :  { %v1065_v22 = vsel %vm946_vm3, %v940_v2, 0.0  ;;  %v6661_v2 = vsel %vm1591_vm10, %v1590_v49, %v1589_v31 }
 0x2a7   :  { %v1067_v46 = vadd.f32 %v1066_v32, %v1065_v22  ;;  %v821_v19 = vpop.permute.xlu0 %820  ;;  %v1341_v49 = vsel %vm948_vm4, %v1283_v39, 0.0 }
 0x2a8   :  { %v928_v58 = vmul.f32 %v821_v19, %v6459_v52  ;;  %v1368_v19 = vadd.f32 %v1367_v12, %v1366_v33 }
 0x2a9   :  { %v1068_v45 = vrot.slane %v1067_v46, 4 }
 0x2aa   :  { %v6009_v32 = vpop.eup %6008  ;;  %v1011_v11 = vsel %vm946_vm3, %v928_v58, 0.0 }
 0x2ab   :  { %v1069_v63 = vadd.f32 %v1068_v45, %v1067_v46  ;;  %v1013_v27 = vadd.f32 %v1012_v8, %v1011_v11  ;;  %v898_v4 = vpop.permute.xlu0 %897  ;;  %v1734_v23 = vmul.f32 %v6009_v32, %v6427_v38  ;;  %v1335_v38 = vrot.slane %v1334_v61, 4 }
 0x2ac   :  { %v942_v56 = vmul.f32 %v898_v4, %v6459_v52  ;;  %v1353_v52 = vrot.slane %v1352_v13, 1 }
 0x2ad   :  { %v1014_v0 = vrot.slane %v1013_v27, 4  ;;  %v1746_v35 = vmul.f32 %v6649_v5, %v1734_v23  ;;  %v1070_v28 = vrot.slane %v1069_v63, 2  ;;  %v1336_v50 = vadd.f32 %v1335_v38, %v1334_v61  ;;  %v1275_v61 = vpop.permute.xlu1 %1274 }
 0x2ae   :  { %v6011_v8 = vpop.eup %6010  ;;  %v1074_v14 = vsel %vm946_vm3, %v942_v56, 0.0  ;;  %v1342_v56 = vrot.slane %v1341_v49, 4 }
 0x2af   :  { %v1015_v22 = vadd.f32 %v1014_v0, %v1013_v27  ;;  %v1076_v7 = vadd.f32 %v1075_v10, %v1074_v14  ;;  %v1177_v40 = vpop.permute.xlu0 %1176  ;;  %v6669_v46 = vadd.f32 %v6658_v29, %v1746_v35  ;;  %v1733_v58 = vmul.f32 %v6011_v8, %v6432_v42 }
 0x2b0   :  { %v1277_v37 = vmul.f32 %v1177_v40, %v6541_v62  ;;  %v1071_v20 = vadd.f32 %v1070_v28, %v1069_v63  ;;  %v1354_v27 = vadd.f32 %v1353_v52, %v1352_v13  ;;  %v1331_v35 = vadd.f32 %v1330_v43, %v1329_v24 }
 0x2b1   :  { %v1016_v45 = vrot.slane %v1015_v22, 2  ;;  %v1077_v31 = vrot.slane %v1076_v7, 4  ;;  %v1765_v32 = vmul.f32 %v6669_v46, %v6669_v46  ;;  %v1745_v11 = vmul.f32 %v6649_v5, %v1733_v58 }
 0x2b2   :  { %v1299_v10 = vsel %vm948_vm4, %v1277_v37, 0.0  ;;  %v1337_v13 = vrot.slane %v1336_v50, 2  ;;  %v1072_v28 = vrot.slane %v1071_v20, 1  ;;  %v1343_v24 = vadd.f32 %v1342_v56, %v1341_v49 }
 0x2b3   :  { %v1017_v33 = vadd.f32 %v1016_v45, %v1015_v22  ;;  %v1078_v4 = vadd.f32 %v1077_v31, %v1076_v7  ;;  %v1300_v23 = vrot.slane %v1299_v10, 4  ;;  %v913_v12 = vpop.permute.xlu0 %912  ;;  %v1773_v39 = vsel %vm946_vm3, %v1765_v32, 0.0 }
 0x2b4   :  { %v945_v42 = vmul.f32 %v913_v12, %v6457_v3  ;;  %v6681_v0 = vadd.f32 %v6658_v29, %v1745_v11  ;;  %1774 = vadd.xlane.f32.xlu1 %v1773_v39  ;;  %v1291_v43 = vmul.f32 %v1275_v61, %v6541_v62  ;;  %v6699_v61 = vadd.f32 %v6609_v15, %v1354_v27 }
 0x2b5   :  { %v1018_v63 = vrot.slane %v1017_v33, 1  ;;  %v1079_v8 = vrot.slane %v1078_v4, 2  ;;  %v1301_v38 = vadd.f32 %v1300_v23, %v1299_v10  ;;  %v1332_v23 = vrot.slane %v1331_v35, 1 }
 0x2b6   :  { %v1084_v14 = vsel %vm948_vm4, %v945_v42, 0.0  ;;  %v1764_v52 = vmul.f32 %v6681_v0, %v6681_v0 }
 0x2b7   :  { %v1019_v3 = vadd.f32 %v1018_v63, %v1017_v33  ;;  %v1080_v22 = vadd.f32 %v1079_v8, %v1078_v4  ;;  %v1302_v7 = vrot.slane %v1301_v38, 2  ;;  %v1085_v40 = vadd.f32 %v1084_v14, %v6640_v55  ;;  %v1233_v37 = vpop.permute.xlu0 %1232 }
 0x2b8   :  { %v1285_v58 = vmul.f32 %v1233_v37, %v6541_v62  ;;  %v1770_v45 = vsel %vm946_vm3, %v1764_v52, 0.0  ;;  %v6692_v33 = vadd.f32 %v1411_v18, %v6335_v30  ;;  %v6695_v4 = vadd.f32 %v6609_v15, %v1368_v19 }
 0x2b9   :  { %v1081_v31 = vrot.slane %v1080_v22, 1  ;;  %v1303_v32 = vadd.f32 %v1302_v7, %v1301_v38  ;;  %v1086_v10 = vrot.slane %v1085_v40, 4  ;;  %1771 = vadd.xlane.f32.xlu0 %v1770_v45  ;;  %v1106_v11 = vadd.f32 %v6549_v16, %v1019_v3 }
 0x2ba   :  { %v1073_v55 = vadd.f32 %v1072_v28, %v1071_v20  ;;  %v1355_v49 = vsel %vm948_vm4, %v1285_v58, 0.0  ;;  %v1338_v38 = vadd.f32 %v1337_v13, %v1336_v50  ;;  %v1344_v19 = vrot.slane %v1343_v24, 2 }
 0x2bb   :  { %v1082_v12 = vadd.f32 %v1081_v31, %v1080_v22  ;;  %v1087_v56 = vadd.f32 %v1086_v10, %v1085_v40  ;;  %v1356_v42 = vrot.slane %v1355_v49, 4  ;;  %v1191_v39 = vpop.permute.xlu0 %1190  ;;  %v1304_v63 = vrot.slane %v1303_v32, 1 }
 0x2bc   :  { %v1279_v8 = vmul.f32 %v1191_v39, %v6541_v62  ;;  %v1152_v18 = vadd.f32 %v1121_v34, %v1106_v11  ;;  %v1397_v20 = vsel %vm948_vm4, %v1291_v43, 0.0  ;;  %v1112_v14 = vadd.f32 %v6549_v16, %v1073_v55 }
 0x2bd   :  { %v1088_v28 = vrot.slane %v1087_v56, 2  ;;  %v1357_v52 = vadd.f32 %v1356_v42, %v1355_v49  ;;  %v1333_v7 = vadd.f32 %v1332_v23, %v1331_v35  ;;  %v1113_v58 = vadd.f32 %v6549_v16, %v1082_v12 }
 0x2be   :  { %v1313_v3 = vsel %vm948_vm4, %v1279_v8, 0.0  ;;  %v1593_v22 = vrot.slane %v1152_v18, 1  ;;  %v1398_v45 = vrot.slane %v1397_v20, 4  ;;  %v1305_v31 = vadd.f32 %v1304_v63, %v1303_v32 }
 0x2bf   :  { %v1089_v27 = vadd.f32 %v1088_v28, %v1087_v56  ;;  %v1314_v40 = vrot.slane %v1313_v3, 4  ;;  %v1198_v37 = vpop.permute.xlu0 %1197  ;;  %v1339_v43 = vrot.slane %v1338_v38, 1  ;;  %v1345_v10 = vadd.f32 %v1344_v19, %v1343_v24 }
 0x2c0   :  { %v1280_v50 = vmul.f32 %v1198_v37, %v6541_v62  ;;  %v6711_v13 = vsel %vm1594_vm11, %v1593_v22, %v6661_v2  ;;  %v1358_v49 = vrot.slane %v1357_v52, 2  ;;  %v1158_v12 = vadd.f32 %v1126_v36, %v1112_v14 }
 0x2c1   :  { %v1090_v11 = vrot.slane %v1089_v27, 1  ;;  %v1315_v55 = vadd.f32 %v1314_v40, %v1313_v3  ;;  %v1666_v23 = vsel %vm946_vm3, %v6711_v13, 0.0  ;;  %v1416_v32 = vadd.f32 %v6609_v15, %v1333_v7 }
 0x2c2   :  { %v1320_v35 = vsel %vm948_vm4, %v1280_v50, 0.0  ;;  %1667 = vadd.xlane.f32.xlu0 %v1666_v23  ;;  %v1159_v24 = vadd.f32 %v1127_v44, %v1113_v58  ;;  %v1399_v39 = vadd.f32 %v1398_v45, %v1397_v20  ;;  %v1412_v63 = vadd.f32 %v6609_v15, %v1305_v31 }
 0x2c3   :  { %v1091_v56 = vadd.f32 %v1090_v11, %v1089_v27  ;;  %v1316_v42 = vrot.slane %v1315_v55, 2  ;;  %v1247_v2 = vpop.permute.xlu0 %1246  ;;  %v1321_v8 = vrot.slane %v1320_v35, 4  ;;  %v1340_v19 = vadd.f32 %v1339_v43, %v1338_v38 }
 0x2c4   :  { %v1287_v18 = vmul.f32 %v1247_v2, %v6541_v62  ;;  %v1346_v28 = vrot.slane %v1345_v10, 1  ;;  %v1359_v22 = vadd.f32 %v1358_v49, %v1357_v52  ;;  %v1604_v40 = vrot.slane %v1158_v12, 3 }
 0x2c5   :  { %v1317_v3 = vadd.f32 %v1316_v42, %v1315_v55  ;;  %v1114_v14 = vadd.f32 %v6549_v16, %v1091_v56  ;;  %v1322_v7 = vadd.f32 %v1321_v8, %v1320_v35  ;;  %v1606_v58 = vrot.slane %v1159_v24, 2 }
 0x2c6   :  { %v1369_v27 = vsel %vm948_vm4, %v1287_v18, 0.0  ;;  %v1400_v45 = vrot.slane %v1399_v39, 2  ;;  %v1428_v38 = vadd.f32 %v1412_v63, %v1115_v48  ;;  %v1347_v16 = vadd.f32 %v1346_v28, %v1345_v10 }
 0x2c7   :  { %v1318_v37 = vrot.slane %v1317_v3, 1  ;;  %v1370_v50 = vrot.slane %v1369_v27, 4  ;;  %v1254_v11 = vpop.permute.xlu0 %1253  ;;  %v1160_v20 = vadd.f32 %v1128_v59, %v1114_v14  ;;  %v1323_v31 = vrot.slane %v1322_v7, 2 }
 0x2c8   :  { %v1288_v43 = vmul.f32 %v1254_v11, %v6541_v62  ;;  %v1360_v35 = vrot.slane %v1359_v22, 1  ;;  %v1605_v56 = vsel %vm1588_vm9, %v1604_v40, %v6652_v53  ;;  %v1628_v63 = vrot.slane %v1428_v38, 7 }
 0x2c9   :  { %v1319_v52 = vadd.f32 %v1318_v37, %v1317_v3  ;;  %v1371_v55 = vadd.f32 %v1370_v50, %v1369_v27  ;;  %v1608_v49 = vrot.slane %v1160_v20, 1  ;;  %v1324_v23 = vadd.f32 %v1323_v31, %v1322_v7 }
 0x2ca   :  { %v1376_v12 = vsel %vm948_vm4, %v1288_v43, 0.0  ;;  %v1607_v48 = vsel %vm1591_vm10, %v1606_v58, %v1605_v56  ;;  %v1361_v27 = vadd.f32 %v1360_v35, %v1359_v22  ;;  %v1432_v50 = vadd.f32 %v1416_v32, %v1119_v47 }
 0x2cb   :  { %v1414_v42 = vadd.f32 %v6609_v15, %v1319_v52  ;;  %v1372_v2 = vrot.slane %v1371_v55, 2  ;;  %v1377_v24 = vrot.slane %v1376_v12, 4  ;;  %v1261_v8 = vpop.permute.xlu0 %1260  ;;  %v1325_v18 = vrot.slane %v1324_v23, 1 }
 0x2cc   :  { %v1289_v10 = vmul.f32 %v1261_v8, %v6541_v62  ;;  %v6737_v28 = vsel %vm1594_vm11, %v1608_v49, %v1607_v48  ;;  %v1417_v11 = vadd.f32 %v6609_v15, %v1340_v19  ;;  %v1418_v22 = vadd.f32 %v6609_v15, %v1347_v16 }
 0x2cd   :  { %v1430_v3 = vadd.f32 %v1414_v42, %v1117_v9  ;;  %v1373_v14 = vadd.f32 %v1372_v2, %v1371_v55  ;;  %v1378_v7 = vadd.f32 %v1377_v24, %v1376_v12  ;;  %v1669_v53 = vsel %vm946_vm3, %v6737_v28, 0.0 }
 0x2ce   :  { %v1326_v40 = vadd.f32 %v1325_v18, %v1324_v23  ;;  %v1383_v37 = vsel %vm948_vm4, %v1289_v10, 0.0  ;;  %1670 = vadd.xlane.f32.xlu0 %v1669_v53  ;;  %v1401_v9 = vadd.f32 %v1400_v45, %v1399_v39  ;;  %v1629_v23 = vsel %vm1576_vm5, %v1628_v63, %v6692_v33 }
 0x2cf   :  { %v1374_v20 = vrot.slane %v1373_v14, 1  ;;  %v1379_v58 = vrot.slane %v1378_v7, 2  ;;  %v1384_v38 = vrot.slane %v1383_v37, 4  ;;  %v1268_v31 = vpop.permute.xlu0 %1267  ;;  %v1632_v55 = vrot.slane %v1430_v3, 5 }
 0x2d0   :  { %v1415_v43 = vadd.f32 %v6609_v15, %v1326_v40  ;;  %v1290_v52 = vmul.f32 %v1268_v31, %v6541_v62  ;;  %v1420_v47 = vadd.f32 %v6609_v15, %v1361_v27  ;;  %v1433_v62 = vadd.f32 %v1417_v11, %v1120_v17 }
 0x2d1   :  { %v1380_v49 = vadd.f32 %v1379_v58, %v1378_v7  ;;  %v1385_v35 = vadd.f32 %v1384_v38, %v1383_v37  ;;  %v1375_v19 = vadd.f32 %v1374_v20, %v1373_v14  ;;  %v1402_v16 = vrot.slane %v1401_v9, 1  ;;  %v1824_v58 = vld [vmem:[%s6766_s27] sm:$0xff] }
 0x2d2   :  { %v1431_v32 = vadd.f32 %v1415_v43, %v1118_v1  ;;  %v1390_v39 = vsel %vm948_vm4, %v1290_v52, 0.0  ;;  %v1434_v2 = vadd.f32 %v1418_v22, %v1121_v34  ;;  %v1631_v33 = vsel %vm1579_vm6, %v1630_v41, %v1629_v23  ;;  %v1945_v43 = vld [vmem:[%s6771_s1 + $0x8] sm:$0xff]  ;;  %v1826_v52 = vld [vmem:[%s6766_s27 + $0x10] sm:$0xff] }
 0x2d3   :  { %v1381_v45 = vrot.slane %v1380_v49, 1  ;;  %v1386_v12 = vrot.slane %v1385_v35, 2  ;;  %v1391_v56 = vrot.slane %v1390_v39, 4  ;;  %v1633_v34 = vsel %vm1582_vm7, %v1632_v55, %v1631_v33  ;;  %v1946_v23 = vld [vmem:[%s6771_s1 + $0x10] sm:$0xff] }
 0x2d4   :  { %v1634_v42 = vrot.slane %v1431_v32, 4  ;;  %v1436_v21 = vadd.f32 %v1420_v47, %v1122_v26  ;;  %v1422_v41 = vadd.f32 %v6609_v15, %v1375_v19  ;;  %v1636_v8 = vrot.slane %v1432_v50, 3  ;;  %v1947_v47 = vld [vmem:[%s6771_s1 + $0x18] sm:$0xff] }
 0x2d5   :  { %v1382_v1 = vadd.f32 %v1381_v45, %v1380_v49  ;;  %v1387_v17 = vadd.f32 %v1386_v12, %v1385_v35  ;;  %v1392_v30 = vadd.f32 %v1391_v56, %v1390_v39  ;;  %v1638_v10 = vrot.slane %v1433_v62, 2 }
 0x2d6   :  { %v1635_v24 = vsel %vm1585_vm8, %v1634_v42, %v1633_v34  ;;  %v1403_v3 = vadd.f32 %v1402_v16, %v1401_v9  ;;  %v1640_v7 = vrot.slane %v1434_v2, 1  ;;  %v1437_v26 = vadd.f32 %v6695_v4, %v1123_v57  ;;  %v1825_v57 = vld [vmem:[%s6766_s27 + $0x8] sm:$0xff]  ;;  %v1944_v4 = vld [vmem:[%s6771_s1] sm:$0xff] }
 0x2d7   :  { %v1423_v48 = vadd.f32 %v6609_v15, %v1382_v1  ;;  %v1388_v63 = vrot.slane %v1387_v17, 1  ;;  %v1393_v18 = vrot.slane %v1392_v30, 2  ;;  %v1637_v14 = vsel %vm1588_vm9, %v1636_v8, %v1635_v24 }
 0x2d8   :  { %v1639_v40 = vsel %vm1591_vm10, %v1638_v10, %v1637_v14  ;;  %v1435_v37 = vadd.f32 %v6333_v25, %v6699_v61  ;;  %v1642_v50 = vrot.slane %v1436_v21, 7  ;;  %v1438_v11 = vadd.f32 %v1422_v41, %v1124_v6  ;;  %v1827_v6 = vld [vmem:[%s6766_s27 + $0x18] sm:$0xff] }
 0x2d9   :  { %v1389_v53 = vadd.f32 %v1388_v63, %v1387_v17  ;;  %v1394_v27 = vadd.f32 %v1393_v18, %v1392_v30  ;;  %v6789_v20 = vsel %vm1594_vm11, %v1640_v7, %v1639_v40  ;;  %v1439_v38 = vadd.f32 %v1423_v48, %v1125_v51 }
 0x2da   :  { %v1672_v61 = vsel %vm946_vm3, %v6789_v20, 0.0  ;;  %v1426_v22 = vadd.f32 %v6609_v15, %v1403_v3  ;;  %v5666_v55 = vpack.c.bf16 %v1825_v57, %v1824_v58  ;;  %v5674_v49 = vpack.c.bf16 %v1945_v43, %v1944_v4 }
 0x2db   :  { %v1424_v31 = vadd.f32 %v6609_v15, %v1389_v53  ;;  %v1395_v9 = vrot.slane %v1394_v27, 1  ;;  %1673 = vadd.xlane.f32.xlu1 %v1672_v61  ;;  %v5670_v35 = vpack.c.bf16 %v1827_v6, %v1826_v52  ;;  %v5678_v19 = vpack.c.bf16 %v1947_v47, %v1946_v23  ;;  %v6828_v53 = vld [vmem:[%s6823_s5] ss:$0 sm:$0xff] }
 0x2dc   :  { %v1646_v39 = vrot.slane %v1438_v11, 5  ;;  %v1643_v45 = vsel %vm1576_vm5, %v1642_v50, %v1435_v37  ;;  %5667 = vmatprep.subr.bf16.mxu0 %v5666_v55  ;;  %5675 = vmatprep.subr.bf16.mxu1 %v5674_v49  ;;  %v1644_v12 = vrot.slane %v1437_v26, 6  ;;  %v1648_v56 = vrot.slane %v1439_v38, 4 }
 0x2dd   :  { %v1396_v32 = vadd.f32 %v1395_v9, %v1394_v27  ;;  %v1440_v51 = vadd.f32 %v1424_v31, %v1126_v36  ;;  %5669 = vmatpush3.bf16.msra.mxu0 %v5666_v55  ;;  %5677 = vmatpush3.bf16.msra.mxu1 %v5674_v49  ;;  %v1442_v16 = vadd.f32 %v1426_v22, %v1128_v59 }
 0x2de   :  { %5671 = vmatprep.subr.bf16.mxu0 %v5670_v35  ;;  %5679 = vmatprep.subr.bf16.mxu1 %v5678_v19  ;;  %v1645_v2 = vsel %vm1579_vm6, %v1644_v12, %v1643_v45 }
 0x2df   :  { %v1425_v62 = vadd.f32 %v6609_v15, %v1396_v32  ;;  %v1650_v42 = vrot.slane %v1440_v51, 3  ;;  %v1647_v33 = vsel %vm1582_vm7, %v1646_v39, %v1645_v2  ;;  %v1654_v30 = vrot.slane %v1442_v16, 1 }
 0x2e0   :  { %v1649_v1 = vsel %vm1585_vm8, %v1648_v56, %v1647_v33 }
 0x2e1   :  { %v1441_v36 = vadd.f32 %v1425_v62, %v1127_v44  ;;  %5673 = vmatpush3.bf16.msra.mxu0 %v5670_v35  ;;  %5681 = vmatpush3.bf16.msra.mxu1 %v5678_v19  ;;  %v1651_v15 = vsel %vm1588_vm9, %v1650_v42, %v1649_v1 }
 0x2e3   :  { %v1652_v17 = vrot.slane %v1441_v36, 2 }
 0x2e5   :  { %v1653_v59 = vsel %vm1591_vm10, %v1652_v17, %v1651_v15 }
 0x2e6   :  { %v1655_v34 = vsel %vm1594_vm11, %v1654_v30, %v1653_v59 }
 0x2e7   :  { %v1675_v21 = vsel %vm946_vm3, %v1655_v34, 0.0 }
 0x2e8   :  { %1676 = vadd.xlane.f32.xlu0 %v1675_v21 }
 0x341   :  { %v1775_v25 = vpop.xlane.xlu1 %1774 }
 0x342   :  { %v1789_v44 = vmul.f32 0.03125, %v1775_v25 }
 0x344   :  { %v1795_v41 = vadd.f32 1e-05, %v1789_v44 }
 0x346   :  { %v1772_v24 = vpop.xlane.xlu0 %1771  ;;  %6012 = vrsqrt.f32 %v1795_v41 }
 0x347   :  { %v1788_v8 = vmul.f32 0.03125, %v1772_v24 }
 0x349   :  { %v1794_v48 = vadd.f32 1e-05, %v1788_v8 }
 0x34b   :  { %6014 = vrsqrt.f32 %v1794_v48 }
 0x34f   :  { %v1668_v63 = vpop.xlane.xlu0 %1667 }
 0x350   :  { %v1681_v18 = vmul.f32 0.03125, %v1668_v63  ;;  %v6013_v10 = vpop.eup %6012 }
 0x351   :  { %v1807_v7 = vmul.f32 %v6013_v10, %v6669_v46 }
 0x352   :  { %v1687_v3 = vsub.f32 %v6711_v13, %v1681_v18 }
 0x353   :  { %v1819_v50 = vmul.f32 %v6828_v53, %v1807_v7 }
 0x354   :  { %v1693_v26 = vmul.f32 %v1687_v3, %v1687_v3 }
 0x355   :  { %v6015_v14 = vpop.eup %6014 }
 0x356   :  { %v1806_v27 = vmul.f32 %v6015_v14, %v6681_v0  ;;  %v1703_v40 = vsel %vm946_vm3, %v1693_v26, 0.0 }
 0x357   :  { %1704 = vadd.xlane.f32.xlu1 %v1703_v40 }
 0x358   :  { %v1818_v37 = vmul.f32 %v6828_v53, %v1806_v27 }
 0x35a   :  { %5185 = vmatprep.mubr.msk.f32.mxu0 %vm946_vm3, %v1818_v37  ;;  %5202 = vmatprep.mubr.msk.f32.mxu1 %vm946_vm3, %v1818_v37  ;;  %v6198_v37 = vmov 0.0|0.0  }
 0x35b   :  { %5186 = vmatmul.mubr.msk.f32.vlgmr.msra.gmra.mrb[2].mxu0 %vm946_vm3, %v1819_v50  ;;  %5203 = vmatmul.mubr.msk.f32.vlgmr.msra.gmra.mrb[0].mxu1 %vm946_vm3, %v1819_v50  ;;  %v1671_v13 = vpop.xlane.xlu0 %1670  ;;  %v2061_v50 = vld [vmem:[%s6887_s13] sm:$0xff] }
 0x35c   :  { %v1682_v11 = vmul.f32 0.03125, %v1671_v13  ;;  %5682 = vmatprep.subr.bf16.mxu0 %v6198_v37  ;;  %5694 = vmatprep.subr.bf16.mxu1 %v6198_v37 }
 0x35e   :  { %v1688_v58 = vsub.f32 %v6737_v28, %v1682_v11  ;;  %v2062_v11 = vld [vmem:[%s6887_s13 + $0x8] sm:$0xff] }
 0x360   :  { %v1694_v57 = vmul.f32 %v1688_v58, %v1688_v58 }
 0x362   :  { %v1706_v4 = vsel %vm946_vm3, %v1694_v57, 0.0  ;;  %v2055_v57 = vld [vmem:[%s6882_s9 + $0x18] sm:$0xff] }
 0x363   :  { %1707 = vadd.xlane.f32.xlu0 %v1706_v4  ;;  %v6897_v4 = vpack.c.bf16 %v2062_v11, %v2061_v50 }
 0x365   :  { %5696 = vmatpush3.bf16.msra.mxu1 %v6897_v4 }
 0x366   :  { %5697 = vmatprep.subr.bf16.mxu1 %v6198_v37 }
 0x368   :  { %v1674_v38 = vpop.xlane.xlu1 %1673 }
 0x369   :  { %v1683_v31 = vmul.f32 0.03125, %v1674_v38  ;;  %v2063_v38 = vld [vmem:[%s6887_s13 + $0x10] sm:$0xff] }
 0x36b   :  { %v1689_v9 = vsub.f32 %v6789_v20, %v1683_v31  ;;  %v2064_v31 = vld [vmem:[%s6887_s13 + $0x18] sm:$0xff] }
 0x36d   :  { %v1695_v61 = vmul.f32 %v1689_v9, %v1689_v9 }
 0x36f   :  { %v1709_v43 = vsel %vm946_vm3, %v1695_v61, 0.0  ;;  %v6906_v61 = vpack.c.bf16 %v2064_v31, %v2063_v38 }
 0x370   :  { %1710 = vadd.xlane.f32.xlu1 %v1709_v43  ;;  %v2056_v43 = vld [vmem:[%s6882_s9 + $0x20] sm:$0xff] }
 0x371   :  { %5699 = vmatpush3.bf16.msra.mxu1 %v6906_v61 }
 0x372   :  { %5700 = vmatprep.subr.bf16.mxu1 %v6198_v37 }
 0x375   :  { %v1677_v52 = vpop.xlane.xlu0 %1676 }
 0x376   :  { %v1684_v6 = vmul.f32 0.03125, %v1677_v52  ;;  %v2057_v52 = vld [vmem:[%s6882_s9 + $0x28] sm:$0xff] }
 0x378   :  { %v1690_v22 = vsub.f32 %v1655_v34, %v1684_v6  ;;  %v2065_v6 = vld [vmem:[%s6887_s13 + $0x20] sm:$0xff] }
 0x37a   :  { %v1696_v55 = vmul.f32 %v1690_v22, %v1690_v22 }
 0x37c   :  { %v1712_v49 = vsel %vm946_vm3, %v1696_v55, 0.0  ;;  %v6914_v55 = vpack.c.bf16 %v2057_v52, %v2056_v43 }
 0x37d   :  { %1713 = vadd.xlane.f32.xlu0 %v1712_v49 }
 0x3e4   :  { %v1705_v28 = vpop.xlane.xlu1 %1704 }
 0x3e5   :  { %v1717_v35 = vmul.f32 0.03125, %v1705_v28  ;;  %v2058_v28 = vld [vmem:[%s6882_s9 + $0x30] sm:$0xff] }
 0x3e7   :  { %v1723_v23 = vadd.f32 1e-05, %v1717_v35  ;;  %v2059_v35 = vld [vmem:[%s6882_s9 + $0x38] sm:$0xff] }
 0x3e9   :  { %6016 = vrsqrt.f32 %v1723_v23  ;;  %v2067_v23 = vld [vmem:[%s6887_s13 + $0x30] sm:$0xff] }
 0x3f0   :  { %v1708_v47 = vpop.xlane.xlu0 %1707 }
 0x3f1   :  { %v1718_v32 = vmul.f32 0.03125, %v1708_v47  ;;  %v2068_v47 = vld [vmem:[%s6887_s13 + $0x38] sm:$0xff] }
 0x3f3   :  { %v1724_v51 = vadd.f32 1e-05, %v1718_v32  ;;  %v6017_v19 = vpop.eup %6016  ;;  %v6926_v32 = vpack.c.bf16 %v2059_v35, %v2058_v28 }
 0x3f4   :  { %v1735_v20 = vmul.f32 %v6017_v19, %v1687_v3 }
 0x3f5   :  { %6018 = vrsqrt.f32 %v1724_v51  ;;  %v6930_v51 = vpack.c.bf16 %v2068_v47, %v2067_v23 }
 0x3f6   :  { %v1747_v39 = vmul.f32 %v6649_v5, %v1735_v20 }
 0x3f8   :  { %v6845_v45 = vadd.f32 %v6658_v29, %v1747_v39 }
 0x3fa   :  { %v1766_v12 = vmul.f32 %v6845_v45, %v6845_v45 }
 0x3fc   :  { %v1776_v56 = vsel %vm946_vm3, %v1766_v12, 0.0  ;;  %v4734_v12 = vld [vmem:[%s6940_s17] ss:$0 sm:$0xff] }
 0x3fd   :  { %1777 = vadd.xlane.f32.xlu1 %v1776_v56  ;;  %v1711_v62 = vpop.xlane.xlu1 %1710 }
 0x3fe   :  { %v1719_v42 = vmul.f32 0.03125, %v1711_v62 }
 0x3ff   :  { %v6019_v16 = vpop.eup %6018 }
 0x400   :  { %v1736_v36 = vmul.f32 %v6019_v16, %v1688_v58  ;;  %v1725_v2 = vadd.f32 1e-05, %v1719_v42  ;;  %v2054_v58 = vld [vmem:[%s6882_s9 + $0x10] sm:$0xff]  ;;  %v2050_v42 = vld [vmem:[%s6945_s21] sm:$0x1] }
 0x402   :  { %v1748_v33 = vmul.f32 %v6649_v5, %v1736_v36  ;;  %6020 = vrsqrt.f32 %v1725_v2 }
 0x404   :  { %v6852_v1 = vadd.f32 %v6658_v29, %v1748_v33 }
 0x406   :  { %v1767_v17 = vmul.f32 %v6852_v1, %v6852_v1 }
 0x408   :  { %v1779_v15 = vsel %vm946_vm3, %v1767_v17, 0.0 }
 0x409   :  { %1780 = vadd.xlane.f32.xlu0 %v1779_v15  ;;  %v2051_v15 = vld [vmem:[%s6950_s25] sm:$0x1] }
 0x40a   :  { %v1714_v30 = vpop.xlane.xlu0 %1713 }
 0x40b   :  { %v1720_v59 = vmul.f32 0.03125, %v1714_v30 }
 0x40c   :  { %v6021_v34 = vpop.eup %6020 }
 0x40d   :  { %v1726_v21 = vadd.f32 1e-05, %v1720_v59  ;;  %v1737_v25 = vmul.f32 %v6021_v34, %v1689_v9  ;;  %v6902_v9 = vpack.c.bf16 %v2055_v57, %v2054_v58 }
 0x40f   :  { %6022 = vrsqrt.f32 %v1726_v21  ;;  %v1749_v44 = vmul.f32 %v6649_v5, %v1737_v25 }
 0x411   :  { %v6859_v41 = vadd.f32 %v6658_v29, %v1749_v44 }
 0x413   :  { %v1768_v24 = vmul.f32 %v6859_v41, %v6859_v41 }
 0x415   :  { %v1782_v8 = vsel %vm946_vm3, %v1768_v24, 0.0 }
 0x416   :  { %1783 = vadd.xlane.f32.xlu1 %v1782_v8 }
 0x419   :  { %v6023_v48 = vpop.eup %6022 }
 0x41a   :  { %v1738_v63 = vmul.f32 %v6023_v48, %v1690_v22  ;;  %v2066_v22 = vld [vmem:[%s6887_s13 + $0x28] sm:$0xff] }
 0x41b   :  { %v6918_v49 = vpack.c.bf16 %v2066_v22, %v2065_v6  ;;  %v2069_v6 = vld [vmem:[%s6971_s30] sm:$0xff]  ;;  %v2070_v22 = vld [vmem:[%s6971_s30 + $0x8] sm:$0xff] }
 0x41c   :  { %v1750_v18 = vmul.f32 %v6649_v5, %v1738_v63  ;;  %v2052_v5 = vld [vmem:[%s6882_s9] sm:$0xff]  ;;  %v5707_v23 = vpack.c.bf16 %v2070_v22, %v2069_v6 }
 0x41d   :  { %5702 = vmatpush3.bf16.msra.mxu1 %v6918_v49  ;;  %v2060_v6 = vld [vmem:[%s7057_s11] sm:$0x1] }
 0x41e   :  { %v6866_v10 = vadd.f32 %v6658_v29, %v1750_v18  ;;  %v2053_v29 = vld [vmem:[%s6882_s9 + $0x8] sm:$0xff]  ;;  %5703 = vmatprep.subr.bf16.mxu1 %v6198_v37 }
 0x41f   :  { %v6892_v13 = vpack.c.bf16 %v2053_v29, %v2052_v5 }
 0x420   :  { %v1769_v3 = vmul.f32 %v6866_v10, %v6866_v10 }
 0x421   :  { %5684 = vmatpush3.bf16.msra.mxu0 %v6892_v13  ;;  %5705 = vmatpush3.bf16.msra.mxu1 %v6930_v51 }
 0x422   :  { %v1785_v14 = vsel %vm946_vm3, %v1769_v3, 0.0  ;;  %5685 = vmatprep.subr.bf16.mxu0 %v6198_v37  ;;  %5718 = vmatprep.subr.bf16.mxu1 %v6198_v37 }
 0x423   :  { %1786 = vadd.xlane.f32.xlu0 %v1785_v14 }
 0x425   :  { %5687 = vmatpush3.bf16.msra.mxu0 %v6902_v9 }
 0x426   :  { %5688 = vmatprep.subr.bf16.mxu0 %v6198_v37 }
 0x429   :  { %5690 = vmatpush3.bf16.msra.mxu0 %v6914_v55 }
 0x42a   :  { %5691 = vmatprep.subr.bf16.mxu0 %v6198_v37 }
 0x42d   :  { %5693 = vmatpush3.bf16.msra.mxu0 %v6926_v32 }
 0x42e   :  { %v6871_v7 = vpop.f32.mrb[2].mxu0  ;;  %v6873_v26 = vpop.f32.mrb[0].mxu1  ;;  %5706 = vmatprep.subr.bf16.mxu0 %v6198_v37 }
 0x42f   :  { %v1919_v27 = vpop.f32.mrb[3].mxu0  ;;  %v6875_v40 = vpop.f32.mrb[1].mxu1  ;;  %v1925_v48 = vadd.f32 %v6871_v7, %v4734_v12 }
 0x430   :  { %v1920_v16 = vadd.f32 %v4734_v12, %v1919_v27  ;;  %v2074_v12 = vld [vmem:[%s6971_s30 + $0x28] sm:$0xff] }
 0x431   :  { %v2328_v18 = vmul.f32 %v2050_v42, %v1925_v48 }
 0x432   :  { %v2078_v17 = vmul.f32 %v2050_v42, %v1920_v16 }
 0x433   :  { %v2329_v3 = vadd.f32 %v2328_v18, %v2051_v15 }
 0x434   :  { %v2079_v59 = vadd.f32 %v2078_v17, %v2051_v15 }
 0x435   :  { %v4752_v11 = vmul.f32 -1.442695, %v2329_v3 }
 0x436   :  { %v4748_v34 = vmul.f32 -1.442695, %v2079_v59 }
 0x48a   :  { %v1778_v19 = vpop.xlane.xlu1 %1777 }
 0x48b   :  { %v1790_v20 = vmul.f32 0.03125, %v1778_v19  ;;  %v2072_v19 = vld [vmem:[%s6971_s30 + $0x18] sm:$0xff] }
 0x48d   :  { %v1796_v39 = vadd.f32 1e-05, %v1790_v20 }
 0x48f   :  { %6024 = vrsqrt.f32 %v1796_v39  ;;  %v2073_v39 = vld [vmem:[%s6971_s30 + $0x20] sm:$0xff] }
 0x496   :  { %v1781_v56 = vpop.xlane.xlu0 %1780 }
 0x497   :  { %v1791_v62 = vmul.f32 0.03125, %v1781_v56  ;;  %v5713_v56 = vpack.c.bf16 %v2074_v12, %v2073_v39 }
 0x499   :  { %v1797_v36 = vadd.f32 1e-05, %v1791_v62  ;;  %v6025_v2 = vpop.eup %6024  ;;  %v2076_v62 = vld [vmem:[%s6971_s30 + $0x38] sm:$0xff] }
 0x49a   :  { %v1808_v33 = vmul.f32 %v6025_v2, %v6845_v45 }
 0x49b   :  { %6026 = vrsqrt.f32 %v1797_v36 }
 0x49c   :  { %v1820_v30 = vmul.f32 %v6828_v53, %v1808_v33  ;;  %6028 = vpow2.f32 %v4748_v34 }
 0x49e   :  { %5188 = vmatprep.mubr.msk.f32.mxu0 %vm946_vm3, %v1820_v30  ;;  %5205 = vmatprep.mubr.msk.f32.mxu1 %vm946_vm3, %v1820_v30 }
 0x4a3   :  { %v1784_v21 = vpop.xlane.xlu1 %1783 }
 0x4a4   :  { %v1792_v44 = vmul.f32 0.03125, %v1784_v21 }
 0x4a5   :  { %v6027_v25 = vpop.eup %6026 }
 0x4a6   :  { %v1809_v24 = vmul.f32 %v6027_v25, %v6852_v1  ;;  %v1798_v8 = vadd.f32 1e-05, %v1792_v44  ;;  %v6029_v5 = vpop.eup %6028 }
 0x4a7   :  { %v2083_v57 = vadd.f32 1.0, %v6029_v5  ;;  %v2626_v5 = vld [vmem:[%s7044_s6 + $0x8] sm:$0xff] }
 0x4a8   :  { %v1821_v63 = vmul.f32 %v6828_v53, %v1809_v24  ;;  %6030 = vrsqrt.f32 %v1798_v8 }
 0x4aa   :  { %5189 = vmatmul.mubr.msk.f32.gmra.mrb[4].mxu0 %vm946_vm3, %v1821_v63  ;;  %5206 = vmatmul.mubr.msk.f32.gmra.mrb[2].mxu1 %vm946_vm3, %v1821_v63 }
 0x4b0   :  { %v1787_v14 = vpop.xlane.xlu0 %1786 }
 0x4b1   :  { %v1793_v27 = vmul.f32 0.03125, %v1787_v14 }
 0x4b2   :  { %v6031_v29 = vpop.eup %6030 }
 0x4b3   :  { %v1799_v50 = vadd.f32 1e-05, %v1793_v27  ;;  %v1810_v58 = vmul.f32 %v6031_v29, %v6859_v41  ;;  %v2625_v27 = vld [vmem:[%s7044_s6] sm:$0xff]  ;;  %v2627_v29 = vld [vmem:[%s7044_s6 + $0x10] sm:$0xff] }
 0x4b5   :  { %6032 = vrsqrt.f32 %v1799_v50  ;;  %v1822_v7 = vmul.f32 %v6828_v53, %v1810_v58  ;;  %v5754_v50 = vpack.c.bf16 %v2626_v5, %v2625_v27 }
 0x4b6   :  { %6034 = vpow2.f32 %v4752_v11  ;;  %v2628_v11 = vld [vmem:[%s7044_s6 + $0x18] sm:$0xff] }
 0x4b7   :  { %5191 = vmatprep.mubr.msk.f32.mxu0 %vm946_vm3, %v1822_v7  ;;  %5208 = vmatprep.mubr.msk.f32.mxu1 %vm946_vm3, %v1822_v7  ;;  %6036 = vrcp.f32 %v2083_v57  ;;  %v5758_v58 = vpack.c.bf16 %v2628_v11, %v2627_v29  ;;  %v2629_v57 = vld [vmem:[%s7044_s6 + $0x20] sm:$0xff]  ;;  %v2630_v7 = vld [vmem:[%s7044_s6 + $0x28] sm:$0xff] }
 0x4bf   :  { %v6033_v38 = vpop.eup %6032 }
 0x4c0   :  { %v1811_v31 = vmul.f32 %v6033_v38, %v6866_v10  ;;  %v6035_v43 = vpop.eup %6034  ;;  %v2631_v38 = vld [vmem:[%s7044_s6 + $0x30] sm:$0xff] }
 0x4c1   :  { %v6037_v28 = vpop.eup %6036  ;;  %v2333_v35 = vadd.f32 1.0, %v6035_v43  ;;  %v2632_v43 = vld [vmem:[%s7044_s6 + $0x38] sm:$0xff] }
 0x4c2   :  { %v1823_v52 = vmul.f32 %v6828_v53, %v1811_v31  ;;  %v6983_v47 = vmul.f32 %v6037_v28, %v2079_v59  ;;  %v2071_v53 = vld [vmem:[%s6971_s30 + $0x10] sm:$0xff]  ;;  %v5762_v31 = vpack.c.bf16 %v2630_v7, %v2629_v57 }
 0x4c3   :  { %6038 = vrcp.f32 %v2333_v35  ;;  %v5710_v20 = vpack.c.bf16 %v2072_v19, %v2071_v53  ;;  %v4741_v19 = vld [vmem:[%s7063_s16] ss:$0 sm:$0xff] }
 0x4c4   :  { %5192 = vmatmul.mubr.msk.f32.gmra.mrb[6].mxu0 %vm946_vm3, %v1823_v52  ;;  %5209 = vmatmul.mubr.msk.f32.gmra.mrb[4].mxu1 %vm946_vm3, %v1823_v52  ;;  %v5766_v52 = vpack.c.bf16 %v2632_v43, %v2631_v38 }
 0x4c5   :  { %5227 = vmatprep.mubr.msk.f32.mxu0 %vm6205_vm12, %v6185_v60  ;;  %5246 = vmatprep.mubr.msk.f32.mxu1 %vm6205_vm12, %v6185_v60 }
 0x4c8   :  { %5228 = vmatmul.mubr.msk.f32.vlgmr.msra.gmra.mrb[8].mxu0 %vm178_vm0, %v6983_v47  ;;  %5247 = vmatmul.mubr.msk.f32.vlgmr.msra.gmra.mrb[6].mxu1 %vm178_vm0, %v6983_v47 }
 0x4c9   :  { %5708 = vmatpush3.bf16.msra.mxu0 %v5707_v23  ;;  %5720 = vmatpush3.bf16.msra.mxu1 %v6892_v13  ;;  %v2075_v13 = vld [vmem:[%s6971_s30 + $0x30] sm:$0xff] }
 0x4ca   :  { %5709 = vmatprep.subr.bf16.mxu0 %v6198_v37  ;;  %5721 = vmatprep.subr.bf16.mxu1 %v6198_v37  ;;  %v5716_v16 = vpack.c.bf16 %v2076_v62, %v2075_v13 }
 0x4cb   :  { %5265 = vmatprep.mubr.msk.f32.mxu0 %vm6205_vm12, %v6185_v60  ;;  %5284 = vmatprep.mubr.msk.f32.mxu1 %vm6205_vm12, %v6185_v60 }
 0x4cd   :  { %5711 = vmatpush3.bf16.msra.mxu0 %v5710_v20  ;;  %5723 = vmatpush3.bf16.msra.mxu1 %v6902_v9  ;;  %v6039_v42 = vpop.eup %6038 }
 0x4ce   :  { %5712 = vmatprep.subr.bf16.mxu0 %v6198_v37  ;;  %5724 = vmatprep.subr.bf16.mxu1 %v6198_v37  ;;  %v7009_v9 = vmul.f32 %v6039_v42, %v2329_v3 }
 0x4d1   :  { %5714 = vmatpush3.bf16.msra.mxu0 %v5713_v56  ;;  %5726 = vmatpush3.bf16.msra.mxu1 %v6914_v55 }
 0x4d2   :  { %5715 = vmatprep.subr.bf16.mxu0 %v6198_v37  ;;  %5727 = vmatprep.subr.bf16.mxu1 %v6198_v37 }
 0x4d5   :  { %5717 = vmatpush3.bf16.msra.mxu0 %v5716_v16  ;;  %5729 = vmatpush3.bf16.msra.mxu1 %v6926_v32 }
 0x4d6   :  { %5730 = vmatprep.subr.bf16.mxu0 %v6198_v37  ;;  %5742 = vmatprep.subr.bf16.mxu1 %v6198_v37 }
 0x4d8   :  { %5266 = vmatmul.mubr.msk.f32.vlgmr.msra.gmra.mrb[10].mxu0 %vm178_vm0, %v6983_v47  ;;  %5285 = vmatmul.mubr.msk.f32.vlgmr.msra.gmra.mrb[8].mxu1 %vm178_vm0, %v7009_v9 }
 0x4d9   :  { %5732 = vmatpush3.bf16.msra.mxu0 %v6897_v4  ;;  %5744 = vmatpush3.bf16.msra.mxu1 %v5707_v23 }
 0x4da   :  { %5733 = vmatprep.subr.bf16.mxu0 %v6198_v37  ;;  %5745 = vmatprep.subr.bf16.mxu1 %v6198_v37 }
 0x4db   :  { %5303 = vmatprep.mubr.msk.f32.mxu0 %vm6205_vm12, %v6185_v60  ;;  %5322 = vmatprep.mubr.msk.f32.mxu1 %vm6205_vm12, %v6185_v60 }
 0x4dd   :  { %5735 = vmatpush3.bf16.msra.mxu0 %v6906_v61  ;;  %5747 = vmatpush3.bf16.msra.mxu1 %v5710_v20  ;;  %v7069_v20 = vadd.f32 %v4741_v19, %v6875_v40  ;;  %v7080_v40 = vadd.f32 %v6873_v26, %v4741_v19 }
 0x4de   :  { %5736 = vmatprep.subr.bf16.mxu0 %v6198_v37  ;;  %5748 = vmatprep.subr.bf16.mxu1 %v6198_v37 }
 0x4df   :  { %v4756_v13 = vmul.f32 -1.442695, %v7069_v20 }
 0x4e1   :  { %5738 = vmatpush3.bf16.msra.mxu0 %v6918_v49  ;;  %5750 = vmatpush3.bf16.msra.mxu1 %v5713_v56 }
 0x4e2   :  { %5739 = vmatprep.subr.bf16.mxu0 %v6198_v37  ;;  %5751 = vmatprep.subr.bf16.mxu1 %v6198_v37 }
 0x4e5   :  { %5741 = vmatpush3.bf16.msra.mxu0 %v6930_v51  ;;  %5753 = vmatpush3.bf16.msra.mxu1 %v5716_v16 }
 0x4e6   :  { %5755 = vmatprep.subr.bf16.mxu0 %v5754_v50 }
 0x4e8   :  { %5304 = vmatmul.mubr.msk.f32.vlgmr.msra.gmra.mrb[12].mxu0 %vm178_vm0, %v7009_v9  ;;  %5323 = vmatmul.mubr.msk.f32.vlgmr.msra.gmra.mrb[10].mxu1 %vm178_vm0, %v7009_v9 }
 0x4e9   :  { %5757 = vmatpush3.bf16.msra.mxu0 %v5754_v50  ;;  %v2077_v50 = vld [vmem:[%s7094_s22] sm:$0x1] }
 0x4ea   :  { %5759 = vmatprep.subr.bf16.mxu0 %v5758_v58 }
 0x4ed   :  { %5761 = vmatpush3.bf16.msra.mxu0 %v5758_v58 }
 0x4ee   :  { %5763 = vmatprep.subr.bf16.mxu0 %v5762_v31 }
 0x4f1   :  { %5765 = vmatpush3.bf16.msra.mxu0 %v5762_v31 }
 0x4f2   :  { %5767 = vmatprep.subr.bf16.mxu0 %v5766_v52 }
 0x4f5   :  { %5769 = vmatpush3.bf16.msra.mxu0 %v5766_v52  ;;  %v2322_v52 = vmul.f32 %v6983_v47, %v2077_v50 }
 0x57d   :  { %v5190_v4 = vpop.f32.mrb[4].mxu0  ;;  %v7035_v61 = vpop.f32.mrb[2].mxu1 }
 0x57e   :  { %v1929_v55 = vpop.f32.mrb[5].mxu0  ;;  %v2031_v32 = vpop.f32.mrb[3].mxu1 }
 0x57f   :  { %v7072_v12 = vadd.f32 %v4741_v19, %v2031_v32 }
 0x581   :  { %v4758_v42 = vmul.f32 -1.442695, %v7072_v12 }
 0x597   :  { %v5193_v49 = vpop.f32.mrb[6].mxu0  ;;  %v7037_v36 = vpop.f32.mrb[4].mxu1 }
 0x598   :  { %v1937_v2 = vpop.f32.mrb[7].mxu0  ;;  %v2041_v33 = vpop.f32.mrb[5].mxu1 }
 0x599   :  { %v7074_v56 = vadd.f32 %v4741_v19, %v2041_v33  ;;  %v7083_v2 = vadd.f32 %v7035_v61, %v4741_v19 }
 0x59b   :  { %v2156_v17 = vpop.f32.mrb[8].mxu0  ;;  %v2241_v15 = vpop.f32.mrb[6].mxu1  ;;  %v4760_v4 = vmul.f32 -1.442695, %v7074_v56 }
 0x59c   :  { %v5229_v51 = vpop.f32.mrb[9].mxu0  ;;  %v5248_v30 = vpop.f32.mrb[7].mxu1  ;;  %v2157_v22 = vadd.f32 %v2156_v17, %v2060_v6  ;;  %v4757_v17 = vmul.f32 -1.442695, %v7080_v40 }
 0x59e   :  { %v2161_v28 = vand.u32 2147483647, %v2157_v22 }
 0x5a0   :  { %v2162_v35 = vsub.f32 0.0, %v2161_v28 }
 0x5a2   :  { %v2163_v23 = vmul.f32 1.442695, %v2162_v35 }
 0x5a4   :  { %6040 = vpow2.f32 %v2163_v23 }
 0x5a5   :  { %6042 = vpow2.f32 %v4756_v13 }
 0x5a6   :  { %6044 = vpow2.f32 %v4758_v42 }
 0x5a7   :  { %6046 = vpow2.f32 %v4760_v4 }
 0x5ab   :  { %v2311_v59 = vpop.f32.mrb[10].mxu0  ;;  %v2406_v34 = vpop.f32.mrb[8].mxu1 }
 0x5ac   :  { %v2315_v21 = vmul.f32 %v2311_v59, %v2241_v15  ;;  %v5267_v25 = vpop.f32.mrb[11].mxu0  ;;  %v5286_v44 = vpop.f32.mrb[9].mxu1  ;;  %v7065_v53 = vadd.f32 %v2406_v34, %v2060_v6  ;;  %v7087_v15 = vadd.f32 %v7037_v36, %v4741_v19 }
 0x5ae   :  { %v2317_v24 = vsel %vm2316_vm13, %v2315_v21, 0.0  ;;  %v2411_v39 = vand.u32 2147483647, %v7065_v53  ;;  %v6041_v16 = vpop.eup %6040  ;;  %v4759_v21 = vmul.f32 -1.442695, %v7083_v2 }
 0x5af   :  { %2318 = vadd.xlane.f32.xlu1 %v2317_v24  ;;  %v2165_v49 = vadd.f32 1.0, %v6041_v16  ;;  %v6043_v32 = vpop.eup %6042  ;;  %v2168_v51 = vmul.f32 -0.5, %v6041_v16  ;;  %v4761_v26 = vmul.f32 -1.442695, %v7087_v15  ;;  %v2171_v61 = vand.u32 2147483647, %v6041_v16 }
 0x5b0   :  { %v2412_v62 = vsub.f32 0.0, %v2411_v39  ;;  %v6045_v33 = vpop.eup %6044  ;;  %v2595_v59 = vadd.f32 1.0, %v6043_v32 }
 0x5b1   :  { %v6047_v30 = vpop.eup %6046  ;;  %v2597_v44 = vadd.f32 1.0, %v6045_v33  ;;  %v2169_v24 = vadd.f32 1.0, %v2168_v51  ;;  %vm2172_vm14 = vcmp.lt.f32.partialorder %v2171_v61, 0.0004427343 }
 0x5b2   :  { %v2413_v55 = vmul.f32 1.442695, %v2412_v62 }
 0x5b3   :  { %v2170_v36 = vmul.f32 %v6041_v16, %v2169_v24 }
 0x5b4   :  { %6048 = vpow2.f32 %v2413_v55 }
 0x5b5   :  { %6050 = vlog2.f32 %v2165_v49 }
 0x5b6   :  { %6052 = vpow2.f32 %v4757_v17  ;;  %v2410_v17 = vmax.f32 %v7065_v53, 0.0 }
 0x5b7   :  { %6054 = vrcp.f32 %v2595_v59  ;;  %v2571_v59 = vmul.f32 %v7009_v9, %v2077_v50 }
 0x5b8   :  { %6056 = vpow2.f32 %v4759_v21 }
 0x5b9   :  { %6058 = vrcp.f32 %v2597_v44 }
 0x5ba   :  { %6060 = vpow2.f32 %v4761_v26 }
 0x5bb   :  { %v2491_v8 = vpop.f32.mrb[12].mxu0  ;;  %v2561_v48 = vpop.f32.mrb[10].mxu1 }
 0x5bc   :  { %v2565_v63 = vmul.f32 %v2561_v48, %v2491_v8  ;;  %v5305_v18 = vpop.f32.mrb[13].mxu0  ;;  %v5324_v3 = vpop.f32.mrb[11].mxu1  ;;  %v2599_v48 = vadd.f32 1.0, %v6047_v30 }
 0x5bd   :  { %v2160_v3 = vmax.f32 %v2157_v22, 0.0 }
 0x5be   :  { %v2566_v14 = vsel %vm2316_vm13, %v2565_v63, 0.0  ;;  %v6049_v34 = vpop.eup %6048 }
 0x5bf   :  { %2567 = vadd.xlane.f32.xlu0 %v2566_v14  ;;  %v6051_v25 = vpop.eup %6050  ;;  %v2415_v8 = vadd.f32 1.0, %v6049_v34  ;;  %v2418_v11 = vmul.f32 -0.5, %v6049_v34  ;;  %v2421_v19 = vand.u32 2147483647, %v6049_v34 }
 0x5c0   :  { %v2167_v63 = vmul.f32 0.6931472, %v6051_v25  ;;  %v6053_v27 = vpop.eup %6052 }
 0x5c1   :  { %6062 = vlog2.f32 %v2415_v8  ;;  %v6055_v5 = vpop.eup %6054  ;;  %v2596_v38 = vadd.f32 1.0, %v6053_v27  ;;  %v2419_v23 = vadd.f32 1.0, %v2418_v11  ;;  %vm2422_vm15 = vcmp.lt.f32.partialorder %v2421_v19, 0.0004427343 }
 0x5c2   :  { %6064 = vrcp.f32 %v2599_v48  ;;  %v2173_v18 = vsel %vm2172_vm14, %v2170_v36, %v2167_v63  ;;  %v6057_v29 = vpop.eup %6056  ;;  %v2613_v62 = vmul.f32 %v6055_v5, %v7069_v20 }
 0x5c3   :  { %v2174_v14 = vadd.f32 %v2173_v18, %v2160_v3  ;;  %v6059_v58 = vpop.eup %6058  ;;  %v2598_v35 = vadd.f32 1.0, %v6057_v29  ;;  %6066 = vrcp.f32 %v2596_v38  ;;  %v2420_v55 = vmul.f32 %v6049_v34, %v2419_v23 }
 0x5c4   :  { %v6061_v7 = vpop.eup %6060  ;;  %v2615_v16 = vmul.f32 %v6059_v58, %v7072_v12 }
 0x5c5   :  { %v2320_v57 = vmul.f32 %v2174_v14, %v6983_v47  ;;  %v2600_v39 = vadd.f32 1.0, %v6061_v7  ;;  %6068 = vrcp.f32 %v2598_v35 }
 0x5c7   :  { %6070 = vrcp.f32 %v2600_v39 }
 0x5cb   :  { %v6063_v43 = vpop.eup %6062 }
 0x5cc   :  { %v6065_v28 = vpop.eup %6064  ;;  %v2417_v13 = vmul.f32 0.6931472, %v6063_v43 }
 0x5cd   :  { %v2617_v42 = vmul.f32 %v6065_v28, %v7074_v56  ;;  %v6067_v20 = vpop.eup %6066 }
 0x5ce   :  { %v2423_v33 = vsel %vm2422_vm15, %v2420_v55, %v2417_v13  ;;  %v2614_v44 = vmul.f32 %v6067_v20, %v7080_v40  ;;  %v4768_v40 = vld [vmem:[%s7119_s28] ss:$0 sm:$0xff]  ;;  %v2872_v55 = vld [vmem:[%s7167_s4 + $0x18] sm:$0xff] }
 0x5cf   :  { %v2424_v51 = vadd.f32 %v2423_v33, %v2410_v17  ;;  %v6069_v30 = vpop.eup %6068 }
 0x5d0   :  { %v2616_v26 = vmul.f32 %v6069_v30, %v7083_v2 }
 0x5d1   :  { %v2569_v12 = vmul.f32 %v2424_v51, %v7009_v9  ;;  %v6071_v34 = vpop.eup %6070 }
 0x5d2   :  { %v2618_v24 = vmul.f32 %v6071_v34, %v7087_v15 }
 0x63c   :  { %v2319_v31 = vpop.xlane.xlu1 %2318 }
 0x63d   :  { %v2321_v6 = vmul.f32 %v2320_v57, %v2319_v31 }
 0x63f   :  { %v2323_v22 = vadd.f32 %v2322_v52, %v2321_v6 }
 0x641   :  { %v2327_v4 = vrot.slane %v2323_v22, %v6278_v54 }
 0x643   :  { %v2619_v47 = vmul.f32 %v2613_v62, %v2327_v4  ;;  %v2621_v49 = vmul.f32 %v2615_v16, %v2327_v4  ;;  %v2623_v32 = vmul.f32 %v2617_v42, %v2327_v4  ;;  %v2869_v62 = vld [vmem:[%s7167_s4] sm:$0xff]  ;;  %v2870_v16 = vld [vmem:[%s7167_s4 + $0x8] sm:$0xff]  ;;  %v2871_v42 = vld [vmem:[%s7167_s4 + $0x10] sm:$0xff] }
 0x644   :  { %v5770_v4 = vpack.c.bf16 %v2870_v16, %v2869_v62  ;;  %v3032_v62 = vld [vmem:[%s7224_s26 + $0x48] sm:$0xff] }
 0x645   :  { %5341 = vmatprep.mubr.msk.f32.mxu0 %vm178_vm0, %v2619_v47  ;;  %v5774_v47 = vpack.c.bf16 %v2872_v55, %v2871_v42  ;;  %v3033_v42 = vld [vmem:[%s7224_s26 + $0x50] sm:$0xff] }
 0x646   :  { %5771 = vmatprep.subr.bf16.mxu1 %v5770_v4 }
 0x647   :  { %5773 = vmatpush3.bf16.msra.mxu1 %v5770_v4  ;;  %v3034_v4 = vld [vmem:[%s7224_s26 + $0x58] sm:$0xff] }
 0x648   :  { %5775 = vmatprep.subr.bf16.mxu1 %v5774_v47  ;;  %v5798_v55 = vpack.c.bf16 %v3034_v4, %v3033_v42 }
 0x64b   :  { %5777 = vmatpush3.bf16.msra.mxu1 %v5774_v47  ;;  %v3035_v47 = vld [vmem:[%s7224_s26 + $0x60] sm:$0xff] }
 0x64c   :  { %v2568_v56 = vpop.xlane.xlu0 %2567 }
 0x64d   :  { %v2570_v21 = vmul.f32 %v2569_v12, %v2568_v56 }
 0x64f   :  { %v2572_v25 = vadd.f32 %v2571_v59, %v2570_v21 }
 0x651   :  { %v2576_v53 = vrot.slane %v2572_v25, %v6278_v54 }
 0x653   :  { %v2620_v61 = vmul.f32 %v2614_v44, %v2576_v53  ;;  %v2622_v8 = vmul.f32 %v2616_v26, %v2576_v53  ;;  %v2624_v48 = vmul.f32 %v2618_v24, %v2576_v53 }
 0x655   :  { %5342 = vmatmul.mubr.msk.f32.vlgmr.msra.gmra.mrb[14].mxu0 %vm178_vm0, %v2620_v61 }
 0x656   :  { %5344 = vmatprep.mubr.msk.f32.mxu0 %vm178_vm0, %v2621_v49 }
 0x659   :  { %5345 = vmatmul.mubr.msk.f32.gmra.mrb[16].mxu0 %vm178_vm0, %v2622_v8 }
 0x65a   :  { %5347 = vmatprep.mubr.msk.f32.mxu0 %vm178_vm0, %v2623_v32 }
 0x65d   :  { %5348 = vmatmul.mubr.msk.f32.gmra.mrb[18].mxu0 %vm178_vm0, %v2624_v48 }
 0x728   :  { %v5343_v9 = vpop.f32.mrb[14].mxu0 }
 0x729   :  { %v2747_v2 = vadd.f32 %v5343_v9, %v6669_v46  ;;  %v2717_v15 = vpop.f32.mrb[15].mxu0 }
 0x72a   :  { %v2746_v63 = vadd.f32 %v2717_v15, %v6681_v0 }
 0x72b   :  { %v7124_v36 = vadd.f32 %v4768_v40, %v2747_v2 }
 0x72c   :  { %v7126_v18 = vadd.f32 %v4768_v40, %v2746_v63  ;;  %v5346_v3 = vpop.f32.mrb[16].mxu0 }
 0x72d   :  { %v2749_v14 = vadd.f32 %v5346_v3, %v6852_v1  ;;  %v2727_v27 = vpop.f32.mrb[17].mxu0  ;;  %v2770_v5 = vsel %vm946_vm3, %v7124_v36, 0.0 }
 0x72e   :  { %v2748_v29 = vadd.f32 %v2727_v27, %v6845_v45  ;;  %2771 = vadd.xlane.f32.xlu0 %v2770_v5  ;;  %v2767_v46 = vsel %vm946_vm3, %v7126_v18, 0.0 }
 0x72f   :  { %v7134_v50 = vadd.f32 %v4768_v40, %v2749_v14  ;;  %2768 = vadd.xlane.f32.xlu1 %v2767_v46  ;;  %v7207_v14 = vld [vmem:[%s7179_s12] ss:$0 sm:$0xff] }
 0x730   :  { %v7136_v0 = vadd.f32 %v4768_v40, %v2748_v29  ;;  %v5349_v11 = vpop.f32.mrb[18].mxu0 }
 0x731   :  { %v2751_v58 = vadd.f32 %v5349_v11, %v6866_v10  ;;  %v2737_v57 = vpop.f32.mrb[19].mxu0  ;;  %v2776_v22 = vsel %vm946_vm3, %v7134_v50, 0.0  ;;  %v7213_v11 = vld [vmem:[%s7191_s19] ss:$0 sm:$0xff] }
 0x732   :  { %v2750_v1 = vadd.f32 %v2737_v57, %v6859_v41  ;;  %v2773_v19 = vsel %vm946_vm3, %v7136_v0, 0.0 }
 0x733   :  { %v7140_v7 = vadd.f32 %v4768_v40, %v2751_v58 }
 0x734   :  { %v7142_v38 = vadd.f32 %v4768_v40, %v2750_v1 }
 0x735   :  { %v2782_v39 = vsel %vm946_vm3, %v7140_v7, 0.0 }
 0x736   :  { %v2779_v13 = vsel %vm946_vm3, %v7142_v38, 0.0 }
 0x7bb   :  { %v2772_v45 = vpop.xlane.xlu0 %2771 }
 0x7bc   :  { %v2786_v31 = vmul.f32 0.03125, %v2772_v45  ;;  %v2769_v43 = vpop.xlane.xlu1 %2768 }
 0x7bd   :  { %v2785_v52 = vmul.f32 0.03125, %v2769_v43  ;;  %v3024_v43 = vld [vmem:[%s7224_s26 + $0x8] sm:$0xff] }
 0x7be   :  { %v7145_v6 = vsub.f32 %v7124_v36, %v2786_v31  ;;  %v3023_v31 = vld [vmem:[%s7224_s26] sm:$0xff] }
 0x7bf   :  { %v7148_v28 = vsub.f32 %v7126_v18, %v2785_v52  ;;  %v3025_v52 = vld [vmem:[%s7224_s26 + $0x10] sm:$0xff] }
 0x7c0   :  { %v2798_v10 = vmul.f32 %v7145_v6, %v7145_v6 }
 0x7c1   :  { %v2797_v41 = vmul.f32 %v7148_v28, %v7148_v28 }
 0x7c2   :  { %v2806_v35 = vsel %vm946_vm3, %v2798_v10, 0.0 }
 0x7c3   :  { %2807 = vadd.xlane.f32.xlu0 %v2806_v35  ;;  %v2803_v23 = vsel %vm946_vm3, %v2797_v41, 0.0  ;;  %v3027_v41 = vld [vmem:[%s7224_s26 + $0x20] sm:$0xff]  ;;  %v3028_v35 = vld [vmem:[%s7224_s26 + $0x28] sm:$0xff] }
 0x7c4   :  { %2804 = vadd.xlane.f32.xlu1 %v2803_v23  ;;  %v5786_v23 = vpack.c.bf16 %v3028_v35, %v3027_v41 }
 0x7c7   :  { %2777 = vadd.xlane.f32.xlu0 %v2776_v22  ;;  %v3029_v22 = vld [vmem:[%s7224_s26 + $0x30] sm:$0xff] }
 0x7c8   :  { %2774 = vadd.xlane.f32.xlu1 %v2773_v19  ;;  %v3030_v19 = vld [vmem:[%s7224_s26 + $0x38] sm:$0xff] }
 0x7cb   :  { %2783 = vadd.xlane.f32.xlu0 %v2782_v39  ;;  %v5790_v39 = vpack.c.bf16 %v3030_v19, %v3029_v22 }
 0x7cc   :  { %2780 = vadd.xlane.f32.xlu1 %v2779_v13  ;;  %v3031_v13 = vld [vmem:[%s7224_s26 + $0x40] sm:$0xff] }
 0x7cd   :  { %v5794_v16 = vpack.c.bf16 %v3032_v62, %v3031_v13 }
 0x850   :  { %v2808_v49 = vpop.xlane.xlu0 %2807 }
 0x851   :  { %v2822_v32 = vmul.f32 0.03125, %v2808_v49  ;;  %v2805_v33 = vpop.xlane.xlu1 %2804  ;;  %v3036_v49 = vld [vmem:[%s7224_s26 + $0x68] sm:$0xff] }
 0x852   :  { %v2821_v17 = vmul.f32 0.03125, %v2805_v33  ;;  %v3037_v33 = vld [vmem:[%s7224_s26 + $0x70] sm:$0xff] }
 0x853   :  { %v2828_v51 = vadd.f32 1e-05, %v2822_v32  ;;  %v5802_v32 = vpack.c.bf16 %v3036_v49, %v3035_v47 }
 0x854   :  { %v2827_v20 = vadd.f32 1e-05, %v2821_v17  ;;  %v2778_v12 = vpop.xlane.xlu0 %2777  ;;  %v3038_v17 = vld [vmem:[%s7224_s26 + $0x78] sm:$0xff] }
 0x855   :  { %6072 = vrsqrt.f32 %v2828_v51  ;;  %v2788_v30 = vmul.f32 0.03125, %v2778_v12  ;;  %v2775_v56 = vpop.xlane.xlu1 %2774  ;;  %v5806_v51 = vpack.c.bf16 %v3038_v17, %v3037_v33 }
 0x856   :  { %6074 = vrsqrt.f32 %v2827_v20  ;;  %v2787_v59 = vmul.f32 0.03125, %v2775_v56 }
 0x857   :  { %v7174_v21 = vsub.f32 %v7134_v50, %v2788_v30 }
 0x858   :  { %v7182_v34 = vsub.f32 %v7136_v0, %v2787_v59  ;;  %v2784_v25 = vpop.xlane.xlu0 %2783 }
 0x859   :  { %v2790_v44 = vmul.f32 0.03125, %v2784_v25  ;;  %v2781_v26 = vpop.xlane.xlu1 %2780  ;;  %v2800_v24 = vmul.f32 %v7174_v21, %v7174_v21 }
 0x85a   :  { %v2789_v53 = vmul.f32 0.03125, %v2781_v26  ;;  %v2799_v61 = vmul.f32 %v7182_v34, %v7182_v34 }
 0x85b   :  { %v7194_v8 = vsub.f32 %v7140_v7, %v2790_v44  ;;  %v2812_v48 = vsel %vm946_vm3, %v2800_v24, 0.0 }
 0x85c   :  { %v7198_v9 = vsub.f32 %v7142_v38, %v2789_v53  ;;  %2813 = vadd.xlane.f32.xlu0 %v2812_v48  ;;  %v2809_v40 = vsel %vm946_vm3, %v2799_v61, 0.0 }
 0x85d   :  { %2810 = vadd.xlane.f32.xlu1 %v2809_v40  ;;  %v2802_v2 = vmul.f32 %v7194_v8, %v7194_v8 }
 0x85e   :  { %v2801_v15 = vmul.f32 %v7198_v9, %v7198_v9 }
 0x85f   :  { %v6073_v63 = vpop.eup %6072  ;;  %v2818_v3 = vsel %vm946_vm3, %v2802_v2, 0.0 }
 0x860   :  { %v6075_v27 = vpop.eup %6074  ;;  %v2840_v5 = vmul.f32 %v6073_v63, %v7145_v6  ;;  %2819 = vadd.xlane.f32.xlu0 %v2818_v3  ;;  %v2815_v29 = vsel %vm946_vm3, %v2801_v15, 0.0  ;;  %v5778_v6 = vpack.c.bf16 %v3024_v43, %v3023_v31 }
 0x861   :  { %2816 = vadd.xlane.f32.xlu1 %v2815_v29  ;;  %v2839_v46 = vmul.f32 %v6075_v27, %v7148_v28  ;;  %v3026_v28 = vld [vmem:[%s7224_s26 + $0x18] sm:$0xff] }
 0x862   :  { %v2852_v58 = vmul.f32 %v7207_v14, %v2840_v5  ;;  %v5782_v10 = vpack.c.bf16 %v3026_v28, %v3025_v52  ;;  %5779 = vmatprep.subr.bf16.mxu1 %v5778_v6 }
 0x863   :  { %v2851_v57 = vmul.f32 %v7207_v14, %v2839_v46 }
 0x864   :  { %v2864_v45 = vadd.f32 %v7213_v11, %v2852_v58 }
 0x865   :  { %v2863_v1 = vadd.f32 %v7213_v11, %v2851_v57 }
 0x867   :  { %5358 = vmatprep.mubr.msk.f32.mxu1 %vm946_vm3, %v2863_v1 }
 0x868   :  { %5359 = vmatmul.mubr.msk.f32.vlgmr.msra.gmra.mrb[12].mxu1 %vm946_vm3, %v2864_v45 }
 0x869   :  { %5781 = vmatpush3.bf16.msra.mxu1 %v5778_v6 }
 0x86a   :  { %5783 = vmatprep.subr.bf16.mxu1 %v5782_v10 }
 0x86d   :  { %5785 = vmatpush3.bf16.msra.mxu1 %v5782_v10 }
 0x86e   :  { %5787 = vmatprep.subr.bf16.mxu1 %v5786_v23 }
 0x871   :  { %5789 = vmatpush3.bf16.msra.mxu1 %v5786_v23 }
 0x872   :  { %5791 = vmatprep.subr.bf16.mxu1 %v5790_v39 }
 0x875   :  { %5793 = vmatpush3.bf16.msra.mxu1 %v5790_v39 }
 0x876   :  { %5795 = vmatprep.subr.bf16.mxu1 %v5794_v16 }
 0x879   :  { %5797 = vmatpush3.bf16.msra.mxu1 %v5794_v16 }
 0x87a   :  { %5799 = vmatprep.subr.bf16.mxu1 %v5798_v55 }
 0x87d   :  { %5801 = vmatpush3.bf16.msra.mxu1 %v5798_v55 }
 0x87e   :  { %5803 = vmatprep.subr.bf16.mxu1 %v5802_v32 }
 0x881   :  { %5805 = vmatpush3.bf16.msra.mxu1 %v5802_v32 }
 0x882   :  { %5807 = vmatprep.subr.bf16.mxu1 %v5806_v51 }
 0x885   :  { %5809 = vmatpush3.bf16.msra.mxu1 %v5806_v51 }
 0x886   :  { %5838 = vmatprep.subr.bf16.mxu1 %v6198_v37 }
 0x8e9   :  { %v2814_v20 = vpop.xlane.xlu0 %2813 }
 0x8ea   :  { %v2824_v12 = vmul.f32 0.03125, %v2814_v20  ;;  %v2811_v30 = vpop.xlane.xlu1 %2810 }
 0x8eb   :  { %v2823_v56 = vmul.f32 0.03125, %v2811_v30 }
 0x8ec   :  { %v2830_v59 = vadd.f32 1e-05, %v2824_v12 }
 0x8ed   :  { %v2829_v25 = vadd.f32 1e-05, %v2823_v56  ;;  %v2820_v44 = vpop.xlane.xlu0 %2819 }
 0x8ee   :  { %6076 = vrsqrt.f32 %v2830_v59  ;;  %v2826_v26 = vmul.f32 0.03125, %v2820_v44  ;;  %v2817_v24 = vpop.xlane.xlu1 %2816 }
 0x8ef   :  { %6078 = vrsqrt.f32 %v2829_v25  ;;  %v2825_v53 = vmul.f32 0.03125, %v2817_v24 }
 0x8f0   :  { %v2832_v61 = vadd.f32 1e-05, %v2826_v26 }
 0x8f1   :  { %v2831_v48 = vadd.f32 1e-05, %v2825_v53 }
 0x8f2   :  { %6080 = vrsqrt.f32 %v2832_v61 }
 0x8f3   :  { %6082 = vrsqrt.f32 %v2831_v48 }
 0x8f8   :  { %v6077_v40 = vpop.eup %6076 }
 0x8f9   :  { %v6079_v2 = vpop.eup %6078  ;;  %v2842_v15 = vmul.f32 %v6077_v40, %v7174_v21 }
 0x8fa   :  { %v2841_v63 = vmul.f32 %v6079_v2, %v7182_v34 }
 0x8fb   :  { %v2854_v3 = vmul.f32 %v7207_v14, %v2842_v15 }
 0x8fc   :  { %v6081_v27 = vpop.eup %6080  ;;  %v2853_v5 = vmul.f32 %v7207_v14, %v2841_v63 }
 0x8fd   :  { %v6083_v29 = vpop.eup %6082  ;;  %v2844_v46 = vmul.f32 %v6081_v27, %v7194_v8  ;;  %v2866_v1 = vadd.f32 %v7213_v11, %v2854_v3  ;;  %v4771_v8 = vld [vmem:[%s7262_s7] ss:$0 sm:$0xff] }
 0x8fe   :  { %v2865_v58 = vadd.f32 %v7213_v11, %v2853_v5  ;;  %v2843_v57 = vmul.f32 %v6083_v29, %v7198_v9  ;;  %v4778_v3 = vld [vmem:[%s7270_s15] ss:$0 sm:$0xff] }
 0x8ff   :  { %v2856_v45 = vmul.f32 %v7207_v14, %v2844_v46 }
 0x900   :  { %5361 = vmatprep.mubr.msk.f32.mxu1 %vm946_vm3, %v2865_v58  ;;  %v2855_v21 = vmul.f32 %v7207_v14, %v2843_v57 }
 0x901   :  { %5362 = vmatmul.mubr.msk.f32.gmra.mrb[14].mxu1 %vm946_vm3, %v2866_v1  ;;  %v2868_v31 = vadd.f32 %v7213_v11, %v2856_v45 }
 0x902   :  { %v2867_v34 = vadd.f32 %v7213_v11, %v2855_v21 }
 0x904   :  { %5364 = vmatprep.mubr.msk.f32.mxu1 %vm946_vm3, %v2867_v34 }
 0x905   :  { %5365 = vmatmul.mubr.msk.f32.gmra.mrb[16].mxu1 %vm946_vm3, %v2868_v31  ;;  %v4781_v31 = vld [vmem:[%s6766_s27 + $0x20] sm:$0xff] }
 0x93b   :  { %v5360_v9 = vpop.f32.mrb[12].mxu1 }
 0x93c   :  { %v2970_v14 = vadd.f32 %v5360_v9, %v4771_v8  ;;  %v2964_v43 = vpop.f32.mrb[13].mxu1  ;;  %v4783_v9 = vld [vmem:[%s6766_s27 + $0x30] sm:$0xff] }
 0x93d   :  { %v2965_v52 = vadd.f32 %v4771_v8, %v2964_v43 }
 0x93e   :  { %v3000_v6 = vmul.f32 0.70710677, %v2970_v14  ;;  %v2994_v22 = vmul.f32 0.5, %v2970_v14  ;;  %v4784_v14 = vld [vmem:[%s6766_s27 + $0x38] sm:$0xff] }
 0x93f   :  { %v2999_v28 = vmul.f32 0.70710677, %v2965_v52  ;;  %v2993_v35 = vmul.f32 0.5, %v2965_v52  ;;  %v5814_v43 = vpack.c.bf16 %v4784_v14, %v4783_v9 }
 0x940   :  { %6084 = verf.f32 %v3000_v6 }
 0x941   :  { %6086 = verf.f32 %v2999_v28 }
 0x94a   :  { %v6085_v11 = vpop.eup %6084 }
 0x94b   :  { %v6087_v10 = vpop.eup %6086  ;;  %v3012_v41 = vadd.f32 1.0, %v6085_v11 }
 0x94c   :  { %v3011_v23 = vadd.f32 1.0, %v6087_v10 }
 0x94d   :  { %v3018_v39 = vmul.f32 %v3012_v41, %v2994_v22 }
 0x94e   :  { %v3017_v19 = vmul.f32 %v3011_v23, %v2993_v35 }
 0x950   :  { %5399 = vmatprep.mubr.f32.mxu1 %v3017_v19 }
 0x951   :  { %5400 = vmatmul.mubr.f32.vlgmr.msra.gmra.mrb[18].mxu1 %v3018_v39 }
 0x9d4   :  { %v5363_v13 = vpop.f32.mrb[14].mxu1 }
 0x9d5   :  { %v2980_v62 = vadd.f32 %v5363_v13, %v4771_v8  ;;  %v2974_v16 = vpop.f32.mrb[15].mxu1 }
 0x9d6   :  { %v2975_v42 = vadd.f32 %v4771_v8, %v2974_v16 }
 0x9d7   :  { %v3002_v4 = vmul.f32 0.70710677, %v2980_v62  ;;  %v2996_v25 = vmul.f32 0.5, %v2980_v62 }
 0x9d8   :  { %v3001_v55 = vmul.f32 0.70710677, %v2975_v42  ;;  %v5366_v47 = vpop.f32.mrb[16].mxu1  ;;  %v2995_v56 = vmul.f32 0.5, %v2975_v42 }
 0x9d9   :  { %6088 = verf.f32 %v3002_v4  ;;  %v2990_v49 = vadd.f32 %v5366_v47, %v4771_v8  ;;  %v2984_v32 = vpop.f32.mrb[17].mxu1 }
 0x9da   :  { %6090 = verf.f32 %v3001_v55  ;;  %v2985_v33 = vadd.f32 %v4771_v8, %v2984_v32  ;;  %v4782_v8 = vld [vmem:[%s6766_s27 + $0x28] sm:$0xff]  ;;  %s6217_s27 = smov 35  }
 0x9db   :  { %v3004_v17 = vmul.f32 0.70710677, %v2990_v49  ;;  %v2998_v2 = vmul.f32 0.5, %v2990_v49 }
 0x9dc   :  { %v3003_v51 = vmul.f32 0.70710677, %v2985_v33  ;;  %v2997_v48 = vmul.f32 0.5, %v2985_v33 }
 0x9dd   :  { %6092 = verf.f32 %v3004_v17 }
 0x9de   :  { %6094 = verf.f32 %v3003_v51 }
 0x9e3   :  { %v6089_v20 = vpop.eup %6088 }
 0x9e4   :  { %v6091_v12 = vpop.eup %6090  ;;  %v3014_v30 = vadd.f32 1.0, %v6089_v20  ;;  %v7313_v20 = vld [vmem:[%s6823_s5 + $0x1] ss:$0 sm:$0xff] }
 0x9e5   :  { %v3013_v59 = vadd.f32 1.0, %v6091_v12 }
 0x9e6   :  { %v3020_v61 = vmul.f32 %v3014_v30, %v2996_v25  ;;  %v4793_v25 = vld [vmem:[%s6771_s1 + $0x20] sm:$0xff] }
 0x9e7   :  { %v6093_v44 = vpop.eup %6092  ;;  %v3019_v26 = vmul.f32 %v3013_v59, %v2995_v56 }
 0x9e8   :  { %v6095_v24 = vpop.eup %6094  ;;  %v3016_v53 = vadd.f32 1.0, %v6093_v44  ;;  %v4794_v44 = vld [vmem:[%s6771_s1 + $0x28] sm:$0xff] }
 0x9e9   :  { %v3015_v40 = vadd.f32 1.0, %v6095_v24  ;;  %5402 = vmatprep.mubr.f32.mxu1 %v3019_v26  ;;  %v5818_v26 = vpack.c.bf16 %v4794_v44, %v4793_v25  ;;  %v4795_v24 = vld [vmem:[%s6771_s1 + $0x30] sm:$0xff]  ;;  %v4805_v44 = vld [vmem:[%s6945_s21 + $0x1] sm:$0x1] }
 0x9ea   :  { %5403 = vmatmul.mubr.f32.gmra.mrb[20].mxu1 %v3020_v61  ;;  %v3022_v63 = vmul.f32 %v3016_v53, %v2998_v2  ;;  %v4796_v53 = vld [vmem:[%s6771_s1 + $0x38] sm:$0xff] }
 0x9eb   :  { %v3021_v15 = vmul.f32 %v3015_v40, %v2997_v48  ;;  %v5822_v61 = vpack.c.bf16 %v4796_v53, %v4795_v24  ;;  %v4816_v48 = vld [vmem:[%s6887_s13 + $0x40] sm:$0xff]  ;;  %v4817_v40 = vld [vmem:[%s6887_s13 + $0x48] sm:$0xff] }
 0x9ec   :  { %v7335_v2 = vpack.c.bf16 %v4817_v40, %v4816_v48  ;;  %v4806_v53 = vld [vmem:[%s6950_s25 + $0x1] sm:$0x1] }
 0x9ed   :  { %5405 = vmatprep.mubr.f32.mxu1 %v3021_v15  ;;  %v4818_v15 = vld [vmem:[%s6887_s13 + $0x50] sm:$0xff] }
 0x9ee   :  { %5406 = vmatmul.mubr.f32.gmra.mrb[22].mxu1 %v3022_v63  ;;  %v4819_v63 = vld [vmem:[%s6887_s13 + $0x58] sm:$0xff] }
 0x9ef   :  { %5477 = vmatprep.mubr.msk.f32.mxu1 %vm6205_vm12, %v6185_v60  ;;  %5840 = vmatpush3.bf16.msra.mxu1 %v7335_v2 }
 0x9f0   :  { %5841 = vmatprep.subr.bf16.mxu1 %v6198_v37 }
 0xa24   :  { %v5401_v27 = vpop.f32.mrb[18].mxu1 }
 0xa25   :  { %v3118_v5 = vadd.f32 %v5401_v27, %v4778_v3  ;;  %v3112_v29 = vpop.f32.mrb[19].mxu1  ;;  %v4820_v27 = vld [vmem:[%s6887_s13 + $0x60] sm:$0xff] }
 0xa26   :  { %v3113_v46 = vadd.f32 %v4778_v3, %v3112_v29 }
 0xa27   :  { %v7274_v58 = vadd.f32 %v3118_v5, %v7124_v36  ;;  %v5810_v36 = vpack.c.bf16 %v4782_v8, %v4781_v31  ;;  %v4821_v5 = vld [vmem:[%s6887_s13 + $0x68] sm:$0xff] }
 0xa28   :  { %v7277_v57 = vadd.f32 %v3113_v46, %v7126_v18  ;;  %v7346_v29 = vpack.c.bf16 %v4821_v5, %v4820_v27  ;;  %v4822_v46 = vld [vmem:[%s6887_s13 + $0x70] sm:$0xff] }
 0xa29   :  { %v3150_v1 = vmul.f32 %v7274_v58, %v7274_v58  ;;  %5811 = vmatprep.subr.bf16.mxu0 %v5810_v36 }
 0xa2a   :  { %v3149_v45 = vmul.f32 %v7277_v57, %v7277_v57  ;;  %5813 = vmatpush3.bf16.msra.mxu0 %v5810_v36 }
 0xa2b   :  { %v3158_v21 = vsel %vm946_vm3, %v3150_v1, 0.0  ;;  %5815 = vmatprep.subr.bf16.mxu0 %v5814_v43  ;;  %v4823_v1 = vld [vmem:[%s6887_s13 + $0x78] sm:$0xff]  ;;  %s6218_s13 = smov 33  }
 0xa2c   :  { %3159 = vadd.xlane.f32.xlu0 %v3158_v21  ;;  %v3155_v34 = vsel %vm946_vm3, %v3149_v45, 0.0  ;;  %v7352_v45 = vpack.c.bf16 %v4823_v1, %v4822_v46  ;;  %s4719_s25 = sld [smem:[%s7627_s0 + %s6218_s13]]  }
 0xa2d   :  { %3156 = vadd.xlane.f32.xlu1 %v3155_v34 }
 0xa2e   :  { %5817 = vmatpush3.bf16.msra.mxu0 %v5814_v43 }
 0xa2f   :  { %5819 = vmatprep.subr.bf16.mxu0 %v5818_v26 }
 0xab9   :  { %v3160_v18 = vpop.xlane.xlu0 %3159 }
 0xaba   :  { %v3174_v52 = vmul.f32 0.03125, %v3160_v18  ;;  %v3157_v6 = vpop.xlane.xlu1 %3156 }
 0xabb   :  { %v3173_v28 = vmul.f32 0.03125, %v3157_v6 }
 0xabc   :  { %v3180_v11 = vadd.f32 1e-05, %v3174_v52 }
 0xabd   :  { %v3179_v10 = vadd.f32 1e-05, %v3173_v28  ;;  %v5404_v41 = vpop.f32.mrb[20].mxu1 }
 0xabe   :  { %6096 = vrsqrt.f32 %v3180_v11  ;;  %v3128_v35 = vadd.f32 %v5404_v41, %v4778_v3  ;;  %v3122_v23 = vpop.f32.mrb[21].mxu1 }
 0xabf   :  { %6098 = vrsqrt.f32 %v3179_v10  ;;  %v3123_v22 = vadd.f32 %v4778_v3, %v3122_v23 }
 0xac0   :  { %v7290_v19 = vadd.f32 %v3128_v35, %v7134_v50 }
 0xac1   :  { %v7293_v39 = vadd.f32 %v3123_v22, %v7136_v0  ;;  %v5407_v13 = vpop.f32.mrb[22].mxu1 }
 0xac2   :  { %v3138_v62 = vadd.f32 %v5407_v13, %v4778_v3  ;;  %v3132_v16 = vpop.f32.mrb[23].mxu1  ;;  %v3152_v42 = vmul.f32 %v7290_v19, %v7290_v19 }
 0xac3   :  { %v3133_v4 = vadd.f32 %v4778_v3, %v3132_v16  ;;  %v3151_v55 = vmul.f32 %v7293_v39, %v7293_v39  ;;  %v7340_v3 = vpack.c.bf16 %v4819_v63, %v4818_v15 }
 0xac4   :  { %v7300_v47 = vadd.f32 %v3138_v62, %v7140_v7  ;;  %v3164_v50 = vsel %vm946_vm3, %v3152_v42, 0.0 }
 0xac5   :  { %v7304_v49 = vadd.f32 %v3133_v4, %v7142_v38  ;;  %3165 = vadd.xlane.f32.xlu0 %v3164_v50  ;;  %v3161_v0 = vsel %vm946_vm3, %v3151_v55, 0.0  ;;  %5843 = vmatpush3.bf16.msra.mxu1 %v7340_v3  ;;  %v4807_v50 = vld [vmem:[%s6882_s9 + $0x40] sm:$0xff] }
 0xac6   :  { %3162 = vadd.xlane.f32.xlu1 %v3161_v0  ;;  %v3154_v32 = vmul.f32 %v7300_v47, %v7300_v47  ;;  %5844 = vmatprep.subr.bf16.mxu1 %v6198_v37  ;;  %v4808_v0 = vld [vmem:[%s6882_s9 + $0x48] sm:$0xff] }
 0xac7   :  { %v3153_v33 = vmul.f32 %v7304_v49, %v7304_v49 }
 0xac8   :  { %v6097_v17 = vpop.eup %6096  ;;  %v3170_v7 = vsel %vm946_vm3, %v3154_v32, 0.0  ;;  %v5827_v32 = vpack.c.bf16 %v4808_v0, %v4807_v50 }
 0xac9   :  { %v6099_v51 = vpop.eup %6098  ;;  %v3192_v38 = vmul.f32 %v6097_v17, %v7274_v58  ;;  %3171 = vadd.xlane.f32.xlu0 %v3170_v7  ;;  %v3167_v12 = vsel %vm946_vm3, %v3153_v33, 0.0  ;;  %5846 = vmatpush3.bf16.msra.mxu1 %v7346_v29  ;;  %v4809_v33 = vld [vmem:[%s6882_s9 + $0x50] sm:$0xff]  ;;  %v4810_v17 = vld [vmem:[%s6882_s9 + $0x58] sm:$0xff] }
 0xaca   :  { %3168 = vadd.xlane.f32.xlu1 %v3167_v12  ;;  %v3191_v30 = vmul.f32 %v6099_v51, %v7277_v57  ;;  %5847 = vmatprep.subr.bf16.mxu1 %v6198_v37  ;;  %v5830_v7 = vpack.c.bf16 %v4810_v17, %v4809_v33  ;;  %v4811_v51 = vld [vmem:[%s6882_s9 + $0x60] sm:$0xff]  ;;  %v4813_v12 = vld [vmem:[%s6882_s9 + $0x70] sm:$0xff] }
 0xacb   :  { %v7322_v59 = vmul.f32 %v7313_v20, %v3192_v38 }
 0xacc   :  { %v7319_v56 = vmul.f32 %v7313_v20, %v3191_v30  ;;  %v4814_v30 = vld [vmem:[%s6882_s9 + $0x78] sm:$0xff] }
 0xacd   :  { %5849 = vmatpush3.bf16.msra.mxu1 %v7352_v45 }
 0xace   :  { %5416 = vmatprep.mubr.msk.f32.mxu0 %vm946_vm3, %v7319_v56  ;;  %5862 = vmatprep.subr.bf16.mxu1 %v6198_v37 }
 0xacf   :  { %5417 = vmatmul.mubr.msk.f32.vlgmr.msra.gmra.mrb[20].mxu0 %vm946_vm3, %v7322_v59 }
 0xad0   :  { %5821 = vmatpush3.bf16.msra.mxu0 %v5818_v26 }
 0xad1   :  { %5823 = vmatprep.subr.bf16.mxu0 %v5822_v61 }
 0xad4   :  { %5825 = vmatpush3.bf16.msra.mxu0 %v5822_v61 }
 0xad5   :  { %5826 = vmatprep.subr.bf16.mxu0 %v6198_v37 }
 0xb52   :  { %v3166_v21 = vpop.xlane.xlu0 %3165 }
 0xb53   :  { %v3176_v34 = vmul.f32 0.03125, %v3166_v21  ;;  %v3163_v31 = vpop.xlane.xlu1 %3162 }
 0xb54   :  { %v3175_v8 = vmul.f32 0.03125, %v3163_v31  ;;  %v4825_v31 = vld [vmem:[%s6971_s30 + $0x48] sm:$0xff] }
 0xb55   :  { %v3182_v9 = vadd.f32 1e-05, %v3176_v34  ;;  %v4824_v34 = vld [vmem:[%s6971_s30 + $0x40] sm:$0xff] }
 0xb56   :  { %v3181_v36 = vadd.f32 1e-05, %v3175_v8  ;;  %v3172_v14 = vpop.xlane.xlu0 %3171 }
 0xb57   :  { %6100 = vrsqrt.f32 %v3182_v9  ;;  %v3178_v43 = vmul.f32 0.03125, %v3172_v14  ;;  %v3169_v18 = vpop.xlane.xlu1 %3168 }
 0xb58   :  { %6102 = vrsqrt.f32 %v3181_v36  ;;  %v3177_v52 = vmul.f32 0.03125, %v3169_v18  ;;  %v5851_v36 = vpack.c.bf16 %v4825_v31, %v4824_v34  ;;  %v4827_v18 = vld [vmem:[%s6971_s30 + $0x58] sm:$0xff] }
 0xb59   :  { %v3184_v6 = vadd.f32 1e-05, %v3178_v43  ;;  %v4826_v43 = vld [vmem:[%s6971_s30 + $0x50] sm:$0xff] }
 0xb5a   :  { %v3183_v28 = vadd.f32 1e-05, %v3177_v52  ;;  %v5854_v52 = vpack.c.bf16 %v4827_v18, %v4826_v43 }
 0xb5b   :  { %6104 = vrsqrt.f32 %v3184_v6  ;;  %v4828_v6 = vld [vmem:[%s6971_s30 + $0x60] sm:$0xff] }
 0xb5c   :  { %6106 = vrsqrt.f32 %v3183_v28  ;;  %v4829_v28 = vld [vmem:[%s6971_s30 + $0x68] sm:$0xff] }
 0xb61   :  { %v6101_v11 = vpop.eup %6100 }
 0xb62   :  { %v6103_v10 = vpop.eup %6102  ;;  %v3194_v41 = vmul.f32 %v6101_v11, %v7290_v19  ;;  %v5857_v11 = vpack.c.bf16 %v4829_v28, %v4828_v6 }
 0xb63   :  { %v3193_v35 = vmul.f32 %v6103_v10, %v7293_v39  ;;  %v4830_v10 = vld [vmem:[%s6971_s30 + $0x70] sm:$0xff] }
 0xb64   :  { %v3206_v62 = vmul.f32 %v7313_v20, %v3194_v41  ;;  %v4831_v41 = vld [vmem:[%s6971_s30 + $0x78] sm:$0xff]  ;;  %s6219_s30 = smov 34  }
 0xb65   :  { %v6105_v23 = vpop.eup %6104  ;;  %v3205_v22 = vmul.f32 %v7313_v20, %v3193_v35  ;;  %v5860_v35 = vpack.c.bf16 %v4831_v41, %v4830_v10 }
 0xb66   :  { %v6107_v13 = vpop.eup %6106  ;;  %v3196_v16 = vmul.f32 %v6105_v23, %v7300_v47 }
 0xb67   :  { %5419 = vmatprep.mubr.msk.f32.mxu0 %vm946_vm3, %v3205_v22  ;;  %v3195_v42 = vmul.f32 %v6107_v13, %v7304_v49 }
 0xb68   :  { %5420 = vmatmul.mubr.msk.f32.gmra.mrb[22].mxu0 %vm946_vm3, %v3206_v62  ;;  %v3208_v55 = vmul.f32 %v7313_v20, %v3196_v16 }
 0xb69   :  { %v3207_v4 = vmul.f32 %v7313_v20, %v3195_v42  ;;  %v4812_v20 = vld [vmem:[%s6882_s9 + $0x68] sm:$0xff]  ;;  %s4721_s9 = sld [smem:[%s7627_s0 + %s6217_s27]]  }
 0xb6a   :  { %v5833_v38 = vpack.c.bf16 %v4812_v20, %v4811_v51 }
 0xb6b   :  { %5422 = vmatprep.mubr.msk.f32.mxu0 %vm946_vm3, %v3207_v4 }
 0xb6c   :  { %5423 = vmatmul.mubr.msk.f32.gmra.mrb[24].mxu0 %vm946_vm3, %v3208_v55 }
 0xb6d   :  { %5433 = vmatprep.mubr.msk.f32.mxu0 %vm946_vm3, %v7319_v56  ;;  %v5836_v56 = vpack.c.bf16 %v4814_v30, %v4813_v12 }
 0xb70   :  { %5434 = vmatmul.mubr.msk.f32.vlgmr.msra.gmra.mrb[26].mxu0 %vm946_vm3, %v7322_v59  ;;  %v4786_v59 = vld [vmem:[%s6940_s17 + $0x1] ss:$0 sm:$0xff] }
 0xb71   :  { %5436 = vmatprep.mubr.msk.f32.mxu0 %vm946_vm3, %v3205_v22  ;;  %5828 = vmatpush3.bf16.msra.mxu0 %v5827_v32 }
 0xb72   :  { %5829 = vmatprep.subr.bf16.mxu0 %v6198_v37 }
 0xb74   :  { %5437 = vmatmul.mubr.msk.f32.gmra.mrb[28].mxu0 %vm946_vm3, %v3206_v62 }
 0xb75   :  { %5439 = vmatprep.mubr.msk.f32.mxu0 %vm946_vm3, %v3207_v4  ;;  %5831 = vmatpush3.bf16.msra.mxu0 %v5830_v7 }
 0xb76   :  { %5832 = vmatprep.subr.bf16.mxu0 %v6198_v37 }
 0xb78   :  { %5440 = vmatmul.mubr.msk.f32.gmra.mrb[30].mxu0 %vm946_vm3, %v3208_v55 }
 0xb79   :  { %5834 = vmatpush3.bf16.msra.mxu0 %v5833_v38  ;;  %5458 = vmatprep.mubr.msk.f32.mxu0 %vm6205_vm12, %v6185_v60 }
 0xb7a   :  { %5835 = vmatprep.subr.bf16.mxu0 %v6198_v37 }
 0xb7d   :  { %5837 = vmatpush3.bf16.msra.mxu0 %v5836_v56 }
 0xb7e   :  { %5850 = vmatprep.subr.bf16.mxu0 %v6198_v37 }
 0xba2   :  { %v5418_v25 = vpop.f32.mrb[20].mxu0 }
 0xba3   :  { %v3306_v26 = vpop.f32.mrb[21].mxu0  ;;  %v3312_v61 = vadd.f32 %v5418_v25, %v4786_v59 }
 0xba4   :  { %v3307_v24 = vadd.f32 %v4786_v59, %v3306_v26  ;;  %v4848_v26 = vld [vmem:[%s7044_s6 + $0x48] sm:$0xff] }
 0xba5   :  { %v3723_v15 = vmul.f32 %v4805_v44, %v3312_v61  ;;  %v4850_v61 = vld [vmem:[%s7044_s6 + $0x58] sm:$0xff] }
 0xba6   :  { %v3474_v48 = vmul.f32 %v4805_v44, %v3307_v24  ;;  %v4847_v44 = vld [vmem:[%s7044_s6 + $0x40] sm:$0xff] }
 0xba7   :  { %v3724_v27 = vadd.f32 %v4806_v53, %v3723_v15  ;;  %v5898_v24 = vpack.c.bf16 %v4848_v26, %v4847_v44  ;;  %v4852_v15 = vld [vmem:[%s7044_s6 + $0x68] sm:$0xff]  ;;  %v4832_v26 = vld [vmem:[%s7094_s22 + $0x1] sm:$0x1]  ;;  %s6220_s22 = smov 36  }
 0xba8   :  { %v3475_v40 = vadd.f32 %v4806_v53, %v3474_v48  ;;  %v4849_v53 = vld [vmem:[%s7044_s6 + $0x50] sm:$0xff] }
 0xba9   :  { %v4837_v5 = vmul.f32 -1.442695, %v3724_v27  ;;  %v5902_v48 = vpack.c.bf16 %v4850_v61, %v4849_v53 }
 0xbaa   :  { %v4833_v63 = vmul.f32 -1.442695, %v3475_v40 }
 0xbac   :  { %6108 = vpow2.f32 %v4833_v63  ;;  %v4853_v63 = vld [vmem:[%s7044_s6 + $0x70] sm:$0xff] }
 0xbad   :  { %6110 = vpow2.f32 %v4837_v5  ;;  %v4854_v5 = vld [vmem:[%s7044_s6 + $0x78] sm:$0xff] }
 0xbb6   :  { %v6109_v46 = vpop.eup %6108 }
 0xbb7   :  { %v3479_v1 = vadd.f32 1.0, %v6109_v46  ;;  %v6111_v21 = vpop.eup %6110  ;;  %v5910_v46 = vpack.c.bf16 %v4854_v5, %v4853_v63 }
 0xbb8   :  { %v3728_v9 = vadd.f32 1.0, %v6111_v21 }
 0xbb9   :  { %6112 = vrcp.f32 %v3479_v1  ;;  %v4815_v1 = vld [vmem:[%s7057_s11 + $0x1] sm:$0x1] }
 0xbba   :  { %6114 = vrcp.f32 %v3728_v9 }
 0xbc3   :  { %v6113_v8 = vpop.eup %6112 }
 0xbc4   :  { %v7396_v14 = vmul.f32 %v6113_v8, %v3475_v40  ;;  %v6115_v23 = vpop.eup %6114  ;;  %v4851_v40 = vld [vmem:[%s7044_s6 + $0x60] sm:$0xff] }
 0xbc5   :  { %v7418_v22 = vmul.f32 %v6115_v23, %v3724_v27  ;;  %v5906_v27 = vpack.c.bf16 %v4852_v15, %v4851_v40 }
 0xbc6   :  { %5459 = vmatmul.mubr.msk.f32.vlgmr.msra.gmra.mrb[32].mxu0 %vm178_vm0, %v7396_v14  ;;  %5478 = vmatmul.mubr.msk.f32.vlgmr.msra.gmra.mrb[24].mxu1 %vm178_vm0, %v7396_v14 }
 0xbc7   :  { %5852 = vmatpush3.bf16.msra.mxu0 %v5851_v36  ;;  %5864 = vmatpush3.bf16.msra.mxu1 %v5827_v32 }
 0xbc8   :  { %5853 = vmatprep.subr.bf16.mxu0 %v6198_v37  ;;  %5865 = vmatprep.subr.bf16.mxu1 %v6198_v37 }
 0xbc9   :  { %5496 = vmatprep.mubr.msk.f32.mxu0 %vm6205_vm12, %v6185_v60  ;;  %5515 = vmatprep.mubr.msk.f32.mxu1 %vm6205_vm12, %v6185_v60 }
 0xbcb   :  { %5855 = vmatpush3.bf16.msra.mxu0 %v5854_v52  ;;  %5867 = vmatpush3.bf16.msra.mxu1 %v5830_v7 }
 0xbcc   :  { %5856 = vmatprep.subr.bf16.mxu0 %v6198_v37  ;;  %5868 = vmatprep.subr.bf16.mxu1 %v6198_v37 }
 0xbcf   :  { %5858 = vmatpush3.bf16.msra.mxu0 %v5857_v11  ;;  %5870 = vmatpush3.bf16.msra.mxu1 %v5833_v38 }
 0xbd0   :  { %5859 = vmatprep.subr.bf16.mxu0 %v6198_v37  ;;  %5871 = vmatprep.subr.bf16.mxu1 %v6198_v37 }
 0xbd3   :  { %5861 = vmatpush3.bf16.msra.mxu0 %v5860_v35  ;;  %5873 = vmatpush3.bf16.msra.mxu1 %v5836_v56 }
 0xbd4   :  { %5874 = vmatprep.subr.bf16.mxu0 %v6198_v37  ;;  %5886 = vmatprep.subr.bf16.mxu1 %v6198_v37 }
 0xbd6   :  { %5497 = vmatmul.mubr.msk.f32.vlgmr.msra.gmra.mrb[34].mxu0 %vm178_vm0, %v7396_v14  ;;  %5516 = vmatmul.mubr.msk.f32.vlgmr.msra.gmra.mrb[26].mxu1 %vm178_vm0, %v7418_v22 }
 0xbd7   :  { %5876 = vmatpush3.bf16.msra.mxu0 %v7335_v2  ;;  %5888 = vmatpush3.bf16.msra.mxu1 %v5851_v36  ;;  %v4798_v36 = vld [vmem:[%s7063_s16 + $0x1] ss:$0 sm:$0xff]  ;;  %s4720_s16 = sld [smem:[%s7627_s0 + %s6219_s30]]  }
 0xbd8   :  { %5877 = vmatprep.subr.bf16.mxu0 %v6198_v37  ;;  %5889 = vmatprep.subr.bf16.mxu1 %v6198_v37 }
 0xbd9   :  { %5534 = vmatprep.mubr.msk.f32.mxu0 %vm6205_vm12, %v6185_v60  ;;  %5553 = vmatprep.mubr.msk.f32.mxu1 %vm6205_vm12, %v6185_v60 }
 0xbdb   :  { %5879 = vmatpush3.bf16.msra.mxu0 %v7340_v3  ;;  %5891 = vmatpush3.bf16.msra.mxu1 %v5854_v52 }
 0xbdc   :  { %5880 = vmatprep.subr.bf16.mxu0 %v6198_v37  ;;  %5892 = vmatprep.subr.bf16.mxu1 %v6198_v37 }
 0xbdf   :  { %5882 = vmatpush3.bf16.msra.mxu0 %v7346_v29  ;;  %5894 = vmatpush3.bf16.msra.mxu1 %v5857_v11 }
 0xbe0   :  { %5883 = vmatprep.subr.bf16.mxu0 %v6198_v37  ;;  %5895 = vmatprep.subr.bf16.mxu1 %v6198_v37 }
 0xbe3   :  { %5885 = vmatpush3.bf16.msra.mxu0 %v7352_v45  ;;  %5897 = vmatpush3.bf16.msra.mxu1 %v5860_v35 }
 0xbe4   :  { %5899 = vmatprep.subr.bf16.mxu0 %v5898_v24 }
 0xbe6   :  { %5535 = vmatmul.mubr.msk.f32.vlgmr.msra.gmra.mrb[36].mxu0 %vm178_vm0, %v7418_v22  ;;  %5554 = vmatmul.mubr.msk.f32.vlgmr.msra.gmra.mrb[28].mxu1 %vm178_vm0, %v7418_v22 }
 0xbe7   :  { %5901 = vmatpush3.bf16.msra.mxu0 %v5898_v24 }
 0xbe8   :  { %5903 = vmatprep.subr.bf16.mxu0 %v5902_v48 }
 0xbeb   :  { %5905 = vmatpush3.bf16.msra.mxu0 %v5902_v48 }
 0xbec   :  { %5907 = vmatprep.subr.bf16.mxu0 %v5906_v27 }
 0xbef   :  { %5909 = vmatpush3.bf16.msra.mxu0 %v5906_v27  ;;  %v3717_v27 = vmul.f32 %v4832_v26, %v7396_v14 }
 0xbf0   :  { %5911 = vmatprep.subr.bf16.mxu0 %v5910_v46 }
 0xbf3   :  { %5913 = vmatpush3.bf16.msra.mxu0 %v5910_v46 }
 0xc3b   :  { %v5421_v60 = vpop.f32.mrb[22].mxu0 }
 0xc3c   :  { %v3316_v2 = vpop.f32.mrb[23].mxu0 }
 0xc3f   :  { %v5424_v3 = vpop.f32.mrb[24].mxu0 }
 0xc40   :  { %v3324_v13 = vpop.f32.mrb[25].mxu0 }
 0xc43   :  { %v7444_v62 = vpop.f32.mrb[26].mxu0 }
 0xc44   :  { %v3410_v29 = vpop.f32.mrb[27].mxu0  ;;  %v7475_v2 = vadd.f32 %v7444_v62, %v4798_v36 }
 0xc45   :  { %v7465_v18 = vadd.f32 %v4798_v36, %v3410_v29 }
 0xc47   :  { %v7446_v16 = vpop.f32.mrb[28].mxu0  ;;  %v4841_v11 = vmul.f32 -1.442695, %v7465_v18 }
 0xc48   :  { %v3420_v42 = vpop.f32.mrb[29].mxu0  ;;  %v7478_v3 = vadd.f32 %v7446_v16, %v4798_v36 }
 0xc49   :  { %v7467_v52 = vadd.f32 %v4798_v36, %v3420_v42 }
 0xc4b   :  { %v7448_v37 = vpop.f32.mrb[30].mxu0  ;;  %v4843_v41 = vmul.f32 -1.442695, %v7467_v52 }
 0xc4c   :  { %v3430_v45 = vpop.f32.mrb[31].mxu0  ;;  %v7481_v13 = vadd.f32 %v7448_v37, %v4798_v36 }
 0xc4d   :  { %v7469_v6 = vadd.f32 %v4798_v36, %v3430_v45  ;;  %v4842_v45 = vmul.f32 -1.442695, %v7475_v2 }
 0xc4f   :  { %v4845_v35 = vmul.f32 -1.442695, %v7469_v6 }
 0xc99   :  { %v3552_v4 = vpop.f32.mrb[32].mxu0  ;;  %v3637_v55 = vpop.f32.mrb[24].mxu1 }
 0xc9a   :  { %v5460_v50 = vpop.f32.mrb[33].mxu0  ;;  %v5479_v0 = vpop.f32.mrb[25].mxu1  ;;  %v3553_v21 = vadd.f32 %v4815_v1, %v3552_v4 }
 0xc9b   :  { %v4844_v50 = vmul.f32 -1.442695, %v7478_v3 }
 0xc9c   :  { %v3557_v34 = vand.u32 2147483647, %v3553_v21 }
 0xc9e   :  { %v3558_v31 = vsub.f32 0.0, %v3557_v34 }
 0xca0   :  { %v3559_v8 = vmul.f32 1.442695, %v3558_v31 }
 0xca2   :  { %6116 = vpow2.f32 %v3559_v8 }
 0xca3   :  { %6118 = vpow2.f32 %v4841_v11 }
 0xca4   :  { %6120 = vpow2.f32 %v4843_v41 }
 0xca5   :  { %6122 = vpow2.f32 %v4845_v35 }
 0xca9   :  { %v3707_v32 = vpop.f32.mrb[34].mxu0  ;;  %v3801_v33 = vpop.f32.mrb[26].mxu1 }
 0xcaa   :  { %v3711_v17 = vmul.f32 %v3707_v32, %v3637_v55  ;;  %v5498_v7 = vpop.f32.mrb[35].mxu0  ;;  %v5517_v51 = vpop.f32.mrb[27].mxu1  ;;  %v7461_v9 = vadd.f32 %v4815_v1, %v3801_v33  ;;  %v4846_v32 = vmul.f32 -1.442695, %v7481_v13 }
 0xcac   :  { %v3712_v20 = vsel %vm2316_vm13, %v3711_v17, 0.0  ;;  %v3806_v43 = vand.u32 2147483647, %v7461_v9  ;;  %v6117_v10 = vpop.eup %6116 }
 0xcad   :  { %3713 = vadd.xlane.f32.xlu1 %v3712_v20  ;;  %v3561_v60 = vadd.f32 1.0, %v6117_v10  ;;  %v6119_v29 = vpop.eup %6118  ;;  %v3564_v4 = vmul.f32 -0.5, %v6117_v10  ;;  %v3567_v7 = vand.u32 2147483647, %v6117_v10 }
 0xcae   :  { %v3807_v28 = vsub.f32 0.0, %v3806_v43  ;;  %v6121_v42 = vpop.eup %6120  ;;  %v3990_v62 = vadd.f32 1.0, %v6119_v29  ;;  %v3805_v29 = vmax.f32 %v7461_v9, 0.0 }
 0xcaf   :  { %v6123_v55 = vpop.eup %6122  ;;  %v3992_v17 = vadd.f32 1.0, %v6121_v42  ;;  %v3565_v16 = vadd.f32 1.0, %v3564_v4  ;;  %vm3568_vm1 = vcmp.lt.f32.partialorder %v3567_v7, 0.0004427343  ;;  %v3966_v4 = vmul.f32 %v4832_v26, %v7418_v22 }
 0xcb0   :  { %v3808_v23 = vmul.f32 1.442695, %v3807_v28  ;;  %v3994_v51 = vadd.f32 1.0, %v6123_v55 }
 0xcb2   :  { %6124 = vpow2.f32 %v3808_v23 }
 0xcb3   :  { %6126 = vlog2.f32 %v3561_v60 }
 0xcb4   :  { %6128 = vpow2.f32 %v4842_v45 }
 0xcb5   :  { %6130 = vpow2.f32 %v4844_v50 }
 0xcb6   :  { %6132 = vpow2.f32 %v4846_v32 }
 0xcb7   :  { %6134 = vrcp.f32 %v3990_v62 }
 0xcb8   :  { %6136 = vrcp.f32 %v3992_v17 }
 0xcb9   :  { %v3886_v38 = vpop.f32.mrb[36].mxu0  ;;  %v3956_v12 = vpop.f32.mrb[28].mxu1 }
 0xcba   :  { %v3960_v30 = vmul.f32 %v3956_v12, %v3886_v38  ;;  %v5536_v56 = vpop.f32.mrb[37].mxu0  ;;  %v5555_v59 = vpop.f32.mrb[29].mxu1  ;;  %v3566_v38 = vmul.f32 %v6117_v10, %v3565_v16 }
 0xcbc   :  { %v3961_v25 = vsel %vm2316_vm13, %v3960_v30, 0.0  ;;  %v6125_v0 = vpop.eup %6124  ;;  %v3556_v30 = vmax.f32 %v3553_v21, 0.0 }
 0xcbd   :  { %3962 = vadd.xlane.f32.xlu0 %v3961_v25  ;;  %v6127_v33 = vpop.eup %6126  ;;  %v3810_v37 = vadd.f32 1.0, %v6125_v0  ;;  %v3813_v24 = vmul.f32 -0.5, %v6125_v0  ;;  %v3816_v31 = vand.u32 2147483647, %v6125_v0 }
 0xcbe   :  { %v3563_v20 = vmul.f32 0.6931472, %v6127_v33  ;;  %v6129_v59 = vpop.eup %6128 }
 0xcbf   :  { %6138 = vlog2.f32 %v3810_v37  ;;  %v6131_v25 = vpop.eup %6130  ;;  %v3991_v40 = vadd.f32 1.0, %v6129_v59  ;;  %v3814_v34 = vadd.f32 1.0, %v3813_v24  ;;  %vm3817_vm2 = vcmp.lt.f32.partialorder %v3816_v31, 0.0004427343 }
 0xcc0   :  { %6140 = vrcp.f32 %v3994_v51  ;;  %v3569_v12 = vsel %vm3568_vm1, %v3566_v38, %v3563_v20  ;;  %v6133_v44 = vpop.eup %6132  ;;  %v3993_v1 = vadd.f32 1.0, %v6131_v25 }
 0xcc1   :  { %v3570_v56 = vadd.f32 %v3569_v12, %v3556_v30  ;;  %v6135_v53 = vpop.eup %6134  ;;  %6142 = vrcp.f32 %v3991_v40  ;;  %v3995_v8 = vadd.f32 1.0, %v6133_v44  ;;  %v3815_v41 = vmul.f32 %v6125_v0, %v3814_v34 }
 0xcc2   :  { %v6137_v48 = vpop.eup %6136  ;;  %v4008_v43 = vmul.f32 %v6135_v53, %v7465_v18  ;;  %6144 = vrcp.f32 %v3993_v1 }
 0xcc3   :  { %v3715_v61 = vmul.f32 %v3570_v56, %v7396_v14  ;;  %v4010_v28 = vmul.f32 %v6137_v48, %v7467_v52  ;;  %6146 = vrcp.f32 %v3995_v8 }
 0xcc9   :  { %v6139_v63 = vpop.eup %6138 }
 0xcca   :  { %v6141_v46 = vpop.eup %6140  ;;  %v3812_v36 = vmul.f32 0.6931472, %v6139_v63 }
 0xccb   :  { %v4012_v11 = vmul.f32 %v6141_v46, %v7469_v6  ;;  %v6143_v18 = vpop.eup %6142 }
 0xccc   :  { %v3818_v60 = vsel %vm3817_vm2, %v3815_v41, %v3812_v36  ;;  %v6145_v45 = vpop.eup %6144  ;;  %v4009_v32 = vmul.f32 %v6143_v18, %v7475_v2  ;;  %v4862_v2 = vld [vmem:[%s7119_s28 + $0x1] ss:$0 sm:$0xff]  ;;  %v4870_v18 = vld [vmem:[%s7167_s4 + $0x38] sm:$0xff] }
 0xccd   :  { %v3819_v42 = vadd.f32 %v3818_v60, %v3805_v29  ;;  %v6147_v50 = vpop.eup %6146  ;;  %v4011_v33 = vmul.f32 %v6145_v45, %v7478_v3  ;;  %v4868_v60 = vld [vmem:[%s7167_s4 + $0x28] sm:$0xff] }
 0xcce   :  { %v4013_v9 = vmul.f32 %v6147_v50, %v7481_v13 }
 0xccf   :  { %v3964_v52 = vmul.f32 %v3819_v42, %v7418_v22  ;;  %v4869_v42 = vld [vmem:[%s7167_s4 + $0x30] sm:$0xff] }
 0xd3a   :  { %v3714_v15 = vpop.xlane.xlu1 %3713 }
 0xd3b   :  { %v3716_v5 = vmul.f32 %v3715_v61, %v3714_v15 }
 0xd3d   :  { %v3718_v21 = vadd.f32 %v3717_v27, %v3716_v5 }
 0xd3f   :  { %v3722_v10 = vrot.slane %v3718_v21, %v6278_v54 }
 0xd41   :  { %v4014_v14 = vmul.f32 %v4008_v43, %v3722_v10  ;;  %v4016_v35 = vmul.f32 %v4010_v28, %v3722_v10  ;;  %v4018_v23 = vmul.f32 %v4012_v11, %v3722_v10 }
 0xd43   :  { %5572 = vmatprep.mubr.msk.f32.mxu0 %vm178_vm0, %v4014_v14 }
 0xd4a   :  { %v3963_v6 = vpop.xlane.xlu0 %3962 }
 0xd4b   :  { %v3965_v55 = vmul.f32 %v3964_v52, %v3963_v6  ;;  %v5918_v52 = vpack.c.bf16 %v4870_v18, %v4869_v42  ;;  %v4892_v42 = vld [vmem:[%s7224_s26 + $0xe8] sm:$0xff] }
 0xd4d   :  { %v3967_v0 = vadd.f32 %v3966_v4, %v3965_v55 }
 0xd4f   :  { %v3971_v62 = vrot.slane %v3967_v0, %v6278_v54 }
 0xd51   :  { %v4015_v17 = vmul.f32 %v4009_v32, %v3971_v62  ;;  %v4017_v16 = vmul.f32 %v4011_v33, %v3971_v62  ;;  %v4019_v7 = vmul.f32 %v4013_v9, %v3971_v62 }
 0xd53   :  { %5573 = vmatmul.mubr.msk.f32.vlgmr.msra.gmra.mrb[38].mxu0 %vm178_vm0, %v4015_v17 }
 0xd54   :  { %5575 = vmatprep.mubr.msk.f32.mxu0 %vm178_vm0, %v4016_v35 }
 0xd57   :  { %5576 = vmatmul.mubr.msk.f32.gmra.mrb[40].mxu0 %vm178_vm0, %v4017_v16 }
 0xd58   :  { %5578 = vmatprep.mubr.msk.f32.mxu0 %vm178_vm0, %v4018_v23  ;;  %v4867_v23 = vld [vmem:[%s7167_s4 + $0x20] sm:$0xff] }
 0xd59   :  { %v5914_v29 = vpack.c.bf16 %v4868_v60, %v4867_v23  ;;  %v4890_v23 = vld [vmem:[%s7224_s26 + $0xd8] sm:$0xff] }
 0xd5b   :  { %5579 = vmatmul.mubr.msk.f32.gmra.mrb[42].mxu0 %vm178_vm0, %v4019_v7  ;;  %5915 = vmatprep.subr.bf16.mxu1 %v5914_v29  ;;  %vm4680_vm0 = vcmask 23552  }
 0xd5c   :  { %5917 = vmatpush3.bf16.msra.mxu1 %v5914_v29  ;;  %v4891_v29 = vld [vmem:[%s7224_s26 + $0xe0] sm:$0xff] }
 0xd5d   :  { %5919 = vmatprep.subr.bf16.mxu1 %v5918_v52  ;;  %v5946_v18 = vpack.c.bf16 %v4892_v42, %v4891_v29 }
 0xd60   :  { %5921 = vmatpush3.bf16.msra.mxu1 %v5918_v52  ;;  %v4893_v52 = vld [vmem:[%s7224_s26 + $0xf0] sm:$0xff] }
 0xe26   :  { %v5574_v22 = vpop.f32.mrb[38].mxu0 }
 0xe27   :  { %v4143_v3 = vadd.f32 %v5574_v22, %v7274_v58  ;;  %v4113_v13 = vpop.f32.mrb[39].mxu0 }
 0xe28   :  { %v4142_v54 = vadd.f32 %v4113_v13, %v7277_v57 }
 0xe29   :  { %v4157_v37 = vadd.f32 %v4862_v2, %v4143_v3 }
 0xe2a   :  { %v4156_v51 = vadd.f32 %v4862_v2, %v4142_v54  ;;  %v5577_v20 = vpop.f32.mrb[40].mxu0 }
 0xe2b   :  { %v4145_v38 = vadd.f32 %v5577_v20, %v7290_v19  ;;  %v4123_v12 = vpop.f32.mrb[41].mxu0  ;;  %v4169_v30 = vsel %vm946_vm3, %v4157_v37, 0.0 }
 0xe2c   :  { %v4144_v56 = vadd.f32 %v4123_v12, %v7293_v39  ;;  %4170 = vadd.xlane.f32.xlu0 %v4169_v30  ;;  %v4166_v59 = vsel %vm946_vm3, %v4156_v51, 0.0  ;;  %v7557_v12 = vld [vmem:[%s7179_s12 + $0x1] ss:$0 sm:$0xff]  ;;  %s4722_s12 = sld [smem:[%s7627_s0 + %s6220_s22]]  }
 0xe2d   :  { %v7513_v25 = vadd.f32 %v4862_v2, %v4145_v38  ;;  %4167 = vadd.xlane.f32.xlu1 %v4166_v59 }
 0xe2e   :  { %v7515_v58 = vadd.f32 %v4862_v2, %v4144_v56  ;;  %v5580_v44 = vpop.f32.mrb[42].mxu0 }
 0xe2f   :  { %v4147_v57 = vadd.f32 %v5580_v44, %v7300_v47  ;;  %v4133_v26 = vpop.f32.mrb[43].mxu0  ;;  %v4175_v19 = vsel %vm946_vm3, %v7513_v25, 0.0 }
 0xe30   :  { %v4146_v24 = vadd.f32 %v4133_v26, %v7304_v49  ;;  %4176 = vadd.xlane.f32.xlu0 %v4175_v19  ;;  %v4172_v39 = vsel %vm946_vm3, %v7515_v58, 0.0 }
 0xe31   :  { %v4161_v53 = vadd.f32 %v4862_v2, %v4147_v57  ;;  %4173 = vadd.xlane.f32.xlu1 %v4172_v39  ;;  %v7562_v57 = vld [vmem:[%s7191_s19 + $0x1] ss:$0 sm:$0xff] }
 0xe32   :  { %v4160_v61 = vadd.f32 %v4862_v2, %v4146_v24 }
 0xe33   :  { %v4181_v14 = vsel %vm946_vm3, %v4161_v53, 0.0 }
 0xe34   :  { %v4178_v35 = vsel %vm946_vm3, %v4160_v61, 0.0 }
 0xeb9   :  { %v4171_v48 = vpop.xlane.xlu0 %4170 }
 0xeba   :  { %v4185_v40 = vmul.f32 0.03125, %v4171_v48  ;;  %v4168_v15 = vpop.xlane.xlu1 %4167 }
 0xebb   :  { %v4184_v63 = vmul.f32 0.03125, %v4168_v15 }
 0xebc   :  { %v4191_v27 = vsub.f32 %v4157_v37, %v4185_v40 }
 0xebd   :  { %v7523_v5 = vsub.f32 %v4156_v51, %v4184_v63  ;;  %v4177_v47 = vpop.xlane.xlu0 %4176 }
 0xebe   :  { %v4187_v46 = vmul.f32 0.03125, %v4177_v47  ;;  %v4174_v1 = vpop.xlane.xlu1 %4173  ;;  %v4197_v34 = vmul.f32 %v4191_v27, %v4191_v27  ;;  %v4879_v47 = vld [vmem:[%s7224_s26 + $0x80] sm:$0xff] }
 0xebf   :  { %v4186_v21 = vmul.f32 0.03125, %v4174_v1  ;;  %v4196_v49 = vmul.f32 %v7523_v5, %v7523_v5  ;;  %v4881_v1 = vld [vmem:[%s7224_s26 + $0x90] sm:$0xff] }
 0xec0   :  { %v7528_v31 = vsub.f32 %v7513_v25, %v4187_v46  ;;  %v4205_v8 = vsel %vm946_vm3, %v4197_v34, 0.0  ;;  %v4880_v46 = vld [vmem:[%s7224_s26 + $0x88] sm:$0xff] }
 0xec1   :  { %v7532_v36 = vsub.f32 %v7515_v58, %v4186_v21  ;;  %4206 = vadd.xlane.f32.xlu0 %v4205_v8  ;;  %v4202_v43 = vsel %vm946_vm3, %v4196_v49, 0.0  ;;  %v5922_v34 = vpack.c.bf16 %v4880_v46, %v4879_v47  ;;  %v4882_v21 = vld [vmem:[%s7224_s26 + $0x98] sm:$0xff]  ;;  %v4884_v8 = vld [vmem:[%s7224_s26 + $0xa8] sm:$0xff] }
 0xec2   :  { %4203 = vadd.xlane.f32.xlu1 %v4202_v43  ;;  %v4199_v28 = vmul.f32 %v7528_v31, %v7528_v31  ;;  %v5926_v49 = vpack.c.bf16 %v4882_v21, %v4881_v1  ;;  %v4885_v43 = vld [vmem:[%s7224_s26 + $0xb0] sm:$0xff] }
 0xec3   :  { %v4198_v11 = vmul.f32 %v7532_v36, %v7532_v36  ;;  %5923 = vmatprep.subr.bf16.mxu1 %v5922_v34 }
 0xec4   :  { %v4211_v10 = vsel %vm946_vm3, %v4199_v28, 0.0  ;;  %v4886_v28 = vld [vmem:[%s7224_s26 + $0xb8] sm:$0xff] }
 0xec5   :  { %4212 = vadd.xlane.f32.xlu0 %v4211_v10  ;;  %v4208_v41 = vsel %vm946_vm3, %v4198_v11, 0.0  ;;  %v5934_v11 = vpack.c.bf16 %v4886_v28, %v4885_v43  ;;  %v4887_v10 = vld [vmem:[%s7224_s26 + $0xc0] sm:$0xff] }
 0xec6   :  { %4209 = vadd.xlane.f32.xlu1 %v4208_v41  ;;  %v4888_v41 = vld [vmem:[%s7224_s26 + $0xc8] sm:$0xff] }
 0xec9   :  { %4182 = vadd.xlane.f32.xlu0 %v4181_v14  ;;  %v5938_v14 = vpack.c.bf16 %v4888_v41, %v4887_v10 }
 0xeca   :  { %4179 = vadd.xlane.f32.xlu1 %v4178_v35  ;;  %v4889_v35 = vld [vmem:[%s7224_s26 + $0xd0] sm:$0xff] }
 0xecb   :  { %v5942_v60 = vpack.c.bf16 %v4890_v23, %v4889_v35 }
 0xf4e   :  { %v4207_v45 = vpop.xlane.xlu0 %4206 }
 0xf4f   :  { %v4221_v6 = vmul.f32 0.03125, %v4207_v45  ;;  %v4204_v4 = vpop.xlane.xlu1 %4203  ;;  %v4894_v45 = vld [vmem:[%s7224_s26 + $0xf8] sm:$0xff] }
 0xf50   :  { %v4220_v55 = vmul.f32 0.03125, %v4204_v4 }
 0xf51   :  { %v4227_v50 = vadd.f32 1e-05, %v4221_v6  ;;  %v5950_v6 = vpack.c.bf16 %v4894_v45, %v4893_v52  ;;  %v4896_v52 = vld [vmem:[%s7270_s15 + $0x1] ss:$0 sm:$0xff] }
 0xf52   :  { %v4226_v0 = vadd.f32 1e-05, %v4220_v55  ;;  %v4213_v32 = vpop.xlane.xlu0 %4212 }
 0xf53   :  { %6148 = vrsqrt.f32 %v4227_v50  ;;  %v4223_v33 = vmul.f32 0.03125, %v4213_v32  ;;  %v4210_v9 = vpop.xlane.xlu1 %4209 }
 0xf54   :  { %6150 = vrsqrt.f32 %v4226_v0  ;;  %v4222_v62 = vmul.f32 0.03125, %v4210_v9 }
 0xf55   :  { %v4229_v17 = vadd.f32 1e-05, %v4223_v33 }
 0xf56   :  { %v4228_v16 = vadd.f32 1e-05, %v4222_v62  ;;  %v4183_v7 = vpop.xlane.xlu0 %4182 }
 0xf57   :  { %6152 = vrsqrt.f32 %v4229_v17  ;;  %v4189_v22 = vmul.f32 0.03125, %v4183_v7  ;;  %v4180_v2 = vpop.xlane.xlu1 %4179 }
 0xf58   :  { %6154 = vrsqrt.f32 %v4228_v16  ;;  %v4188_v3 = vmul.f32 0.03125, %v4180_v2 }
 0xf59   :  { %v7547_v13 = vsub.f32 %v4161_v53, %v4189_v22 }
 0xf5a   :  { %v7549_v54 = vsub.f32 %v4160_v61, %v4188_v3 }
 0xf5b   :  { %v4201_v37 = vmul.f32 %v7547_v13, %v7547_v13 }
 0xf5c   :  { %v4200_v51 = vmul.f32 %v7549_v54, %v7549_v54 }
 0xf5d   :  { %v6149_v20 = vpop.eup %6148  ;;  %v4217_v38 = vsel %vm946_vm3, %v4201_v37, 0.0  ;;  %v4872_v37 = vld [vmem:[%s7262_s7 + $0x1] ss:$0 sm:$0xff] }
 0xf5e   :  { %v6151_v30 = vpop.eup %6150  ;;  %v4239_v56 = vmul.f32 %v6149_v20, %v4191_v27  ;;  %4218 = vadd.xlane.f32.xlu0 %v4217_v38  ;;  %v4214_v59 = vsel %vm946_vm3, %v4200_v51, 0.0 }
 0xf5f   :  { %4215 = vadd.xlane.f32.xlu1 %v4214_v59  ;;  %v4238_v44 = vmul.f32 %v6151_v30, %v7523_v5 }
 0xf60   :  { %v4251_v26 = vmul.f32 %v7557_v12, %v4239_v56 }
 0xf61   :  { %v6153_v19 = vpop.eup %6152  ;;  %v4250_v24 = vmul.f32 %v7557_v12, %v4238_v44 }
 0xf62   :  { %v6155_v39 = vpop.eup %6154  ;;  %v4241_v53 = vmul.f32 %v6153_v19, %v7528_v31  ;;  %v4263_v40 = vadd.f32 %v7562_v57, %v4251_v26  ;;  %v4883_v31 = vld [vmem:[%s7224_s26 + $0xa0] sm:$0xff] }
 0xf63   :  { %v4262_v61 = vadd.f32 %v7562_v57, %v4250_v24  ;;  %v4240_v48 = vmul.f32 %v6155_v39, %v7532_v36  ;;  %v5930_v36 = vpack.c.bf16 %v4884_v8, %v4883_v31 }
 0xf64   :  { %v4253_v15 = vmul.f32 %v7557_v12, %v4241_v53 }
 0xf65   :  { %5589 = vmatprep.mubr.msk.f32.mxu1 %vm946_vm3, %v4262_v61  ;;  %v4252_v63 = vmul.f32 %v7557_v12, %v4240_v48 }
 0xf66   :  { %5590 = vmatmul.mubr.msk.f32.vlgmr.msra.gmra.mrb[30].mxu1 %vm946_vm3, %v4263_v40  ;;  %v4265_v5 = vadd.f32 %v7562_v57, %v4253_v15 }
 0xf67   :  { %v4264_v27 = vadd.f32 %v7562_v57, %v4252_v63  ;;  %5925 = vmatpush3.bf16.msra.mxu1 %v5922_v34 }
 0xf68   :  { %5927 = vmatprep.subr.bf16.mxu1 %v5926_v49 }
 0xf69   :  { %5592 = vmatprep.mubr.msk.f32.mxu1 %vm946_vm3, %v4264_v27 }
 0xf6a   :  { %5593 = vmatmul.mubr.msk.f32.gmra.mrb[32].mxu1 %vm946_vm3, %v4265_v5 }
 0xf6b   :  { %5929 = vmatpush3.bf16.msra.mxu1 %v5926_v49 }
 0xf6c   :  { %5931 = vmatprep.subr.bf16.mxu1 %v5930_v36 }
 0xf6f   :  { %5933 = vmatpush3.bf16.msra.mxu1 %v5930_v36 }
 0xf70   :  { %5935 = vmatprep.subr.bf16.mxu1 %v5934_v11 }
 0xf73   :  { %5937 = vmatpush3.bf16.msra.mxu1 %v5934_v11 }
 0xf74   :  { %5939 = vmatprep.subr.bf16.mxu1 %v5938_v14 }
 0xf77   :  { %5941 = vmatpush3.bf16.msra.mxu1 %v5938_v14 }
 0xf78   :  { %5943 = vmatprep.subr.bf16.mxu1 %v5942_v60 }
 0xf7b   :  { %5945 = vmatpush3.bf16.msra.mxu1 %v5942_v60 }
 0xf7c   :  { %5947 = vmatprep.subr.bf16.mxu1 %v5946_v18 }
 0xf7f   :  { %5949 = vmatpush3.bf16.msra.mxu1 %v5946_v18 }
 0xf80   :  { %5951 = vmatprep.subr.bf16.mxu1 %v5950_v6 }
 0xf83   :  { %5953 = vmatpush3.bf16.msra.mxu1 %v5950_v6 }
 0xfeb   :  { %v4219_v4 = vpop.xlane.xlu0 %4218 }
 0xfec   :  { %v4225_v55 = vmul.f32 0.03125, %v4219_v4  ;;  %v4216_v50 = vpop.xlane.xlu1 %4215 }
 0xfed   :  { %v4224_v0 = vmul.f32 0.03125, %v4216_v50 }
 0xfee   :  { %v4231_v32 = vadd.f32 1e-05, %v4225_v55 }
 0xfef   :  { %v4230_v33 = vadd.f32 1e-05, %v4224_v0 }
 0xff0   :  { %6156 = vrsqrt.f32 %v4231_v32 }
 0xff1   :  { %6158 = vrsqrt.f32 %v4230_v33 }
 0xffa   :  { %v6157_v9 = vpop.eup %6156 }
 0xffb   :  { %v6159_v62 = vpop.eup %6158  ;;  %v4243_v17 = vmul.f32 %v6157_v9, %v7547_v13 }
 0xffc   :  { %v4242_v16 = vmul.f32 %v6159_v62, %v7549_v54 }
 0xffd   :  { %v4255_v7 = vmul.f32 %v7557_v12, %v4243_v17 }
 0xffe   :  { %v4254_v22 = vmul.f32 %v7557_v12, %v4242_v16 }
 0xfff   :  { %v4267_v3 = vadd.f32 %v7562_v57, %v4255_v7 }
0x1000   :  { %v4266_v2 = vadd.f32 %v7562_v57, %v4254_v22 }
0x1002   :  { %5595 = vmatprep.mubr.msk.f32.mxu1 %vm946_vm3, %v4266_v2 }
0x1003   :  { %5596 = vmatmul.mubr.msk.f32.gmra.mrb[34].mxu1 %vm946_vm3, %v4267_v3 }
0x1039   :  { %v5591_v51 = vpop.f32.mrb[30].mxu1 }
0x103a   :  { %v4371_v20 = vadd.f32 %v5591_v51, %v4872_v37  ;;  %v4365_v38 = vpop.f32.mrb[31].mxu1 }
0x103b   :  { %v4366_v30 = vadd.f32 %v4872_v37, %v4365_v38  ;;  %v4587_v38 = vld [vmem:[%s4721_s9 + $0x8] sm:$0xff] }
0x103c   :  { %v4401_v13 = vmul.f32 0.70710677, %v4371_v20  ;;  %v4395_v48 = vmul.f32 0.5, %v4371_v20  ;;  %v4586_v20 = vld [vmem:[%s4721_s9] sm:$0xff] }
0x103d   :  { %v4400_v56 = vmul.f32 0.70710677, %v4366_v30  ;;  %v5594_v54 = vpop.f32.mrb[32].mxu1  ;;  %v4394_v53 = vmul.f32 0.5, %v4366_v30  ;;  %v4588_v30 = vld [vmem:[%s4721_s9 + $0x10] sm:$0xff] }
0x103e   :  { %6160 = verf.f32 %v4401_v13  ;;  %v4381_v59 = vadd.f32 %v5594_v54, %v4872_v37  ;;  %v4375_v44 = vpop.f32.mrb[33].mxu1  ;;  %v5954_v13 = vpack.c.bf16 %v4587_v38, %v4586_v20 }
0x103f   :  { %6162 = verf.f32 %v4400_v56  ;;  %v4376_v12 = vadd.f32 %v4872_v37, %v4375_v44  ;;  %v4589_v56 = vld [vmem:[%s4721_s9 + $0x18] sm:$0xff] }
0x1040   :  { %v4403_v26 = vmul.f32 0.70710677, %v4381_v59  ;;  %v4397_v1 = vmul.f32 0.5, %v4381_v59  ;;  %v5958_v54 = vpack.c.bf16 %v4589_v56, %v4588_v30  ;;  %5955 = vmatprep.subr.bf16.mxu0 %v5954_v13 }
0x1041   :  { %v4402_v19 = vmul.f32 0.70710677, %v4376_v12  ;;  %v4396_v47 = vmul.f32 0.5, %v4376_v12  ;;  %5957 = vmatpush3.bf16.msra.mxu0 %v5954_v13 }
0x1042   :  { %6164 = verf.f32 %v4403_v26  ;;  %5959 = vmatprep.subr.bf16.mxu0 %v5958_v54 }
0x1043   :  { %6166 = verf.f32 %v4402_v19 }
0x1045   :  { %5961 = vmatpush3.bf16.msra.mxu0 %v5958_v54 }
0x1048   :  { %v6161_v57 = vpop.eup %6160 }
0x1049   :  { %v6163_v24 = vpop.eup %6162  ;;  %v4413_v39 = vadd.f32 1.0, %v6161_v57 }
0x104a   :  { %v4412_v61 = vadd.f32 1.0, %v6163_v24 }
0x104b   :  { %v4419_v27 = vmul.f32 %v4413_v39, %v4395_v48  ;;  %v4897_v39 = vld [vmem:[%s4719_s25] ss:$0 sm:$0xff] }
0x104c   :  { %v6165_v40 = vpop.eup %6164  ;;  %v4418_v15 = vmul.f32 %v4412_v61, %v4394_v53 }
0x104d   :  { %v6167_v63 = vpop.eup %6166  ;;  %v4415_v5 = vadd.f32 1.0, %v6165_v40  ;;  %v4898_v40 = vld [vmem:[%s4720_s16] ss:$0 sm:$0xff] }
0x104e   :  { %v4414_v46 = vadd.f32 1.0, %v6167_v63  ;;  %5630 = vmatprep.mubr.f32.mxu1 %v4418_v15 }
0x104f   :  { %5631 = vmatmul.mubr.f32.vlgmr.msra.gmra.mrb[36].mxu1 %v4419_v27  ;;  %v4421_v21 = vmul.f32 %v4415_v5, %v4397_v1 }
0x1050   :  { %v4420_v34 = vmul.f32 %v4414_v46, %v4396_v47  ;;  %v4899_v47 = vld [vmem:[%s4722_s12] ss:$0 sm:$0xff] }
0x1052   :  { %5633 = vmatprep.mubr.f32.mxu1 %v4420_v34 }
0x1053   :  { %5634 = vmatmul.mubr.f32.gmra.mrb[38].mxu1 %v4421_v21 }
0x10d6   :  { %v5597_v49 = vpop.f32.mrb[34].mxu1 }
0x10d7   :  { %v4391_v31 = vadd.f32 %v5597_v49, %v4872_v37  ;;  %v4385_v8 = vpop.f32.mrb[35].mxu1 }
0x10d8   :  { %v4386_v36 = vadd.f32 %v4872_v37, %v4385_v8 }
0x10d9   :  { %v4405_v43 = vmul.f32 0.70710677, %v4391_v31  ;;  %v4399_v23 = vmul.f32 0.5, %v4391_v31 }
0x10da   :  { %v4404_v28 = vmul.f32 0.70710677, %v4386_v36  ;;  %v4398_v14 = vmul.f32 0.5, %v4386_v36 }
0x10db   :  { %6168 = verf.f32 %v4405_v43 }
0x10dc   :  { %6170 = verf.f32 %v4404_v28 }
0x10e5   :  { %v6169_v11 = vpop.eup %6168 }
0x10e6   :  { %v6171_v10 = vpop.eup %6170  ;;  %v4417_v41 = vadd.f32 1.0, %v6169_v11 }
0x10e7   :  { %v4416_v35 = vadd.f32 1.0, %v6171_v10 }
0x10e8   :  { %v4423_v29 = vmul.f32 %v4417_v41, %v4399_v23 }
0x10e9   :  { %v4422_v60 = vmul.f32 %v4416_v35, %v4398_v14 }
0x10eb   :  { %5636 = vmatprep.mubr.f32.mxu1 %v4422_v60 }
0x10ec   :  { %5637 = vmatmul.mubr.f32.gmra.mrb[40].mxu1 %v4423_v29 }
0x1122   :  { %v5632_v42 = vpop.f32.mrb[36].mxu1 }
0x1123   :  { %v4515_v18 = vpop.f32.mrb[37].mxu1 }
0x1126   :  { %v5635_v45 = vpop.f32.mrb[38].mxu1 }
0x1127   :  { %v4529_v6 = vadd.f32 %v5635_v45, %v4896_v52  ;;  %v4523_v4 = vpop.f32.mrb[39].mxu1 }
0x1128   :  { %v4524_v55 = vadd.f32 %v4896_v52, %v4523_v4 }
0x1129   :  { %v4541_v50 = vadd.f32 %v4529_v6, %v7513_v25 }
0x112a   :  { %v4540_v0 = vadd.f32 %v4524_v55, %v7515_v58 }
0x112b   :  { %v4547_v32 = vsel %vm946_vm3, %v4541_v50, 0.0 }
0x112c   :  { %4548 = vadd.xlane.f32.xlu0 %v4547_v32  ;;  %v4544_v33 = vsel %vm946_vm3, %v4540_v0, 0.0 }
0x112d   :  { %4545 = vadd.xlane.f32.xlu1 %v4544_v33 }
0x11b9   :  { %v4549_v9 = vpop.xlane.xlu0 %4548 }
0x11ba   :  { %v4551_v62 = vmul.f32 0.03125, %v4549_v9  ;;  %v4546_v17 = vpop.xlane.xlu1 %4545 }
0x11bb   :  { %v4550_v16 = vmul.f32 0.03125, %v4546_v17 }
0x11bc   :  { %v4553_v7 = vsub.f32 %v4541_v50, %v4551_v62 }
0x11bd   :  { %v4552_v22 = vsub.f32 %v4540_v0, %v4550_v16 }
0x11be   :  { %v4555_v2 = vmul.f32 %v4553_v7, %v4553_v7 }
0x11bf   :  { %v5638_v3 = vpop.f32.mrb[40].mxu1  ;;  %v4554_v37 = vmul.f32 %v4552_v22, %v4552_v22 }
0x11c0   :  { %v4533_v51 = vpop.f32.mrb[41].mxu1  ;;  %v4559_v25 = vsel %vm946_vm3, %v4555_v2, 0.0 }
0x11c1   :  { %4560 = vadd.xlane.f32.xlu0 %v4559_v25  ;;  %v4556_v58 = vsel %vm946_vm3, %v4554_v37, 0.0 }
0x11c2   :  { %4557 = vadd.xlane.f32.xlu1 %v4556_v58 }
0x124e   :  { %v4561_v59 = vpop.xlane.xlu0 %4560 }
0x124f   :  { %v4563_v44 = vmul.f32 0.03125, %v4561_v59  ;;  %v4558_v12 = vpop.xlane.xlu1 %4557 }
0x1250   :  { %v4562_v26 = vmul.f32 0.03125, %v4558_v12 }
0x1251   :  { %v4565_v19 = vadd.f32 1e-05, %v4563_v44 }
0x1252   :  { %v4564_v57 = vadd.f32 1e-05, %v4562_v26 }
0x1253   :  { %6172 = vrsqrt.f32 %v4565_v19 }
0x1254   :  { %6174 = vrsqrt.f32 %v4564_v57 }
0x125d   :  { %v6173_v24 = vpop.eup %6172 }
0x125e   :  { %v6175_v53 = vpop.eup %6174  ;;  %v4569_v61 = vmul.f32 %v6173_v24, %v4553_v7 }
0x125f   :  { %v4568_v48 = vmul.f32 %v6175_v53, %v4552_v22 }
0x1260   :  { %v4577_v15 = vmul.f32 %v4897_v39, %v4569_v61 }
0x1261   :  { %v4576_v63 = vmul.f32 %v4897_v39, %v4568_v48 }
0x1262   :  { %v4585_v5 = vadd.f32 %v4898_v40, %v4577_v15 }
0x1263   :  { %v4584_v27 = vadd.f32 %v4898_v40, %v4576_v63 }
0x1265   :  { %5647 = vmatprep.mubr.msk.f32.mxu0 %vm946_vm3, %v4584_v27 }
0x1266   :  { %5648 = vmatmul.mubr.msk.f32.vlgmr.msra.gmra.mrb[44].mxu0 %vm946_vm3, %v4585_v5 }
0x1339   :  { %v5649_v46 = vpop.f32.mrb[44].mxu0 }
0x133a   :  { %v4675_v1 = vadd.f32 %v5649_v46, %v4899_v47  ;;  %v4669_v34 = vpop.f32.mrb[45].mxu0 }
0x133b   :  { %v4670_v21 = vadd.f32 %v4899_v47, %v4669_v34 }
0x133c   :  { %6176 = vtanh.f32 %v4675_v1 }
0x133d   :  { %6178 = vtanh.f32 %v4670_v21 }
0x1346   :  { %v6177_v49 = vpop.eup %6176 }
0x1347   :  { %v6179_v31 = vpop.eup %6178  ;;  %4682 = vst.msk [vmem:[%s4723_s23 + $0x8] sm:$0xff] %vm4680_vm0, %v6177_v49 }
0x1348   :  { %4681 = vst.msk [vmem:[%s4723_s23] sm:$0xff] %vm4680_vm0, %v6179_v31 }

</bundles_post_ra>
